<compile_context>
chip_gen: v5e
topology: v5e:2x2
jax: 0.10.0
libtpu: 0.0.40
codegen_flags: <defaults>
</compile_context>

<pallas_src>
import jax
import jax.numpy as jnp
from jax.experimental import pallas as pl
from jax.experimental.pallas import tpu as pltpu

NUM_PF, NUM_FEAT, NUM_A, NUM_B = 10, 35, 60, 61
NUM_CLASSES = 11
HIDDEN = 1024
INPUT_DIM = NUM_PF + NUM_FEAT + NUM_A + NUM_B  # 166
K_PAD = 256      # input features padded to an MXU-friendly contraction dim
OUT_PAD = 128    # logits padded to a full lane width (unmasked stores)
BN_EPS = 1e-5


def _round_up(n, m):
    return ((n + m - 1) // m) * m


def _mlp_kernel(x_ref, w1_ref, b1_ref, w2_ref, b2_ref, w3_ref, b3_ref, o_ref):
    # Layer 1: Linear (BN folded) -> ReLU   (bf16 matmul, f32 accumulate)
    h1 = jnp.dot(x_ref[...], w1_ref[...], preferred_element_type=jnp.float32)
    h1 = jnp.maximum(h1 + b1_ref[...], 0.0).astype(jnp.bfloat16)
    # Layer 2: Linear (BN folded) -> ReLU
    h2 = jnp.dot(h1, w2_ref[...], preferred_element_type=jnp.float32)
    h2 = jnp.maximum(h2 + b2_ref[...], 0.0).astype(jnp.bfloat16)
    # Layer 3: Linear -> lane-padded logits
    o_ref[...] = jnp.dot(h2, w3_ref[...],
                         preferred_element_type=jnp.float32) + b3_ref[...]


def stage3_forward(pf_logits, feat_logits, a_logits, b_logits, packed, *, max_tm=256):
    # torch.cat(dim=1) equivalent + zero-pad K to 256 (wrapper glue).
    x = jnp.concatenate([pf_logits, feat_logits, a_logits, b_logits], axis=1)
    B = x.shape[0]
    x = jnp.pad(x, ((0, 0), (0, K_PAD - x.shape[1])))

    # Batch tiling: tile of max_tm rows (sublane-aligned); pad batch to a multiple.
    tm = min(max_tm, _round_up(B, 8))
    b_pad = _round_up(B, tm)
    if b_pad != B:
        x = jnp.pad(x, ((0, b_pad - B), (0, 0)))
    x = x.astype(jnp.bfloat16)

    w1, b1, w2, b2, w3, b3 = packed

    def resident(arr):  # weights/biases stay VMEM-resident across batch tiles
        return pl.BlockSpec(arr.shape, lambda i: (0, 0))

    out = pl.pallas_call(
        _mlp_kernel,
        out_shape=jax.ShapeDtypeStruct((b_pad, OUT_PAD), jnp.float32),
        grid=(b_pad // tm,),
        in_specs=[
            pl.BlockSpec((tm, K_PAD), lambda i: (i, 0)),
            resident(w1), resident(b1),
            resident(w2), resident(b2),
            resident(w3), resident(b3),
        ],
        out_specs=pl.BlockSpec((tm, OUT_PAD), lambda i: (i, 0)),
        compiler_params=pltpu.CompilerParams(
            dimension_semantics=("parallel",)),
    )(x, w1, b1, w2, b2, w3, b3)

    return out[:B, :NUM_CLASSES]


# ----------------------------------------------------------------------------
# Parameter construction (PyTorch-equivalent shapes) + folding/packing
# ----------------------------------------------------------------------------
def init_raw_params(key):
    """Synthetic parameters matching the PyTorch module (Linear stored as (in,out))."""
    ks = jax.random.split(key, 8)
    h, h2 = HIDDEN, HIDDEN // 2

    def lin(k, fan_in, fan_out):
        bound = 1.0 / jnp.sqrt(fan_in)
        kw, kb = jax.random.split(k)
        w = jax.random.uniform(kw, (fan_in, fan_out), jnp.float32, -bound, bound)
        b = jax.random.uniform(kb, (1, fan_out), jnp.float32, -bound, bound)
        return w, b

    w1, b1 = lin(ks[0], INPUT_DIM, h)
    w2, b2 = lin(ks[1], h, h2)
    w3, b3 = lin(ks[2], h2, NUM_CLASSES)

    # BatchNorm1d (eval mode): gamma/beta random, running_mean=0, running_var=1.
    g1 = 1.0 + 0.1 * jax.random.normal(ks[3], (1, h), jnp.float32)
    be1 = 0.1 * jax.random.normal(ks[4], (1, h), jnp.float32)
    g2 = 1.0 + 0.1 * jax.random.normal(ks[5], (1, h2), jnp.float32)
    be2 = 0.1 * jax.random.normal(ks[6], (1, h2), jnp.float32)
    rm1, rv1 = jnp.zeros((1, h), jnp.float32), jnp.ones((1, h), jnp.float32)
    rm2, rv2 = jnp.zeros((1, h2), jnp.float32), jnp.ones((1, h2), jnp.float32)

    return (w1, b1, g1, be1, rm1, rv1,
            w2, b2, g2, be2, rm2, rv2,
            w3, b3)


def pack_params(raw):
    """Fold eval-mode BN into the Linear layers, pad to MXU-friendly shapes, cast to bf16."""
    (w1, b1, g1, be1, rm1, rv1,
     w2, b2, g2, be2, rm2, rv2,
     w3, b3) = raw

    s1 = g1 * jax.lax.rsqrt(rv1 + BN_EPS)
    t1 = be1 - rm1 * s1
    s2 = g2 * jax.lax.rsqrt(rv2 + BN_EPS)
    t2 = be2 - rm2 * s2

    # (xW + b)*s + t == x(W*s) + (b*s + t)
    w1f, b1f = w1 * s1, b1 * s1 + t1
    w2f, b2f = w2 * s2, b2 * s2 + t2

    w1f = jnp.pad(w1f, ((0, K_PAD - INPUT_DIM), (0, 0)))            # (256, 1024)
    w3p = jnp.pad(w3, ((0, 0), (0, OUT_PAD - NUM_CLASSES)))         # (512, 128)
    b3p = jnp.pad(b3, ((0, 0), (0, OUT_PAD - NUM_CLASSES)))         # (1, 128)

    return (w1f.astype(jnp.bfloat16), b1f.astype(jnp.float32),
            w2f.astype(jnp.bfloat16), b2f.astype(jnp.float32),
            w3p.astype(jnp.bfloat16), b3p.astype(jnp.float32))


# ----------------------------------------------------------------------------
# References
# ----------------------------------------------------------------------------
def reference_forward_f32(pf, feat, a, b, raw):
    (w1, b1, g1, be1, rm1, rv1,
     w2, b2, g2, be2, rm2, rv2,
     w3, b3) = raw
    x = jnp.concatenate([pf, feat, a, b], axis=1)
    s1 = g1 * jax.lax.rsqrt(rv1 + BN_EPS); t1 = be1 - rm1 * s1
    s2 = g2 * jax.lax.rsqrt(rv2 + BN_EPS); t2 = be2 - rm2 * s2
    h1 = jnp.maximum((x @ w1 + b1) * s1 + t1, 0.0)
    h2 = jnp.maximum((h1 @ w2 + b2) * s2 + t2, 0.0)
    return h2 @ w3 + b3


def reference_forward_bf16(pf, feat, a, b, packed):
    """Mirrors the kernel's numerics (bf16 operands, f32 accumulation)."""
    w1, b1, w2, b2, w3, b3 = packed
    x = jnp.concatenate([pf, feat, a, b], axis=1)
    x = jnp.pad(x, ((0, 0), (0, K_PAD - x.shape[1]))).astype(jnp.bfloat16)
    h1 = jnp.maximum(jnp.dot(x, w1, preferred_element_type=jnp.float32) + b1,
                     0.0).astype(jnp.bfloat16)
    h2 = jnp.maximum(jnp.dot(h1, w2, preferred_element_type=jnp.float32) + b2,
                     0.0).astype(jnp.bfloat16)
    out = jnp.dot(h2, w3, preferred_element_type=jnp.float32) + b3
    return out[:, :NUM_CLASSES]


if __name__ == "__main__":
    key = jax.random.PRNGKey(0)
    kp, kx = jax.random.split(key)
    raw = init_raw_params(kp)
    packed = pack_params(raw)

    B = 8
    k1, k2, k3, k4 = jax.random.split(kx, 4)
    pf_logits = jax.random.normal(k1, (B, NUM_PF), jnp.float32)
    feat_logits = jax.random.normal(k2, (B, NUM_FEAT), jnp.float32)
    a_logits = jax.random.normal(k3, (B, NUM_A), jnp.float32)
    b_logits = jax.random.normal(k4, (B, NUM_B), jnp.float32)

    out = stage3_forward(pf_logits, feat_logits, a_logits, b_logits, packed)
    out = jax.block_until_ready(out)
    assert out.shape == (B, NUM_CLASSES)

    # Tight check vs. a reference mirroring the kernel's bf16/f32 numerics.
    ref_bf16 = reference_forward_bf16(pf_logits, feat_logits, a_logits, b_logits, packed)
    assert jnp.allclose(out, ref_bf16, atol=1e-2, rtol=1e-2), "mismatch vs bf16 reference"

    # Loose sanity check vs. the pure-f32 eval-mode module semantics.
    ref_f32 = reference_forward_f32(pf_logits, feat_logits, a_logits, b_logits, raw)
    assert jnp.allclose(out, ref_f32, atol=5e-2, rtol=5e-2), "mismatch vs f32 reference"

    print("KERNEL_OK")
</pallas_src>

<mosaic_0001>
module attributes {stable_mosaic.version = 11 : i64} {
  func.func @_mlp_kernel(%arg0: i32, %arg1: memref<8x256xbf16, #tpu.memory_space<vmem>>, %arg2: memref<256x1024xbf16, #tpu.memory_space<vmem>>, %arg3: memref<1x1024xf32, #tpu.memory_space<vmem>>, %arg4: memref<1024x512xbf16, #tpu.memory_space<vmem>>, %arg5: memref<1x512xf32, #tpu.memory_space<vmem>>, %arg6: memref<512x128xbf16, #tpu.memory_space<vmem>>, %arg7: memref<1x128xf32, #tpu.memory_space<vmem>>, %arg8: memref<8x128xf32, #tpu.memory_space<vmem>>) attributes {dimension_semantics = [#tpu.dimension_semantics<parallel>], iteration_bounds = array<i64: 1>, scalar_prefetch = 0 : i64, scratch_operands = 0 : i64, tpu.core_type = #tpu.core_type<tc>, window_params = [{transform_indices = @transform_0, window_bounds = array<i64: 8, 256>}, {pipeline_mode = #tpu.pipeline_mode<synchronous>, transform_indices = @transform_1, window_bounds = array<i64: 256, 1024>}, {pipeline_mode = #tpu.pipeline_mode<synchronous>, transform_indices = @transform_2, window_bounds = array<i64: 1, 1024>}, {pipeline_mode = #tpu.pipeline_mode<synchronous>, transform_indices = @transform_3, window_bounds = array<i64: 1024, 512>}, {pipeline_mode = #tpu.pipeline_mode<synchronous>, transform_indices = @transform_4, window_bounds = array<i64: 1, 512>}, {pipeline_mode = #tpu.pipeline_mode<synchronous>, transform_indices = @transform_5, window_bounds = array<i64: 512, 128>}, {pipeline_mode = #tpu.pipeline_mode<synchronous>, transform_indices = @transform_6, window_bounds = array<i64: 1, 128>}, {transform_indices = @transform_7, window_bounds = array<i64: 8, 128>}]} {
    %c0 = arith.constant 0 : index
    %c0_0 = arith.constant 0 : index
    %0 = vector.load %arg1[%c0, %c0_0] : memref<8x256xbf16, #tpu.memory_space<vmem>>, vector<8x256xbf16>
    %c0_1 = arith.constant 0 : index
    %c0_2 = arith.constant 0 : index
    %1 = vector.load %arg2[%c0_1, %c0_2] : memref<256x1024xbf16, #tpu.memory_space<vmem>>, vector<256x1024xbf16>
    %cst = arith.constant dense<0.000000e+00> : vector<8x1024xf32>
    %2 = tpu.matmul %0, %1, %cst {dimension_numbers = #tpu.dot_dimension_numbers<[1], [0], [0], [1], [0, 0, 1, 1], [], []>} : vector<8x256xbf16>, vector<256x1024xbf16>, vector<8x1024xf32> -> vector<8x1024xf32>
    %c0_3 = arith.constant 0 : index
    %c0_4 = arith.constant 0 : index
    %3 = vector.load %arg3[%c0_3, %c0_4] : memref<1x1024xf32, #tpu.memory_space<vmem>>, vector<1x1024xf32>
    %4 = vector.broadcast %3 : vector<1x1024xf32> to vector<8x1024xf32>
    %5 = arith.addf %2, %4 : vector<8x1024xf32>
    %cst_5 = arith.constant 0.000000e+00 : f32
    %6 = vector.broadcast %cst_5 : f32 to vector<8x1024xf32>
    %7 = arith.maximumf %5, %6 : vector<8x1024xf32>
    %8 = arith.truncf %7 : vector<8x1024xf32> to vector<8x1024xbf16>
    %c0_6 = arith.constant 0 : index
    %c0_7 = arith.constant 0 : index
    %9 = vector.load %arg4[%c0_6, %c0_7] : memref<1024x512xbf16, #tpu.memory_space<vmem>>, vector<1024x512xbf16>
    %cst_8 = arith.constant dense<0.000000e+00> : vector<8x512xf32>
    %10 = tpu.matmul %8, %9, %cst_8 {dimension_numbers = #tpu.dot_dimension_numbers<[1], [0], [0], [1], [0, 0, 1, 1], [], []>} : vector<8x1024xbf16>, vector<1024x512xbf16>, vector<8x512xf32> -> vector<8x512xf32>
    %c0_9 = arith.constant 0 : index
    %c0_10 = arith.constant 0 : index
    %11 = vector.load %arg5[%c0_9, %c0_10] : memref<1x512xf32, #tpu.memory_space<vmem>>, vector<1x512xf32>
    %12 = vector.broadcast %11 : vector<1x512xf32> to vector<8x512xf32>
    %13 = arith.addf %10, %12 : vector<8x512xf32>
    %cst_11 = arith.constant 0.000000e+00 : f32
    %14 = vector.broadcast %cst_11 : f32 to vector<8x512xf32>
    %15 = arith.maximumf %13, %14 : vector<8x512xf32>
    %16 = arith.truncf %15 : vector<8x512xf32> to vector<8x512xbf16>
    %c0_12 = arith.constant 0 : index
    %c0_13 = arith.constant 0 : index
    %17 = vector.load %arg6[%c0_12, %c0_13] : memref<512x128xbf16, #tpu.memory_space<vmem>>, vector<512x128xbf16>
    %cst_14 = arith.constant dense<0.000000e+00> : vector<8x128xf32>
    %18 = tpu.matmul %16, %17, %cst_14 {dimension_numbers = #tpu.dot_dimension_numbers<[1], [0], [0], [1], [0, 0, 1, 1], [], []>} : vector<8x512xbf16>, vector<512x128xbf16>, vector<8x128xf32> -> vector<8x128xf32>
    %c0_15 = arith.constant 0 : index
    %c0_16 = arith.constant 0 : index
    %19 = vector.load %arg7[%c0_15, %c0_16] : memref<1x128xf32, #tpu.memory_space<vmem>>, vector<1x128xf32>
    %20 = vector.broadcast %19 : vector<1x128xf32> to vector<8x128xf32>
    %21 = arith.addf %18, %20 : vector<8x128xf32>
    %c0_17 = arith.constant 0 : index
    %c0_18 = arith.constant 0 : index
    %22 = vector.load %arg8[%c0_17, %c0_18] : memref<8x128xf32, #tpu.memory_space<vmem>>, vector<8x128xf32>
    tpu.vector_store %arg8[%c0_17, %c0_18], %21 {strides = array<i32>} : memref<8x128xf32, #tpu.memory_space<vmem>>, vector<8x128xf32>,
    return
  }
  func.func @transform_0(%arg0: i32) -> (i32, i32) {
    %c0_i32 = arith.constant 0 : i32
    %c0_i32_0 = arith.constant 0 : i32
    return %arg0, %c0_i32 : i32, i32
  }
  func.func @transform_1(%arg0: i32) -> (i32, i32) {
    %c0_i32 = arith.constant 0 : i32
    %c0_i32_0 = arith.constant 0 : i32
    %c0_i32_1 = arith.constant 0 : i32
    return %c0_i32, %c0_i32_0 : i32, i32
  }
  func.func @transform_2(%arg0: i32) -> (i32, i32) {
    %c0_i32 = arith.constant 0 : i32
    %c0_i32_0 = arith.constant 0 : i32
    %c0_i32_1 = arith.constant 0 : i32
    return %c0_i32, %c0_i32_0 : i32, i32
  }
  func.func @transform_3(%arg0: i32) -> (i32, i32) {
    %c0_i32 = arith.constant 0 : i32
    %c0_i32_0 = arith.constant 0 : i32
    %c0_i32_1 = arith.constant 0 : i32
    return %c0_i32, %c0_i32_0 : i32, i32
  }
  func.func @transform_4(%arg0: i32) -> (i32, i32) {
    %c0_i32 = arith.constant 0 : i32
    %c0_i32_0 = arith.constant 0 : i32
    %c0_i32_1 = arith.constant 0 : i32
    return %c0_i32, %c0_i32_0 : i32, i32
  }
  func.func @transform_5(%arg0: i32) -> (i32, i32) {
    %c0_i32 = arith.constant 0 : i32
    %c0_i32_0 = arith.constant 0 : i32
    %c0_i32_1 = arith.constant 0 : i32
    return %c0_i32, %c0_i32_0 : i32, i32
  }
  func.func @transform_6(%arg0: i32) -> (i32, i32) {
    %c0_i32 = arith.constant 0 : i32
    %c0_i32_0 = arith.constant 0 : i32
    %c0_i32_1 = arith.constant 0 : i32
    return %c0_i32, %c0_i32_0 : i32, i32
  }
  func.func @transform_7(%arg0: i32) -> (i32, i32) {
    %c0_i32 = arith.constant 0 : i32
    %c0_i32_0 = arith.constant 0 : i32
    return %arg0, %c0_i32 : i32, i32
  }
}

</mosaic_0001>

<bundles_post_ra>
// kernel: tpu_custom_call.1
= control target key start
LH: loop header
LB: loop body
LE: loop exit
PB: predicated region body
PF: predicated region fallthrough
CT: control target
= control target key end

     0   :  { %12 = vsyncpa [#allocation3], 0  ;;  %s5895_s0 = inlined_call_operand.hbm [shape: bf16[8,256], index: 0, kind: input, shape index: {}]   ;;  %s5896_s1 = inlined_call_operand.hbm [shape: bf16[256,1024], index: 1, kind: input, shape index: {}]   ;;  %s5897_s2 = inlined_call_operand.hbm [shape: f32[1,1024], index: 2, kind: input, shape index: {}]   ;;  %s5898_s3 = inlined_call_operand.hbm [shape: bf16[1024,512], index: 3, kind: input, shape index: {}]   ;;  %s5899_s4 = inlined_call_operand.hbm [shape: f32[1,512], index: 4, kind: input, shape index: {}]   ;;  %s5900_s5 = inlined_call_operand.hbm [shape: bf16[512,128], index: 5, kind: input, shape index: {}]   ;;  %s5901_s6 = inlined_call_operand.vmem [shape: f32[1,128], index: 6, kind: input, shape index: {}]   ;;  %s5902_s7 = inlined_call_operand.hbm [shape: f32[8,128], index: 7, kind: output, shape index: {}]  }
   0x1   :  { %13 = vsyncpa [#allocation6], 0 }
   0x2   :  { %14 = vsyncpa [#allocation9], 0 }
   0x3   :  { %15 = vsyncpa [#allocation12], 0  ;;  %s32_s26 = sshll.u32 %s5896_s1, 4  ;;  %s33_s26 = int_to_ptr.hbm [resolvable:$true] %s32_s26 }
   0x4   :  { %16 = vsyncpa [#allocation4], 0  ;;  %s5709_s27 = smov [#allocation5]   ;;  %s56_s8 = sshll.u32 %s5898_s3, 4  ;;  %s57_s8 = int_to_ptr.hbm [resolvable:$true] %s56_s8 }
   0x5   :  { %s34_s28 = sshll.u32 %s5709_s27, 4  ;;  %s5710_s9 = smov 512   ;;  %s35_s28 = int_to_ptr.vmem [resolvable:$true] %s34_s28 }
   0x6   :  { %s5711_s10 = smov 32   ;;  %s5712_s11 = smov [#allocation8]  }
   0x7   :  { %40 = dma.hbm_to_vmem [thread:$0]  %s33_s26, 16384, %s35_s28, [#allocation6], %s5710_s9, %s5710_s9, %s5711_s10  }
   0x8   :  { %s58_s12 = sshll.u32 %s5712_s11, 4  ;;  %s5713_s13 = smov 256   ;;  %s59_s12 = int_to_ptr.vmem [resolvable:$true] %s58_s12 }
   0x9   :  { %s5714_s14 = smov 16   ;;  %s22_s16 = sshll.u32 %s5895_s0, 4  ;;  %s23_s16 = int_to_ptr.hbm [resolvable:$true] %s22_s16 }
   0xa   :  { %64 = dma.hbm_to_vmem [thread:$0]  %s57_s8, 32768, %s59_s12, [#allocation9], %s5713_s13, %s5713_s13, %s5714_s14  }
   0xb   :  { %s5715_s17 = smov [#allocation2]   ;;  %s46_s20 = sshll.u32 %s5897_s2, 4  ;;  %s47_s20 = int_to_ptr.hbm [resolvable:$true] %s46_s20 }
   0xc   :  { %s24_s18 = sshll.u32 %s5715_s17, 4  ;;  %s5716_s21 = smov [#allocation7]   ;;  %s25_s18 = int_to_ptr.vmem [resolvable:$true] %s24_s18 }
   0xd   :  { %27 = dma.hbm_to_vmem [thread:$0]  %s23_s16, 128, %s25_s18, [#allocation3]  }
   0xe   :  { %s48_s22 = sshll.u32 %s5716_s21, 4  ;;  %s70_s25 = sshll.u32 %s5899_s4, 4  ;;  %s49_s22 = int_to_ptr.vmem [resolvable:$true] %s48_s22  ;;  %s71_s25 = int_to_ptr.hbm [resolvable:$true] %s70_s25 }
   0xf   :  { %51 = dma.hbm_to_vmem [thread:$0]  %s47_s20, 128, %s49_s22, [#allocation6]  }
  0x10   :  { %s80_s27 = sshll.u32 %s5900_s5, 4  ;;  %s5717_s28 = smov [#allocation10]   ;;  %s81_s27 = int_to_ptr.hbm [resolvable:$true] %s80_s27 }
  0x11   :  { %s72_s29 = sshll.u32 %s5717_s28, 4  ;;  %s5718_s2 = smov [#allocation11]   ;;  %s73_s29 = int_to_ptr.vmem [resolvable:$true] %s72_s29 }
  0x12   :  { %75 = dma.hbm_to_vmem [thread:$0]  %s71_s25, 64, %s73_s29, [#allocation9]  }
  0x13   :  { %s82_s30 = sshll.u32 %s5718_s2, 4  ;;  %s5719_s8 = smov 64   ;;  %s83_s30 = int_to_ptr.vmem [resolvable:$true] %s82_s30 }
  0x14   :  { %s5720_s9 = smov 4  }
  0x15   :  { %88 = dma.hbm_to_vmem [thread:$0]  %s81_s27, 4096, %s83_s30, [#allocation12], %s5719_s8, %s5719_s8, %s5720_s9  }
  0x16   :  { %5699 = dma.done.wait [#allocation3], 128  }
  0x17   :  { %5700 = vsyncadd [#allocation3], 4294967168 }
  0x18   :  { %5701 = dma.done.wait [#allocation6], 16512  }
  0x19   :  { %5702 = vsyncadd [#allocation6], 4294950784 }
  0x1a   :  { %5703 = dma.done.wait [#allocation9], 32832  }
  0x1b   :  { %5704 = vsyncadd [#allocation9], 4294934464 }
  0x1c   :  { %5705 = dma.done.wait [#allocation12], 4096  }
  0x1d   :  { %5706 = vsyncadd [#allocation12], 4294963200  ;;  %v3662_v0 = vld [vmem:[#allocation5 + $0x1c0] sm:$0xf]  ;;  %v5156_v5 = vld [vmem:[#allocation5 + $0x1c4] sm:$0xf] }
  0x1e   :  { %v5160_v1 = vld [vmem:[#allocation5 + $0x1dc] sm:$0xf0]  ;;  %v3664_v6 = vld [vmem:[#allocation5 + $0x1e0] sm:$0xf0]  ;;  %s5721_s10 = smov [#allocation13]   ;;  %s3423_s14 = sshll.u32 %s5902_s7, 4  ;;  %s3424_s14 = int_to_ptr.hbm [resolvable:$true] %s3423_s14 }
  0x1f   :  { %v3918_v2 = vld [vmem:[#allocation5 + $0x3c0] sm:$0xf]  ;;  %v3663_v3 = vor.u32 %v5160_v1, %v3662_v0  ;;  %v3667_v8 = vor.u32 %v5156_v5, %v3664_v6  ;;  %v5220_v9 = vld [vmem:[#allocation5 + $0x3c4] sm:$0xf]  ;;  %s3421_s11 = sshll.u32 %s5721_s10, 4  ;;  %s3422_s11 = int_to_ptr.vmem [resolvable:$true] %s3421_s11 }
  0x20   :  { %v5224_v4 = vld [vmem:[#allocation5 + $0x3dc] sm:$0xf0]  ;;  %v3920_v10 = vld [vmem:[#allocation5 + $0x3e0] sm:$0xf0] }
  0x21   :  { %v3919_v7 = vor.u32 %v5224_v4, %v3918_v2  ;;  %v3630_v11 = vld [vmem:[#allocation5 + $0x180] sm:$0xf]  ;;  %909 = vmatpush.bf16.msra.mxu0 %v3663_v3  ;;  %v3923_v12 = vor.u32 %v5220_v9, %v3920_v10  ;;  %935 = vmatpush.bf16.msra.mxu2 %v3667_v8  ;;  %v5148_v18 = vld [vmem:[#allocation5 + $0x184] sm:$0xf] }
  0x22   :  { %v5152_v13 = vld [vmem:[#allocation5 + $0x19c] sm:$0xf0]  ;;  %v3632_v19 = vld [vmem:[#allocation5 + $0x1a0] sm:$0xf0] }
  0x23   :  { %v3886_v14 = vld [vmem:[#allocation5 + $0x380] sm:$0xf]  ;;  %922 = vmatpush.bf16.msra.mxu1 %v3919_v7  ;;  %v3631_v16 = vor.u32 %v5152_v13, %v3630_v11  ;;  %v5212_v20 = vld [vmem:[#allocation5 + $0x384] sm:$0xf]  ;;  %948 = vmatpush.bf16.msra.mxu3 %v3923_v12  ;;  %v3635_v21 = vor.u32 %v5148_v18, %v3632_v19 }
  0x24   :  { %v5216_v15 = vld [vmem:[#allocation5 + $0x39c] sm:$0xf0]  ;;  %v3888_v22 = vld [vmem:[#allocation5 + $0x3a0] sm:$0xf0] }
  0x25   :  { %v3887_v17 = vor.u32 %v5216_v15, %v3886_v14  ;;  %v3598_v23 = vld [vmem:[#allocation5 + $0x140] sm:$0xf]  ;;  %v3891_v25 = vor.u32 %v5212_v20, %v3888_v22  ;;  %v5140_v28 = vld [vmem:[#allocation5 + $0x144] sm:$0xf]  ;;  %910 = vmatpush.bf16.msra.mxu0 %v3631_v16  ;;  %936 = vmatpush.bf16.msra.mxu2 %v3635_v21 }
  0x26   :  { %v5144_v24 = vld [vmem:[#allocation5 + $0x15c] sm:$0xf0]  ;;  %v3600_v30 = vld [vmem:[#allocation5 + $0x160] sm:$0xf0] }
  0x27   :  { %v3854_v26 = vld [vmem:[#allocation5 + $0x340] sm:$0xf]  ;;  %v3599_v29 = vor.u32 %v5144_v24, %v3598_v23  ;;  %v5204_v31 = vld [vmem:[#allocation5 + $0x344] sm:$0xf]  ;;  %923 = vmatpush.bf16.msra.mxu1 %v3887_v17  ;;  %v3603_v34 = vor.u32 %v5140_v28, %v3600_v30  ;;  %949 = vmatpush.bf16.msra.mxu3 %v3891_v25  ;;  %v3670_v28 = vld [vmem:[#allocation5 + $0x1c8] sm:$0xf] }
  0x28   :  { %v5208_v27 = vld [vmem:[#allocation5 + $0x35c] sm:$0xf0]  ;;  %v3856_v32 = vld [vmem:[#allocation5 + $0x360] sm:$0xf0]  ;;  %v3926_v30 = vld [vmem:[#allocation5 + $0x3c8] sm:$0xf] }
  0x29   :  { %v3855_v33 = vor.u32 %v5208_v27, %v3854_v26  ;;  %v3566_v35 = vld [vmem:[#allocation5 + $0x100] sm:$0xf]  ;;  %v3859_v38 = vor.u32 %v5204_v31, %v3856_v32  ;;  %v5132_v40 = vld [vmem:[#allocation5 + $0x104] sm:$0xf]  ;;  %911 = vmatpush.bf16.msra.mxu0 %v3599_v29  ;;  %937 = vmatpush.bf16.msra.mxu2 %v3603_v34  ;;  %v5161_v29 = vld [vmem:[#allocation5 + $0x1e4] sm:$0xf0] }
  0x2a   :  { %v5136_v36 = vld [vmem:[#allocation5 + $0x11c] sm:$0xf0]  ;;  %v3568_v41 = vld [vmem:[#allocation5 + $0x120] sm:$0xf0]  ;;  %v5225_v32 = vld [vmem:[#allocation5 + $0x3e4] sm:$0xf0] }
  0x2b   :  { %v3822_v37 = vld [vmem:[#allocation5 + $0x300] sm:$0xf]  ;;  %v5196_v42 = vld [vmem:[#allocation5 + $0x304] sm:$0xf]  ;;  %v3567_v44 = vor.u32 %v5136_v36, %v3566_v35  ;;  %924 = vmatpush.bf16.msra.mxu1 %v3855_v33  ;;  %v3571_v46 = vor.u32 %v5132_v40, %v3568_v41  ;;  %950 = vmatpush.bf16.msra.mxu3 %v3859_v38  ;;  %v5157_v33 = vld [vmem:[#allocation5 + $0x1cc] sm:$0xf]  ;;  %v3671_v40 = vor.u32 %v5161_v29, %v3670_v28 }
  0x2c   :  { %v5200_v39 = vld [vmem:[#allocation5 + $0x31c] sm:$0xf0]  ;;  %v3824_v43 = vld [vmem:[#allocation5 + $0x320] sm:$0xf0]  ;;  %v3672_v34 = vld [vmem:[#allocation5 + $0x1e8] sm:$0xf0]  ;;  %v3927_v41 = vor.u32 %v5225_v32, %v3926_v30 }
  0x2d   :  { %v3823_v45 = vor.u32 %v5200_v39, %v3822_v37  ;;  %v3534_v47 = vld [vmem:[#allocation5 + $0xc0] sm:$0xf]  ;;  %v3827_v50 = vor.u32 %v5196_v42, %v3824_v43  ;;  %v5124_v52 = vld [vmem:[#allocation5 + $0xc4] sm:$0xf]  ;;  %912 = vmatpush.bf16.msra.mxu0 %v3567_v44  ;;  %938 = vmatpush.bf16.msra.mxu2 %v3571_v46  ;;  %v5221_v37 = vld [vmem:[#allocation5 + $0x3cc] sm:$0xf]  ;;  %v3675_v42 = vor.u32 %v5157_v33, %v3672_v34 }
  0x2e   :  { %v5128_v48 = vld [vmem:[#allocation5 + $0xdc] sm:$0xf0]  ;;  %v3536_v53 = vld [vmem:[#allocation5 + $0xe0] sm:$0xf0]  ;;  %v3928_v38 = vld [vmem:[#allocation5 + $0x3e8] sm:$0xf0] }
  0x2f   :  { %v3790_v49 = vld [vmem:[#allocation5 + $0x2c0] sm:$0xf]  ;;  %v5188_v54 = vld [vmem:[#allocation5 + $0x2c4] sm:$0xf]  ;;  %v3535_v56 = vor.u32 %v5128_v48, %v3534_v47  ;;  %925 = vmatpush.bf16.msra.mxu1 %v3823_v45  ;;  %v3539_v58 = vor.u32 %v5124_v52, %v3536_v53  ;;  %951 = vmatpush.bf16.msra.mxu3 %v3827_v50  ;;  %v3638_v43 = vld [vmem:[#allocation5 + $0x188] sm:$0xf]  ;;  %v3931_v46 = vor.u32 %v5221_v37, %v3928_v38 }
  0x30   :  { %v5192_v51 = vld [vmem:[#allocation5 + $0x2dc] sm:$0xf0]  ;;  %v3792_v55 = vld [vmem:[#allocation5 + $0x2e0] sm:$0xf0]  ;;  %v5153_v44 = vld [vmem:[#allocation5 + $0x1a4] sm:$0xf0] }
  0x31   :  { %v3791_v57 = vor.u32 %v5192_v51, %v3790_v49  ;;  %v3502_v59 = vld [vmem:[#allocation5 + $0x80] sm:$0xf]  ;;  %v3795_v62 = vor.u32 %v5188_v54, %v3792_v55  ;;  %v5116_v0 = vld [vmem:[#allocation5 + $0x84] sm:$0xf]  ;;  %913 = vmatpush.bf16.msra.mxu0 %v3535_v56  ;;  %939 = vmatpush.bf16.msra.mxu2 %v3539_v58  ;;  %v3894_v45 = vld [vmem:[#allocation5 + $0x388] sm:$0xf]  ;;  %v3639_v53 = vor.u32 %v5153_v44, %v3638_v43 }
  0x32   :  { %v5120_v60 = vld [vmem:[#allocation5 + $0x9c] sm:$0xf0]  ;;  %v3504_v1 = vld [vmem:[#allocation5 + $0xa0] sm:$0xf0]  ;;  %v5217_v47 = vld [vmem:[#allocation5 + $0x3a4] sm:$0xf0] }
  0x33   :  { %v3758_v61 = vld [vmem:[#allocation5 + $0x280] sm:$0xf]  ;;  %v5180_v2 = vld [vmem:[#allocation5 + $0x284] sm:$0xf]  ;;  %v3503_v4 = vor.u32 %v5120_v60, %v3502_v59  ;;  %926 = vmatpush.bf16.msra.mxu1 %v3791_v57  ;;  %v3507_v6 = vor.u32 %v5116_v0, %v3504_v1  ;;  %952 = vmatpush.bf16.msra.mxu3 %v3795_v62  ;;  %v5149_v48 = vld [vmem:[#allocation5 + $0x18c] sm:$0xf]  ;;  %v3895_v56 = vor.u32 %v5217_v47, %v3894_v45 }
  0x34   :  { %v5184_v63 = vld [vmem:[#allocation5 + $0x29c] sm:$0xf0]  ;;  %v3760_v3 = vld [vmem:[#allocation5 + $0x2a0] sm:$0xf0]  ;;  %v3640_v49 = vld [vmem:[#allocation5 + $0x1a8] sm:$0xf0] }
  0x35   :  { %v3759_v5 = vor.u32 %v5184_v63, %v3758_v61  ;;  %v3470_v7 = vld [vmem:[#allocation5 + $0x40] sm:$0xf]  ;;  %v3763_v10 = vor.u32 %v5180_v2, %v3760_v3  ;;  %v5108_v12 = vld [vmem:[#allocation5 + $0x44] sm:$0xf]  ;;  %914 = vmatpush.bf16.msra.mxu0 %v3503_v4  ;;  %940 = vmatpush.bf16.msra.mxu2 %v3507_v6  ;;  %v5213_v50 = vld [vmem:[#allocation5 + $0x38c] sm:$0xf]  ;;  %v3643_v57 = vor.u32 %v5149_v48, %v3640_v49 }
  0x36   :  { %v5112_v8 = vld [vmem:[#allocation5 + $0x5c] sm:$0xf0]  ;;  %v3472_v13 = vld [vmem:[#allocation5 + $0x60] sm:$0xf0]  ;;  %v3896_v51 = vld [vmem:[#allocation5 + $0x3a8] sm:$0xf0] }
  0x37   :  { %v3726_v9 = vld [vmem:[#allocation5 + $0x240] sm:$0xf]  ;;  %v5172_v14 = vld [vmem:[#allocation5 + $0x244] sm:$0xf]  ;;  %v3471_v16 = vor.u32 %v5112_v8, %v3470_v7  ;;  %927 = vmatpush.bf16.msra.mxu1 %v3759_v5  ;;  %v3475_v20 = vor.u32 %v5108_v12, %v3472_v13  ;;  %953 = vmatpush.bf16.msra.mxu3 %v3763_v10  ;;  %v115_v52 = vld [vmem:[#allocation2] sm:$0xff]  ;;  %v3899_v61 = vor.u32 %v5213_v50, %v3896_v51 }
  0x38   :  { %v5176_v11 = vld [vmem:[#allocation5 + $0x25c] sm:$0xf0]  ;;  %v3728_v15 = vld [vmem:[#allocation5 + $0x260] sm:$0xf0]  ;;  %v263_v54 = vunpack.c.l.b16 %v115_v52  ;;  %v264_v55 = vunpack.c.h.b16 %v115_v52  ;;  %v3606_v58 = vld [vmem:[#allocation5 + $0x148] sm:$0xf] }
  0x39   :  { %v3438_v17 = vld [vmem:[#allocation5] sm:$0xf]  ;;  %v3727_v19 = vor.u32 %v5176_v11, %v3726_v9  ;;  %v5100_v23 = vld [vmem:[#allocation5 + $0x4] sm:$0xf]  ;;  %v3731_v24 = vor.u32 %v5172_v14, %v3728_v15  ;;  %915 = vmatpush.bf16.msra.mxu0 %v3471_v16  ;;  %941 = vmatpush.bf16.msra.mxu2 %v3475_v20  ;;  %v5145_v59 = vld [vmem:[#allocation5 + $0x164] sm:$0xf0] }
  0x3a   :  { %v5104_v18 = vld [vmem:[#allocation5 + $0x1c] sm:$0xf0]  ;;  %v3440_v25 = vld [vmem:[#allocation5 + $0x20] sm:$0xf0]  ;;  %v3862_v60 = vld [vmem:[#allocation5 + $0x348] sm:$0xf]  ;;  %v5780_v1 = vpack.c.b16 %v263_v54, %v263_v54  ;;  %v5782_v4 = vpack.c.b16 %v264_v55, %v264_v55  ;;  %v3607_v5 = vor.u32 %v5145_v59, %v3606_v58 }
  0x3b   :  { %v3694_v21 = vld [vmem:[#allocation5 + $0x200] sm:$0xf]  ;;  %v5164_v26 = vld [vmem:[#allocation5 + $0x204] sm:$0xf]  ;;  %v3439_v31 = vor.u32 %v5104_v18, %v3438_v17  ;;  %928 = vmatpush.bf16.msra.mxu1 %v3727_v19  ;;  %v3443_v36 = vor.u32 %v5100_v23, %v3440_v25  ;;  %954 = vmatpush.bf16.msra.mxu3 %v3731_v24  ;;  %v5209_v62 = vld [vmem:[#allocation5 + $0x364] sm:$0xf0] }
  0x3c   :  { %v5168_v22 = vld [vmem:[#allocation5 + $0x21c] sm:$0xf0]  ;;  %v3696_v27 = vld [vmem:[#allocation5 + $0x220] sm:$0xf0]  ;;  %v5141_v63 = vld [vmem:[#allocation5 + $0x14c] sm:$0xf]  ;;  %v3863_v6 = vor.u32 %v5209_v62, %v3862_v60 }
  0x3d   :  { %v3695_v35 = vor.u32 %v5168_v22, %v3694_v21  ;;  %v3699_v39 = vor.u32 %v5164_v26, %v3696_v27  ;;  %916 = vmatpush.bf16.msra.mxu0 %v3439_v31  ;;  %942 = vmatpush.bf16.msra.mxu2 %v3443_v36  ;;  %v3608_v0 = vld [vmem:[#allocation5 + $0x168] sm:$0xf0]  ;;  %v3574_v8 = vld [vmem:[#allocation5 + $0x108] sm:$0xf] }
  0x3e   :  { %v5205_v2 = vld [vmem:[#allocation5 + $0x34c] sm:$0xf]  ;;  %v3611_v7 = vor.u32 %v5141_v63, %v3608_v0  ;;  %v5137_v9 = vld [vmem:[#allocation5 + $0x124] sm:$0xf0] }
  0x3f   :  { %929 = vmatpush.bf16.msra.mxu1 %v3695_v35  ;;  %955 = vmatpush.bf16.msra.mxu3 %v3699_v39  ;;  %v3864_v3 = vld [vmem:[#allocation5 + $0x368] sm:$0xf0]  ;;  %v3830_v10 = vld [vmem:[#allocation5 + $0x308] sm:$0xf]  ;;  %v3575_v17 = vor.u32 %v5137_v9, %v3574_v8  ;;  %v5158_v8 = vld [vmem:[#allocation5 + $0x1d4] sm:$0xf] }
  0x40   :  { %943 = vmatmul.bf16.vlgmr.msra.gmra.mxu2 %v5780_v1  ;;  %v3867_v11 = vor.u32 %v5205_v2, %v3864_v3  ;;  %v5201_v12 = vld [vmem:[#allocation5 + $0x324] sm:$0xf0]  ;;  %v5133_v13 = vld [vmem:[#allocation5 + $0x10c] sm:$0xf]  ;;  %917 = vmatmul.bf16.vlgmr.msra.gmra.mxu0 %v5780_v1  ;;  %v3678_v2 = vld [vmem:[#allocation5 + $0x1d0] sm:$0xf] }
  0x41   :  { %961 = vmatpush.bf16.msrb.mxu0 %v3671_v40  ;;  %987 = vmatpush.bf16.msrb.mxu2 %v3675_v42  ;;  %v3576_v14 = vld [vmem:[#allocation5 + $0x128] sm:$0xf0]  ;;  %v3831_v18 = vor.u32 %v5201_v12, %v3830_v10  ;;  %v3542_v20 = vld [vmem:[#allocation5 + $0xc8] sm:$0xf]  ;;  %v5162_v3 = vld [vmem:[#allocation5 + $0x1ec] sm:$0xf0] }
  0x42   :  { %v5197_v15 = vld [vmem:[#allocation5 + $0x30c] sm:$0xf]  ;;  %930 = vmatmul.bf16.vlgmr.msra.gmra.mxu1 %v5782_v4  ;;  %956 = vmatmul.bf16.vlgmr.msra.gmra.mxu3 %v5782_v4  ;;  %v3579_v19 = vor.u32 %v5133_v13, %v3576_v14  ;;  %v5129_v21 = vld [vmem:[#allocation5 + $0xe4] sm:$0xf0]  ;;  %v3680_v9 = vld [vmem:[#allocation5 + $0x1f0] sm:$0xf0] }
  0x43   :  { %974 = vmatpush.bf16.msrb.mxu1 %v3927_v41  ;;  %1000 = vmatpush.bf16.msrb.mxu3 %v3931_v46  ;;  %v3832_v16 = vld [vmem:[#allocation5 + $0x328] sm:$0xf0]  ;;  %v3798_v22 = vld [vmem:[#allocation5 + $0x2c8] sm:$0xf]  ;;  %v3543_v29 = vor.u32 %v5129_v21, %v3542_v20  ;;  %v5222_v12 = vld [vmem:[#allocation5 + $0x3d4] sm:$0xf] }
  0x44   :  { %v3835_v23 = vor.u32 %v5197_v15, %v3832_v16  ;;  %v5193_v24 = vld [vmem:[#allocation5 + $0x2e4] sm:$0xf0]  ;;  %v5125_v25 = vld [vmem:[#allocation5 + $0xcc] sm:$0xf]  ;;  %v3936_v13 = vld [vmem:[#allocation5 + $0x3f0] sm:$0xf0]  ;;  %v3679_v15 = vor.u32 %v5162_v3, %v3678_v2 }
  0x45   :  { %962 = vmatpush.bf16.msrb.mxu0 %v3639_v53  ;;  %988 = vmatpush.bf16.msrb.mxu2 %v3643_v57  ;;  %v3544_v26 = vld [vmem:[#allocation5 + $0xe8] sm:$0xf0]  ;;  %v3799_v30 = vor.u32 %v5193_v24, %v3798_v22  ;;  %v3510_v32 = vld [vmem:[#allocation5 + $0x88] sm:$0xf]  ;;  %v3902_v20 = vld [vmem:[#allocation5 + $0x390] sm:$0xf]  ;;  %v3939_v21 = vor.u32 %v5222_v12, %v3936_v13 }
  0x46   :  { %v5189_v27 = vld [vmem:[#allocation5 + $0x2cc] sm:$0xf]  ;;  %v3547_v31 = vor.u32 %v5125_v25, %v3544_v26  ;;  %v5121_v33 = vld [vmem:[#allocation5 + $0xa4] sm:$0xf0]  ;;  %v5218_v22 = vld [vmem:[#allocation5 + $0x3ac] sm:$0xf0] }
  0x47   :  { %975 = vmatpush.bf16.msrb.mxu1 %v3895_v56  ;;  %1001 = vmatpush.bf16.msrb.mxu3 %v3899_v61  ;;  %v3800_v28 = vld [vmem:[#allocation5 + $0x2e8] sm:$0xf0]  ;;  %v3766_v34 = vld [vmem:[#allocation5 + $0x288] sm:$0xf]  ;;  %v3511_v41 = vor.u32 %v5121_v33, %v3510_v32  ;;  %v3648_v24 = vld [vmem:[#allocation5 + $0x1b0] sm:$0xf0] }
  0x48   :  { %v3803_v35 = vor.u32 %v5189_v27, %v3800_v28  ;;  %v5185_v36 = vld [vmem:[#allocation5 + $0x2a4] sm:$0xf0]  ;;  %v5117_v37 = vld [vmem:[#allocation5 + $0x8c] sm:$0xf]  ;;  %v5214_v25 = vld [vmem:[#allocation5 + $0x394] sm:$0xf]  ;;  %v3903_v28 = vor.u32 %v5218_v22, %v3902_v20 }
  0x49   :  { %963 = vmatpush.bf16.msrb.mxu0 %v3607_v5  ;;  %989 = vmatpush.bf16.msrb.mxu2 %v3611_v7  ;;  %v3512_v38 = vld [vmem:[#allocation5 + $0xa8] sm:$0xf0]  ;;  %v3767_v42 = vor.u32 %v5185_v36, %v3766_v34  ;;  %v3478_v44 = vld [vmem:[#allocation5 + $0x48] sm:$0xf]  ;;  %v3934_v5 = vld [vmem:[#allocation5 + $0x3d0] sm:$0xf] }
  0x4a   :  { %v5181_v39 = vld [vmem:[#allocation5 + $0x28c] sm:$0xf]  ;;  %v3515_v43 = vor.u32 %v5117_v37, %v3512_v38  ;;  %v5113_v45 = vld [vmem:[#allocation5 + $0x64] sm:$0xf0]  ;;  %v5226_v7 = vld [vmem:[#allocation5 + $0x3ec] sm:$0xf0] }
  0x4b   :  { %976 = vmatpush.bf16.msrb.mxu1 %v3863_v6  ;;  %1002 = vmatpush.bf16.msrb.mxu3 %v3867_v11  ;;  %v3768_v40 = vld [vmem:[#allocation5 + $0x2a8] sm:$0xf0]  ;;  %v3734_v46 = vld [vmem:[#allocation5 + $0x248] sm:$0xf]  ;;  %v3479_v53 = vor.u32 %v5113_v45, %v3478_v44  ;;  %v3935_v16 = vor.u32 %v5226_v7, %v3934_v5  ;;  %v3904_v26 = vld [vmem:[#allocation5 + $0x3b0] sm:$0xf0] }
  0x4c   :  { %v3771_v47 = vor.u32 %v5181_v39, %v3768_v40  ;;  %v5177_v48 = vld [vmem:[#allocation5 + $0x264] sm:$0xf0]  ;;  %v5109_v49 = vld [vmem:[#allocation5 + $0x4c] sm:$0xf]  ;;  %v3870_v32 = vld [vmem:[#allocation5 + $0x350] sm:$0xf]  ;;  %v3907_v33 = vor.u32 %v5214_v25, %v3904_v26 }
  0x4d   :  { %964 = vmatpush.bf16.msrb.mxu0 %v3575_v17  ;;  %990 = vmatpush.bf16.msrb.mxu2 %v3579_v19  ;;  %v3480_v50 = vld [vmem:[#allocation5 + $0x68] sm:$0xf0]  ;;  %v3446_v54 = vld [vmem:[#allocation5 + $0x8] sm:$0xf]  ;;  %v3735_v56 = vor.u32 %v5177_v48, %v3734_v46  ;;  %v3683_v17 = vor.u32 %v5158_v8, %v3680_v9  ;;  %v5154_v19 = vld [vmem:[#allocation5 + $0x1ac] sm:$0xf0] }
  0x4e   :  { %v5173_v51 = vld [vmem:[#allocation5 + $0x24c] sm:$0xf]  ;;  %v5105_v55 = vld [vmem:[#allocation5 + $0x24] sm:$0xf0]  ;;  %v3483_v57 = vor.u32 %v5109_v49, %v3480_v50  ;;  %v5210_v34 = vld [vmem:[#allocation5 + $0x36c] sm:$0xf0] }
  0x4f   :  { %977 = vmatpush.bf16.msrb.mxu1 %v3831_v18  ;;  %1003 = vmatpush.bf16.msrb.mxu3 %v3835_v23  ;;  %v3736_v52 = vld [vmem:[#allocation5 + $0x268] sm:$0xf0]  ;;  %v3702_v58 = vld [vmem:[#allocation5 + $0x208] sm:$0xf]  ;;  %v3447_v6 = vor.u32 %v5105_v55, %v3446_v54  ;;  %v3646_v18 = vld [vmem:[#allocation5 + $0x190] sm:$0xf]  ;;  %v3871_v40 = vor.u32 %v5210_v34, %v3870_v32 }
  0x50   :  { %v5169_v59 = vld [vmem:[#allocation5 + $0x224] sm:$0xf0]  ;;  %v5101_v60 = vld [vmem:[#allocation5 + $0xc] sm:$0xf]  ;;  %v3739_v61 = vor.u32 %v5173_v51, %v3736_v52  ;;  %v5150_v23 = vld [vmem:[#allocation5 + $0x194] sm:$0xf]  ;;  %v3647_v27 = vor.u32 %v5154_v19, %v3646_v18 }
  0x51   :  { %965 = vmatpush.bf16.msrb.mxu0 %v3543_v29  ;;  %991 = vmatpush.bf16.msrb.mxu2 %v3547_v31  ;;  %v3448_v62 = vld [vmem:[#allocation5 + $0x28] sm:$0xf0]  ;;  %v3703_v10 = vor.u32 %v5169_v59, %v3702_v58  ;;  %v3651_v29 = vor.u32 %v5150_v23, %v3648_v24  ;;  %v5146_v31 = vld [vmem:[#allocation5 + $0x16c] sm:$0xf0]  ;;  %v3616_v36 = vld [vmem:[#allocation5 + $0x170] sm:$0xf0] }
  0x52   :  { %v5165_v63 = vld [vmem:[#allocation5 + $0x20c] sm:$0xf]  ;;  %v3451_v11 = vor.u32 %v5101_v60, %v3448_v62  ;;  %v5206_v37 = vld [vmem:[#allocation5 + $0x354] sm:$0xf]  ;;  %v3838_v44 = vld [vmem:[#allocation5 + $0x310] sm:$0xf] }
  0x53   :  { %978 = vmatpush.bf16.msrb.mxu1 %v3799_v30  ;;  %1004 = vmatpush.bf16.msrb.mxu3 %v3803_v35  ;;  %v3704_v0 = vld [vmem:[#allocation5 + $0x228] sm:$0xf0]  ;;  %v3614_v30 = vld [vmem:[#allocation5 + $0x150] sm:$0xf]  ;;  %v5142_v35 = vld [vmem:[#allocation5 + $0x154] sm:$0xf] }
  0x54   :  { %v3707_v14 = vor.u32 %v5165_v63, %v3704_v0  ;;  %v3872_v38 = vld [vmem:[#allocation5 + $0x370] sm:$0xf0]  ;;  %v3615_v39 = vor.u32 %v5146_v31, %v3614_v30  ;;  %v5202_v46 = vld [vmem:[#allocation5 + $0x32c] sm:$0xf0] }
  0x55   :  { %966 = vmatpush.bf16.msrb.mxu0 %v3511_v41  ;;  %992 = vmatpush.bf16.msrb.mxu2 %v3515_v43  ;;  %v3619_v41 = vor.u32 %v5142_v35, %v3616_v36  ;;  %v5138_v43 = vld [vmem:[#allocation5 + $0x12c] sm:$0xf0]  ;;  %v3875_v45 = vor.u32 %v5206_v37, %v3872_v38  ;;  %v3584_v48 = vld [vmem:[#allocation5 + $0x130] sm:$0xf0]  ;;  %v3839_v52 = vor.u32 %v5202_v46, %v3838_v44  ;;  %v3686_v37 = vld [vmem:[#allocation5 + $0x1d8] sm:$0xf] }
  0x56   :  { %v5198_v49 = vld [vmem:[#allocation5 + $0x314] sm:$0xf]  ;;  %v3550_v54 = vld [vmem:[#allocation5 + $0xd0] sm:$0xf]  ;;  %v5163_v38 = vld [vmem:[#allocation5 + $0x1f4] sm:$0xf0] }
  0x57   :  { %979 = vmatpush.bf16.msrb.mxu1 %v3767_v42  ;;  %1005 = vmatpush.bf16.msrb.mxu3 %v3771_v47  ;;  %v3582_v42 = vld [vmem:[#allocation5 + $0x110] sm:$0xf]  ;;  %v5134_v47 = vld [vmem:[#allocation5 + $0x114] sm:$0xf]  ;;  %v5223_v46 = vld [vmem:[#allocation5 + $0x3dc] sm:$0xf] }
  0x58   :  { %v3840_v50 = vld [vmem:[#allocation5 + $0x330] sm:$0xf0]  ;;  %v3583_v51 = vor.u32 %v5138_v43, %v3582_v42  ;;  %v5130_v55 = vld [vmem:[#allocation5 + $0xec] sm:$0xf0]  ;;  %v5159_v42 = vld [vmem:[#allocation5 + $0x1dc] sm:$0xf] }
  0x59   :  { %967 = vmatpush.bf16.msrb.mxu0 %v3479_v53  ;;  %993 = vmatpush.bf16.msrb.mxu2 %v3483_v57  ;;  %v3587_v53 = vor.u32 %v5134_v47, %v3584_v48  ;;  %v3843_v57 = vor.u32 %v5198_v49, %v3840_v50  ;;  %v5194_v58 = vld [vmem:[#allocation5 + $0x2ec] sm:$0xf0]  ;;  %v5126_v59 = vld [vmem:[#allocation5 + $0xd4] sm:$0xf]  ;;  %v3551_v63 = vor.u32 %v5130_v55, %v3550_v54  ;;  %v3688_v43 = vld [vmem:[#allocation5 + $0x1f8] sm:$0xf0] }
  0x5a   :  { %v3552_v60 = vld [vmem:[#allocation5 + $0xf0] sm:$0xf0]  ;;  %v3518_v3 = vld [vmem:[#allocation5 + $0x90] sm:$0xf]  ;;  %v3944_v47 = vld [vmem:[#allocation5 + $0x3f8] sm:$0xf0]  ;;  %v3687_v49 = vor.u32 %v5163_v38, %v3686_v37 }
  0x5b   :  { %980 = vmatpush.bf16.msrb.mxu1 %v3735_v56  ;;  %1006 = vmatpush.bf16.msrb.mxu3 %v3739_v61  ;;  %v3806_v56 = vld [vmem:[#allocation5 + $0x2d0] sm:$0xf]  ;;  %v5190_v61 = vld [vmem:[#allocation5 + $0x2d4] sm:$0xf]  ;;  %v3555_v2 = vor.u32 %v5126_v59, %v3552_v60  ;;  %v3910_v54 = vld [vmem:[#allocation5 + $0x398] sm:$0xf]  ;;  %v3947_v55 = vor.u32 %v5223_v46, %v3944_v47 }
  0x5c   :  { %v3808_v62 = vld [vmem:[#allocation5 + $0x2f0] sm:$0xf0]  ;;  %v3807_v0 = vor.u32 %v5194_v58, %v3806_v56  ;;  %v5122_v5 = vld [vmem:[#allocation5 + $0xac] sm:$0xf0]  ;;  %v5219_v56 = vld [vmem:[#allocation5 + $0x3b4] sm:$0xf0] }
  0x5d   :  { %968 = vmatpush.bf16.msrb.mxu0 %v3447_v6  ;;  %994 = vmatpush.bf16.msrb.mxu2 %v3451_v11  ;;  %v3774_v6 = vld [vmem:[#allocation5 + $0x290] sm:$0xf]  ;;  %v3811_v7 = vor.u32 %v5190_v61, %v3808_v62  ;;  %v5118_v9 = vld [vmem:[#allocation5 + $0x94] sm:$0xf]  ;;  %v3519_v13 = vor.u32 %v5122_v5, %v3518_v3  ;;  %v3656_v58 = vld [vmem:[#allocation5 + $0x1b8] sm:$0xf0]  ;;  %v3911_v62 = vor.u32 %v5219_v56, %v3910_v54 }
  0x5e   :  { %v5186_v8 = vld [vmem:[#allocation5 + $0x2ac] sm:$0xf0]  ;;  %v5182_v11 = vld [vmem:[#allocation5 + $0x294] sm:$0xf]  ;;  %v5215_v59 = vld [vmem:[#allocation5 + $0x39c] sm:$0xf] }
  0x5f   :  { %981 = vmatpush.bf16.msrb.mxu1 %v3703_v10  ;;  %1007 = vmatpush.bf16.msrb.mxu3 %v3707_v14  ;;  %v3520_v10 = vld [vmem:[#allocation5 + $0xb0] sm:$0xf0]  ;;  %v3775_v14 = vor.u32 %v5186_v8, %v3774_v6  ;;  %v3742_v18 = vld [vmem:[#allocation5 + $0x250] sm:$0xf]  ;;  %v3912_v60 = vld [vmem:[#allocation5 + $0x3b8] sm:$0xf0] }
  0x60   :  { %969 = vmatmul.bf16.vlgmr.msrb.gmra.mxu0 %v5780_v1  ;;  %995 = vmatmul.bf16.vlgmr.msrb.gmra.mxu2 %v5780_v1  ;;  %v3776_v12 = vld [vmem:[#allocation5 + $0x2b0] sm:$0xf0]  ;;  %v5178_v20 = vld [vmem:[#allocation5 + $0x26c] sm:$0xf0]  ;;  %v3878_v3 = vld [vmem:[#allocation5 + $0x358] sm:$0xf]  ;;  %v3915_v5 = vor.u32 %v5215_v59, %v3912_v60 }
  0x61   :  { %1013 = vmatpush.bf16.msra.mxu0 %v3679_v15  ;;  %1039 = vmatpush.bf16.msra.mxu2 %v3683_v17  ;;  %v3523_v15 = vor.u32 %v5118_v9, %v3520_v10  ;;  %v5114_v17 = vld [vmem:[#allocation5 + $0x6c] sm:$0xf0]  ;;  %v3779_v19 = vor.u32 %v5182_v11, %v3776_v12  ;;  %v3488_v22 = vld [vmem:[#allocation5 + $0x70] sm:$0xf0]  ;;  %v5211_v6 = vld [vmem:[#allocation5 + $0x374] sm:$0xf0] }
  0x62   :  { %982 = vmatmul.bf16.vlgmr.msrb.gmra.mxu1 %v5782_v4  ;;  %1008 = vmatmul.bf16.vlgmr.msrb.gmra.mxu3 %v5782_v4  ;;  %v5174_v23 = vld [vmem:[#allocation5 + $0x254] sm:$0xf]  ;;  %v3454_v26 = vld [vmem:[#allocation5 + $0x10] sm:$0xf]  ;;  %v3624_v8 = vld [vmem:[#allocation5 + $0x178] sm:$0xf0]  ;;  %v3879_v12 = vor.u32 %v5211_v6, %v3878_v3 }
  0x63   :  { %1026 = vmatpush.bf16.msra.mxu1 %v3935_v16  ;;  %1052 = vmatpush.bf16.msra.mxu3 %v3939_v21  ;;  %v3486_v16 = vld [vmem:[#allocation5 + $0x50] sm:$0xf]  ;;  %v5110_v21 = vld [vmem:[#allocation5 + $0x54] sm:$0xf]  ;;  %v5207_v9 = vld [vmem:[#allocation5 + $0x35c] sm:$0xf] }
  0x64   :  { %v3744_v24 = vld [vmem:[#allocation5 + $0x270] sm:$0xf0]  ;;  %v3487_v25 = vor.u32 %v5114_v17, %v3486_v16  ;;  %v3710_v30 = vld [vmem:[#allocation5 + $0x210] sm:$0xf]  ;;  %v3880_v10 = vld [vmem:[#allocation5 + $0x378] sm:$0xf0] }
  0x65   :  { %1014 = vmatpush.bf16.msra.mxu0 %v3647_v27  ;;  %1040 = vmatpush.bf16.msra.mxu2 %v3651_v29  ;;  %v5106_v27 = vld [vmem:[#allocation5 + $0x2c] sm:$0xf0]  ;;  %v3491_v29 = vor.u32 %v5110_v21, %v3488_v22  ;;  %v5102_v32 = vld [vmem:[#allocation5 + $0x14] sm:$0xf]  ;;  %v3846_v16 = vld [vmem:[#allocation5 + $0x318] sm:$0xf]  ;;  %v3883_v17 = vor.u32 %v5207_v9, %v3880_v10 }
  0x66   :  { %v5170_v31 = vld [vmem:[#allocation5 + $0x22c] sm:$0xf0]  ;;  %v3456_v34 = vld [vmem:[#allocation5 + $0x30] sm:$0xf0]  ;;  %v5199_v21 = vld [vmem:[#allocation5 + $0x31c] sm:$0xf] }
  0x67   :  { %1027 = vmatpush.bf16.msra.mxu1 %v3903_v28  ;;  %1053 = vmatpush.bf16.msra.mxu3 %v3907_v33  ;;  %v3743_v28 = vor.u32 %v5178_v20, %v3742_v18  ;;  %v3747_v33 = vor.u32 %v5174_v23, %v3744_v24  ;;  %v5166_v35 = vld [vmem:[#allocation5 + $0x214] sm:$0xf]  ;;  %v3711_v44 = vor.u32 %v5170_v31, %v3710_v30  ;;  %v5203_v18 = vld [vmem:[#allocation5 + $0x334] sm:$0xf0]  ;;  %v3592_v20 = vld [vmem:[#allocation5 + $0x138] sm:$0xf0] }
  0x68   :  { %v3712_v36 = vld [vmem:[#allocation5 + $0x230] sm:$0xf0]  ;;  %v3848_v22 = vld [vmem:[#allocation5 + $0x338] sm:$0xf0]  ;;  %v3847_v24 = vor.u32 %v5203_v18, %v3846_v16  ;;  %v5195_v30 = vld [vmem:[#allocation5 + $0x2f4] sm:$0xf0] }
  0x69   :  { %1015 = vmatpush.bf16.msra.mxu0 %v3615_v39  ;;  %1041 = vmatpush.bf16.msra.mxu2 %v3619_v41  ;;  %v3942_v39 = vld [vmem:[#allocation5 + $0x3d8] sm:$0xf]  ;;  %v3715_v48 = vor.u32 %v5166_v35, %v3712_v36  ;;  %v5127_v31 = vld [vmem:[#allocation5 + $0xdc] sm:$0xf]  ;;  %v4062_v9 = vld [vmem:[#allocation8 + $0xe0] sm:$0xf] }
  0x6a   :  { %v5227_v41 = vld [vmem:[#allocation5 + $0x3f4] sm:$0xf0]  ;;  %v3784_v46 = vld [vmem:[#allocation5 + $0x2b8] sm:$0xf0]  ;;  %v4318_v18 = vld [vmem:[#allocation8 + $0x2e0] sm:$0xf] }
  0x6b   :  { %1028 = vmatpush.bf16.msra.mxu1 %v3871_v40  ;;  %1054 = vmatpush.bf16.msra.mxu3 %v3875_v45  ;;  %v3455_v40 = vor.u32 %v5106_v27, %v3454_v26  ;;  %v3459_v45 = vor.u32 %v5102_v32, %v3456_v34  ;;  %v3943_v50 = vor.u32 %v5227_v41, %v3942_v39  ;;  %v3558_v26 = vld [vmem:[#allocation5 + $0xd8] sm:$0xf]  ;;  %v3560_v32 = vld [vmem:[#allocation5 + $0xf8] sm:$0xf0] }
  0x6c   :  { %v5131_v27 = vld [vmem:[#allocation5 + $0xf4] sm:$0xf0]  ;;  %v3816_v34 = vld [vmem:[#allocation5 + $0x2f8] sm:$0xf0]  ;;  %v3563_v37 = vor.u32 %v5127_v31, %v3560_v32  ;;  %v4158_v32 = vld [vmem:[#allocation8 + $0x1a0] sm:$0xf] }
  0x6d   :  { %1016 = vmatpush.bf16.msra.mxu0 %v3583_v51  ;;  %1042 = vmatpush.bf16.msra.mxu2 %v3587_v53  ;;  %v3691_v51 = vor.u32 %v5159_v42, %v3688_v43  ;;  %v5155_v53 = vld [vmem:[#allocation5 + $0x1b4] sm:$0xf0]  ;;  %v3559_v35 = vor.u32 %v5131_v27, %v3558_v26  ;;  %v5119_v43 = vld [vmem:[#allocation5 + $0x9c] sm:$0xf]  ;;  %v4302_v27 = vld [vmem:[#allocation8 + $0x2c0] sm:$0xf] }
  0x6e   :  { %v3526_v38 = vld [vmem:[#allocation5 + $0x98] sm:$0xf]  ;;  %v3496_v56 = vld [vmem:[#allocation5 + $0x78] sm:$0xf0] }
  0x6f   :  { %1029 = vmatpush.bf16.msra.mxu1 %v3839_v52  ;;  %1055 = vmatpush.bf16.msra.mxu3 %v3843_v57  ;;  %v3654_v52 = vld [vmem:[#allocation5 + $0x198] sm:$0xf]  ;;  %v5151_v57 = vld [vmem:[#allocation5 + $0x19c] sm:$0xf] }
  0x70   :  { %v3655_v61 = vor.u32 %v5155_v53, %v3654_v52  ;;  %v5123_v39 = vld [vmem:[#allocation5 + $0xb4] sm:$0xf0]  ;;  %v3464_v6 = vld [vmem:[#allocation5 + $0x38] sm:$0xf0] }
  0x71   :  { %1017 = vmatpush.bf16.msra.mxu0 %v3551_v63  ;;  %1043 = vmatpush.bf16.msra.mxu2 %v3555_v2  ;;  %v3659_v63 = vor.u32 %v5151_v57, %v3656_v58  ;;  %v5147_v2 = vld [vmem:[#allocation5 + $0x174] sm:$0xf0]  ;;  %v3527_v47 = vor.u32 %v5123_v39, %v3526_v38  ;;  %v5175_v57 = vld [vmem:[#allocation5 + $0x25c] sm:$0xf]  ;;  %v4142_v39 = vld [vmem:[#allocation8 + $0x180] sm:$0xf] }
  0x72   :  { %v5187_v42 = vld [vmem:[#allocation5 + $0x2b4] sm:$0xf0]  ;;  %v3752_v58 = vld [vmem:[#allocation5 + $0x278] sm:$0xf0] }
  0x73   :  { %1030 = vmatpush.bf16.msra.mxu1 %v3807_v0  ;;  %1056 = vmatpush.bf16.msra.mxu3 %v3811_v7  ;;  %v3622_v0 = vld [vmem:[#allocation5 + $0x158] sm:$0xf]  ;;  %v5143_v7 = vld [vmem:[#allocation5 + $0x15c] sm:$0xf]  ;;  %v3755_v3 = vor.u32 %v5175_v57, %v3752_v58 }
  0x74   :  { %v3623_v11 = vor.u32 %v5147_v2, %v3622_v0  ;;  %v3750_v52 = vld [vmem:[#allocation5 + $0x258] sm:$0xf] }
  0x75   :  { %1018 = vmatpush.bf16.msra.mxu0 %v3519_v13  ;;  %1044 = vmatpush.bf16.msra.mxu2 %v3523_v15  ;;  %v3627_v13 = vor.u32 %v5143_v7, %v3624_v8  ;;  %v5139_v15 = vld [vmem:[#allocation5 + $0x134] sm:$0xf0]  ;;  %v5167_v7 = vld [vmem:[#allocation5 + $0x21c] sm:$0xf] }
  0x76   :  { %v5179_v54 = vld [vmem:[#allocation5 + $0x274] sm:$0xf0]  ;;  %v3720_v8 = vld [vmem:[#allocation5 + $0x238] sm:$0xf0] }
  0x77   :  { %1031 = vmatpush.bf16.msra.mxu1 %v3775_v14  ;;  %1057 = vmatpush.bf16.msra.mxu3 %v3779_v19  ;;  %v3590_v14 = vld [vmem:[#allocation5 + $0x118] sm:$0xf]  ;;  %v5135_v19 = vld [vmem:[#allocation5 + $0x11c] sm:$0xf]  ;;  %v3723_v16 = vor.u32 %v5167_v7, %v3720_v8 }
  0x78   :  { %v3591_v23 = vor.u32 %v5139_v15, %v3590_v14  ;;  %v3462_v60 = vld [vmem:[#allocation5 + $0x18] sm:$0xf] }
  0x79   :  { %1019 = vmatpush.bf16.msra.mxu0 %v3487_v25  ;;  %1045 = vmatpush.bf16.msra.mxu2 %v3491_v29  ;;  %v3595_v25 = vor.u32 %v5135_v19, %v3592_v20  ;;  %v3851_v29 = vor.u32 %v5199_v21, %v3848_v22  ;;  %v3718_v0 = vld [vmem:[#allocation5 + $0x218] sm:$0xf]  ;;  %v4046_v20 = vld [vmem:[#allocation8 + $0xc0] sm:$0xf] }
  0x7a   :  { %v5171_v2 = vld [vmem:[#allocation5 + $0x234] sm:$0xf0] }
  0x7b   :  { %1032 = vmatpush.bf16.msra.mxu1 %v3743_v28  ;;  %1058 = vmatpush.bf16.msra.mxu3 %v3747_v33  ;;  %v3814_v28 = vld [vmem:[#allocation5 + $0x2d8] sm:$0xf]  ;;  %v5191_v33 = vld [vmem:[#allocation5 + $0x2dc] sm:$0xf]  ;;  %v3719_v14 = vor.u32 %v5171_v2, %v3718_v0 }
  0x7c   :  { %v3815_v36 = vor.u32 %v5195_v30, %v3814_v28  ;;  %v3819_v41 = vor.u32 %v5191_v33, %v3816_v34  ;;  %v5258_v10 = vld [vmem:[#allocation8 + $0xec] sm:$0xf0] }
  0x7d   :  { %1020 = vmatpush.bf16.msra.mxu0 %v3455_v40  ;;  %1046 = vmatpush.bf16.msra.mxu2 %v3459_v45  ;;  %v3782_v40 = vld [vmem:[#allocation5 + $0x298] sm:$0xf]  ;;  %v5183_v45 = vld [vmem:[#allocation5 + $0x29c] sm:$0xf] }
  0x7e   :  { %v3787_v53 = vor.u32 %v5183_v45, %v3784_v46  ;;  %v5322_v19 = vld [vmem:[#allocation8 + $0x2ec] sm:$0xf0] }
  0x7f   :  { %1033 = vmatpush.bf16.msra.mxu1 %v3711_v44  ;;  %1059 = vmatpush.bf16.msra.mxu3 %v3715_v48  ;;  %v3528_v44 = vld [vmem:[#allocation5 + $0xb8] sm:$0xf0]  ;;  %v3783_v48 = vor.u32 %v5187_v42, %v3782_v40  ;;  %v5254_v21 = vld [vmem:[#allocation8 + $0xcc] sm:$0xf0]  ;;  %v3998_v42 = vld [vmem:[#allocation8 + $0x60] sm:$0xf] }
  0x80   :  { %1021 = vmatmul.bf16.vlgmr.msra.gmra.mxu0 %v5780_v1  ;;  %1047 = vmatmul.bf16.vlgmr.msra.gmra.mxu2 %v5780_v1  ;;  %v4047_v26 = vor.u32 %v5254_v21, %v4046_v20  ;;  %v5318_v28 = vld [vmem:[#allocation8 + $0x2cc] sm:$0xf0]  ;;  %v4702_v20 = vld [vmem:[#allocation8 + $0x5e0] sm:$0xf] }
  0x81   :  { %1065 = vmatpush.bf16.msrb.mxu0 %v3687_v49  ;;  %1091 = vmatpush.bf16.msrb.mxu2 %v3691_v51  ;;  %v3531_v49 = vor.u32 %v5119_v43, %v3528_v44  ;;  %v5115_v51 = vld [vmem:[#allocation5 + $0x74] sm:$0xf0]  ;;  %v4303_v34 = vor.u32 %v5318_v28, %v4302_v27  ;;  %v4126_v44 = vld [vmem:[#allocation8 + $0x160] sm:$0xf] }
  0x82   :  { %1034 = vmatmul.bf16.vlgmr.msra.gmra.mxu1 %v5782_v4  ;;  %1060 = vmatmul.bf16.vlgmr.msra.gmra.mxu3 %v5782_v4  ;;  %v5250_v30 = vld [vmem:[#allocation8 + $0xac] sm:$0xf0] }
  0x83   :  { %1078 = vmatpush.bf16.msrb.mxu1 %v3943_v50  ;;  %1104 = vmatpush.bf16.msrb.mxu3 %v3947_v55  ;;  %v3494_v50 = vld [vmem:[#allocation5 + $0x58] sm:$0xf]  ;;  %v5111_v55 = vld [vmem:[#allocation5 + $0x5c] sm:$0xf] }
  0x84   :  { %v3495_v59 = vor.u32 %v5115_v51, %v3494_v50  ;;  %v5282_v33 = vld [vmem:[#allocation8 + $0x1ac] sm:$0xf0] }
  0x85   :  { %1066 = vmatpush.bf16.msrb.mxu0 %v3655_v61  ;;  %1092 = vmatpush.bf16.msrb.mxu2 %v3659_v63  ;;  %v3751_v61 = vor.u32 %v5179_v54, %v3750_v52  ;;  %v5107_v63 = vld [vmem:[#allocation5 + $0x34] sm:$0xf0]  ;;  %v4159_v38 = vor.u32 %v5282_v33, %v4158_v32  ;;  %v4110_v52 = vld [vmem:[#allocation8 + $0x140] sm:$0xf] }
  0x86   :  { %v5278_v40 = vld [vmem:[#allocation8 + $0x18c] sm:$0xf0] }
  0x87   :  { %1079 = vmatpush.bf16.msrb.mxu1 %v3911_v62  ;;  %1105 = vmatpush.bf16.msrb.mxu3 %v3915_v5  ;;  %v3499_v62 = vor.u32 %v5111_v55, %v3496_v56  ;;  %v5103_v5 = vld [vmem:[#allocation5 + $0x1c] sm:$0xf]  ;;  %v4143_v43 = vor.u32 %v5278_v40, %v4142_v39  ;;  %v5274_v45 = vld [vmem:[#allocation8 + $0x16c] sm:$0xf0]  ;;  %v3966_v55 = vld [vmem:[#allocation8 + $0x20] sm:$0xf] }
  0x88   :  { %v3467_v15 = vor.u32 %v5103_v5, %v3464_v6  ;;  %v5354_v46 = vld [vmem:[#allocation8 + $0x3ec] sm:$0xf0]  ;;  %v4127_v51 = vor.u32 %v5274_v45, %v4126_v44  ;;  %v4286_v56 = vld [vmem:[#allocation8 + $0x2a0] sm:$0xf] }
  0x89   :  { %1067 = vmatpush.bf16.msrb.mxu0 %v3623_v11  ;;  %1093 = vmatpush.bf16.msrb.mxu2 %v3627_v13  ;;  %v3463_v11 = vor.u32 %v5107_v63, %v3462_v60  ;;  %v5290_v13 = vld [vmem:[#allocation8 + $0x1ec] sm:$0xf0]  ;;  %v4094_v63 = vld [vmem:[#allocation8 + $0x120] sm:$0xf] }
  0x8a   :  { %v5238_v50 = vld [vmem:[#allocation8 + $0x4c] sm:$0xf0]  ;;  %v4270_v5 = vld [vmem:[#allocation8 + $0x280] sm:$0xf] }
  0x8b   :  { %1080 = vmatpush.bf16.msrb.mxu1 %v3879_v12  ;;  %1106 = vmatpush.bf16.msrb.mxu3 %v3883_v17  ;;  %v4190_v12 = vld [vmem:[#allocation8 + $0x1e0] sm:$0xf]  ;;  %v4063_v17 = vor.u32 %v5258_v10, %v4062_v9  ;;  %v5314_v57 = vld [vmem:[#allocation8 + $0x2ac] sm:$0xf0] }
  0x8c   :  { %v4191_v22 = vor.u32 %v5290_v13, %v4190_v12  ;;  %v5234_v58 = vld [vmem:[#allocation8 + $0x2c] sm:$0xf0]  ;;  %v4287_v60 = vor.u32 %v5314_v57, %v4286_v56  ;;  %v4574_v9 = vld [vmem:[#allocation8 + $0x4e0] sm:$0xf] }
  0x8d   :  { %1068 = vmatpush.bf16.msrb.mxu0 %v3591_v23  ;;  %1094 = vmatpush.bf16.msrb.mxu2 %v3595_v25  ;;  %v4174_v23 = vld [vmem:[#allocation8 + $0x1c0] sm:$0xf]  ;;  %v4319_v25 = vor.u32 %v5322_v19, %v4318_v18  ;;  %v5266_v0 = vld [vmem:[#allocation8 + $0x12c] sm:$0xf0]  ;;  %v3967_v7 = vor.u32 %v5234_v58, %v3966_v55 }
  0x8e   :  { %v5310_v6 = vld [vmem:[#allocation8 + $0x28c] sm:$0xf0]  ;;  %v4095_v12 = vor.u32 %v5266_v0, %v4094_v63  ;;  %v4078_v13 = vld [vmem:[#allocation8 + $0x100] sm:$0xf] }
  0x8f   :  { %1081 = vmatpush.bf16.msrb.mxu1 %v3847_v24  ;;  %1107 = vmatpush.bf16.msrb.mxu3 %v3851_v29  ;;  %v5286_v24 = vld [vmem:[#allocation8 + $0x1cc] sm:$0xf0]  ;;  %v4030_v29 = vld [vmem:[#allocation8 + $0xa0] sm:$0xf] }
  0x90   :  { %v4175_v31 = vor.u32 %v5286_v24, %v4174_v23  ;;  %v5230_v8 = vld [vmem:[#allocation8 + $0xc] sm:$0xf0]  ;;  %v4254_v18 = vld [vmem:[#allocation8 + $0x260] sm:$0xf] }
  0x91   :  { %1069 = vmatpush.bf16.msrb.mxu0 %v3559_v35  ;;  %1095 = vmatpush.bf16.msrb.mxu2 %v3563_v37  ;;  %v4031_v35 = vor.u32 %v5250_v30, %v4030_v29  ;;  %v5246_v37 = vld [vmem:[#allocation8 + $0x8c] sm:$0xf0]  ;;  %v4398_v23 = vld [vmem:[#allocation8 + $0x380] sm:$0xf] }
  0x92   :  { %v5386_v10 = vld [vmem:[#allocation8 + $0x4ec] sm:$0xf0]  ;;  %v4238_v29 = vld [vmem:[#allocation8 + $0x240] sm:$0xf] }
  0x93   :  { %1082 = vmatpush.bf16.msrb.mxu1 %v3815_v36  ;;  %1108 = vmatpush.bf16.msrb.mxu3 %v3819_v41  ;;  %v4014_v36 = vld [vmem:[#allocation8 + $0x80] sm:$0xf]  ;;  %v5306_v19 = vld [vmem:[#allocation8 + $0x26c] sm:$0xf0] }
  0x94   :  { %v4015_v41 = vor.u32 %v5246_v37, %v4014_v36  ;;  %v5418_v21 = vld [vmem:[#allocation8 + $0x5ec] sm:$0xf0]  ;;  %v4526_v44 = vld [vmem:[#allocation8 + $0x480] sm:$0xf] }
  0x95   :  { %1070 = vmatpush.bf16.msrb.mxu0 %v3527_v47  ;;  %1096 = vmatpush.bf16.msrb.mxu2 %v3531_v49  ;;  %v3982_v49 = vld [vmem:[#allocation8 + $0x40] sm:$0xf]  ;;  %v5302_v30 = vld [vmem:[#allocation8 + $0x24c] sm:$0xf0]  ;;  %v4703_v33 = vor.u32 %v5418_v21, %v4702_v20 }
  0x96   :  { %v3983_v54 = vor.u32 %v5238_v50, %v3982_v49  ;;  %v5382_v32 = vld [vmem:[#allocation8 + $0x4cc] sm:$0xf0]  ;;  %v4239_v36 = vor.u32 %v5302_v30, %v4238_v29  ;;  %v4510_v55 = vld [vmem:[#allocation8 + $0x460] sm:$0xf] }
  0x97   :  { %1083 = vmatpush.bf16.msrb.mxu1 %v3783_v48  ;;  %1109 = vmatpush.bf16.msrb.mxu3 %v3787_v53  ;;  %v5270_v53 = vld [vmem:[#allocation8 + $0x14c] sm:$0xf0]  ;;  %v4606_v29 = vld [vmem:[#allocation8 + $0x520] sm:$0xf] }
  0x98   :  { %v5378_v39 = vld [vmem:[#allocation8 + $0x4ac] sm:$0xf0] }
  0x99   :  { %1071 = vmatpush.bf16.msrb.mxu0 %v3495_v59  ;;  %1097 = vmatpush.bf16.msrb.mxu2 %v3499_v62  ;;  %v4111_v59 = vor.u32 %v5270_v53, %v4110_v52  ;;  %v5350_v62 = vld [vmem:[#allocation8 + $0x3cc] sm:$0xf0]  ;;  %v4222_v53 = vld [vmem:[#allocation8 + $0x220] sm:$0xf] }
  0x9a   :  { %v5374_v45 = vld [vmem:[#allocation8 + $0x48c] sm:$0xf0] }
  0x9b   :  { %1084 = vmatpush.bf16.msrb.mxu1 %v3751_v61  ;;  %1110 = vmatpush.bf16.msrb.mxu3 %v3755_v3  ;;  %v4430_v61 = vld [vmem:[#allocation8 + $0x3c0] sm:$0xf]  ;;  %v5338_v49 = vld [vmem:[#allocation8 + $0x36c] sm:$0xf0]  ;;  %v4527_v52 = vor.u32 %v5374_v45, %v4526_v44  ;;  %v4064_v44 = vld [vmem:[#allocation8 + $0xf0] sm:$0xf0] }
  0x9c   :  { %v4431_v2 = vor.u32 %v5350_v62, %v4430_v61  ;;  %v3950_v3 = vld [vmem:[#allocation8] sm:$0xf]  ;;  %v5370_v56 = vld [vmem:[#allocation8 + $0x46c] sm:$0xf0] }
  0x9d   :  { %1072 = vmatpush.bf16.msrb.mxu0 %v3463_v11  ;;  %1098 = vmatpush.bf16.msrb.mxu2 %v3467_v15  ;;  %v4271_v11 = vor.u32 %v5310_v6, %v4270_v5  ;;  %v5346_v15 = vld [vmem:[#allocation8 + $0x3ac] sm:$0xf0]  ;;  %v3951_v24 = vor.u32 %v5230_v8, %v3950_v3  ;;  %v4366_v61 = vld [vmem:[#allocation8 + $0x340] sm:$0xf]  ;;  %v4511_v3 = vor.u32 %v5370_v56, %v4510_v55  ;;  %v4192_v55 = vld [vmem:[#allocation8 + $0x1f0] sm:$0xf0] }
  0x9e   :  { %v5334_v62 = vld [vmem:[#allocation8 + $0x34c] sm:$0xf0]  ;;  %v4206_v5 = vld [vmem:[#allocation8 + $0x200] sm:$0xf] }
  0x9f   :  { %1085 = vmatpush.bf16.msrb.mxu1 %v3719_v14  ;;  %1111 = vmatpush.bf16.msrb.mxu3 %v3723_v16  ;;  %v4414_v14 = vld [vmem:[#allocation8 + $0x3a0] sm:$0xf]  ;;  %v5262_v16 = vld [vmem:[#allocation8 + $0x10c] sm:$0xf0]  ;;  %v4367_v63 = vor.u32 %v5334_v62, %v4366_v61 }
  0xa0   :  { %1073 = vmatmul.bf16.vlgmr.msrb.gmra.mxu0 %v5780_v1  ;;  %1099 = vmatmul.bf16.vlgmr.msrb.gmra.mxu2 %v5780_v1  ;;  %v5242_v1 = vld [vmem:[#allocation8 + $0x6c] sm:$0xf0]  ;;  %v4079_v27 = vor.u32 %v5262_v16, %v4078_v13  ;;  %v4622_v13 = vld [vmem:[#allocation8 + $0x540] sm:$0xf] }
  0xa1   :  { %2679 = vmatpush.bf16.msra.mxu0 %v4063_v17  ;;  %2705 = vmatpush.bf16.msra.mxu2 %v4319_v25  ;;  %v3999_v48 = vor.u32 %v5242_v1, %v3998_v42  ;;  %v4415_v17 = vor.u32 %v5346_v15, %v4414_v14  ;;  %v5342_v25 = vld [vmem:[#allocation8 + $0x38c] sm:$0xf0]  ;;  %v5800_v1 = vld [vmem:[#allocation7] sm:$0xff]  ;;  %v4350_v15 = vld [vmem:[#allocation8 + $0x320] sm:$0xf] }
  0xa2   :  { %1086 = vmatmul.bf16.vlgmr.msrb.gmra.mxu1 %v5782_v4  ;;  %1112 = vmatmul.bf16.vlgmr.msrb.gmra.mxu3 %v5782_v4  ;;  %v4446_v4 = vld [vmem:[#allocation8 + $0x3e0] sm:$0xf]  ;;  %v4399_v28 = vor.u32 %v5342_v25, %v4398_v23  ;;  %v5410_v42 = vld [vmem:[#allocation8 + $0x5ac] sm:$0xf0] }
  0xa3   :  { %2692 = vmatpush.bf16.msra.mxu1 %v4191_v22  ;;  %v4447_v47 = vor.u32 %v5354_v46, %v4446_v4  ;;  %v4255_v22 = vor.u32 %v5306_v19, %v4254_v18  ;;  %v4654_v46 = vld [vmem:[#allocation8 + $0x580] sm:$0xf]  ;;  %v5294_v6 = vld [vmem:[#allocation8 + $0x20c] sm:$0xf0] }
  0xa4   :  { %v5398_v14 = vld [vmem:[#allocation8 + $0x54c] sm:$0xf0]  ;;  %v4830_v19 = vld [vmem:[#allocation8 + $0x6e0] sm:$0xf] }
  0xa5   :  { %2680 = vmatpush.bf16.msra.mxu0 %v4047_v26  ;;  %2706 = vmatpush.bf16.msra.mxu2 %v4303_v34  ;;  %v4575_v26 = vor.u32 %v5386_v10, %v4574_v9  ;;  %v4686_v34 = vld [vmem:[#allocation8 + $0x5c0] sm:$0xf]  ;;  %v5366_v10 = vld [vmem:[#allocation8 + $0x44c] sm:$0xf0] }
  0xa6   :  { %2718 = vmatpush.bf16.msra.mxu3 %v4447_v47  ;;  %v5406_v47 = vld [vmem:[#allocation8 + $0x58c] sm:$0xf0]  ;;  %v4494_v9 = vld [vmem:[#allocation8 + $0x440] sm:$0xf] }
  0xa7   :  { %2693 = vmatpush.bf16.msra.mxu1 %v4175_v31  ;;  %v4558_v31 = vld [vmem:[#allocation8 + $0x4c0] sm:$0xf]  ;;  %v4655_v57 = vor.u32 %v5406_v47, %v4654_v46  ;;  %v5330_v16 = vld [vmem:[#allocation8 + $0x32c] sm:$0xf0] }
  0xa8   :  { %v4559_v37 = vor.u32 %v5382_v32, %v4558_v31  ;;  %v4351_v18 = vor.u32 %v5330_v16, %v4350_v15  ;;  %v5450_v20 = vld [vmem:[#allocation8 + $0x6ec] sm:$0xf0]  ;;  %v4478_v23 = vld [vmem:[#allocation8 + $0x420] sm:$0xf] }
  0xa9   :  { %2681 = vmatpush.bf16.msra.mxu0 %v4031_v35  ;;  %2707 = vmatpush.bf16.msra.mxu2 %v4287_v60  ;;  %v5414_v35 = vld [vmem:[#allocation8 + $0x5cc] sm:$0xf0]  ;;  %v4334_v31 = vld [vmem:[#allocation8 + $0x300] sm:$0xf] }
  0xaa   :  { %2719 = vmatpush.bf16.msra.mxu3 %v4431_v2  ;;  %v4687_v40 = vor.u32 %v5414_v35, %v4686_v34  ;;  %v5402_v60 = vld [vmem:[#allocation8 + $0x56c] sm:$0xf0]  ;;  %v247_v2 = vperm.slane %v5800_v1, 1  ;;  %v4462_v35 = vld [vmem:[#allocation8 + $0x400] sm:$0xf] }
  0xab   :  { %2694 = vmatpush.bf16.msra.mxu1 %v4159_v38  ;;  %v4542_v38 = vld [vmem:[#allocation8 + $0x4a0] sm:$0xf]  ;;  %v5394_v30 = vld [vmem:[#allocation8 + $0x52c] sm:$0xf0] }
  0xac   :  { %v5326_v32 = vld [vmem:[#allocation8 + $0x30c] sm:$0xf0]  ;;  %v4607_v46 = vor.u32 %v5394_v30, %v4606_v29  ;;  %v4590_v47 = vld [vmem:[#allocation8 + $0x500] sm:$0xf]  ;;  %v5244_v30 = vld [vmem:[#allocation8 + $0x84] sm:$0xf] }
  0xad   :  { %2682 = vmatpush.bf16.msra.mxu0 %v4015_v41  ;;  %2708 = vmatpush.bf16.msra.mxu2 %v4271_v11  ;;  %v4670_v41 = vld [vmem:[#allocation8 + $0x5a0] sm:$0xf]  ;;  %v5442_v56 = vld [vmem:[#allocation8 + $0x6ac] sm:$0xf0] }
  0xae   :  { %2720 = vmatpush.bf16.msra.mxu3 %v4415_v17  ;;  %v4671_v4 = vor.u32 %v5410_v42, %v4670_v41  ;;  %v5358_v42 = vld [vmem:[#allocation8 + $0x40c] sm:$0xf0]  ;;  %v4942_v61 = vld [vmem:[#allocation8 + $0x7c0] sm:$0xf] }
  0xaf   :  { %2695 = vmatpush.bf16.msra.mxu1 %v4143_v43  ;;  %v4543_v43 = vor.u32 %v5378_v39, %v4542_v38  ;;  %v5446_v38 = vld [vmem:[#allocation8 + $0x6cc] sm:$0xf0]  ;;  %v4766_v16 = vld [vmem:[#allocation8 + $0x660] sm:$0xf] }
  0xb0   :  { %v5478_v62 = vld [vmem:[#allocation8 + $0x7cc] sm:$0xf0] }
  0xb1   :  { %2683 = vmatpush.bf16.msra.mxu0 %v3999_v48  ;;  %2709 = vmatpush.bf16.msra.mxu2 %v4255_v22  ;;  %v4382_v48 = vld [vmem:[#allocation8 + $0x360] sm:$0xf]  ;;  %v4495_v22 = vor.u32 %v5366_v10, %v4494_v9 }
  0xb2   :  { %2721 = vmatpush.bf16.msra.mxu3 %v4399_v28  ;;  %v4383_v50 = vor.u32 %v5338_v49, %v4382_v48  ;;  %v4623_v28 = vor.u32 %v5398_v14, %v4622_v13  ;;  %v4958_v48 = vld [vmem:[#allocation8 + $0x7e0] sm:$0xf]  ;;  %v5482_v49 = vld [vmem:[#allocation8 + $0x7ec] sm:$0xf0]  ;;  %v4176_v13 = vld [vmem:[#allocation8 + $0x1d0] sm:$0xf0] }
  0xb3   :  { %2696 = vmatpush.bf16.msra.mxu1 %v4127_v51  ;;  %v246_v51 = vperm.slane %v5800_v1, 0  ;;  %v4926_v10 = vld [vmem:[#allocation8 + $0x7a0] sm:$0xf]  ;;  %v5474_v14 = vld [vmem:[#allocation8 + $0x7ac] sm:$0xf0] }
  0xb4   :  { %v4927_v15 = vor.u32 %v5474_v14, %v4926_v10 }
  0xb5   :  { %2684 = vmatpush.bf16.msra.mxu0 %v3983_v54  ;;  %2710 = vmatpush.bf16.msra.mxu2 %v4239_v36  ;;  %v5298_v54 = vld [vmem:[#allocation8 + $0x22c] sm:$0xf0]  ;;  %v4335_v36 = vor.u32 %v5326_v32, %v4334_v31  ;;  %v4016_v31 = vld [vmem:[#allocation8 + $0x90] sm:$0xf0] }
  0xb6   :  { %2722 = vmatpush.bf16.msra.mxu3 %v4383_v50  ;;  %v4223_v58 = vor.u32 %v5298_v54, %v4222_v53  ;;  %v4798_v53 = vld [vmem:[#allocation8 + $0x6a0] sm:$0xf]  ;;  %v5288_v54 = vld [vmem:[#allocation8 + $0x1e4] sm:$0xf] }
  0xb7   :  { %2697 = vmatpush.bf16.msra.mxu1 %v4111_v59  ;;  %v4638_v59 = vld [vmem:[#allocation8 + $0x560] sm:$0xf] }
  0xb8   :  { %v4639_v11 = vor.u32 %v5402_v60, %v4638_v59  ;;  %v4463_v59 = vor.u32 %v5358_v42, %v4462_v35  ;;  %v4799_v60 = vor.u32 %v5442_v56, %v4798_v53  ;;  %v4144_v35 = vld [vmem:[#allocation8 + $0x190] sm:$0xf0]  ;;  %v5236_v56 = vld [vmem:[#allocation8 + $0x44] sm:$0xf] }
  0xb9   :  { %2685 = vmatpush.bf16.msra.mxu0 %v3967_v7  ;;  %2711 = vmatpush.bf16.msra.mxu2 %v4223_v58 }
  0xba   :  { %2723 = vmatpush.bf16.msra.mxu3 %v4367_v63 }
  0xbb   :  { %2698 = vmatpush.bf16.msra.mxu1 %v4095_v12  ;;  %v4207_v12 = vor.u32 %v5294_v6, %v4206_v5  ;;  %v5438_v5 = vld [vmem:[#allocation8 + $0x68c] sm:$0xf0]  ;;  %v5252_v6 = vld [vmem:[#allocation8 + $0xc4] sm:$0xf] }
  0xbd   :  { %2686 = vmatpush.bf16.msra.mxu0 %v3951_v24  ;;  %v918_v0 = vpop.f32.mrf.mxu0  ;;  %2712 = vmatpush.bf16.msra.mxu2 %v4207_v12  ;;  %v4831_v24 = vor.u32 %v5450_v20, %v4830_v19  ;;  %v5284_v12 = vld [vmem:[#allocation8 + $0x1c4] sm:$0xf]  ;;  %v4910_v19 = vld [vmem:[#allocation8 + $0x780] sm:$0xf]  ;;  %v5470_v20 = vld [vmem:[#allocation8 + $0x78c] sm:$0xf0] }
  0xbe   :  { %v919_v7 = vadd.f32 %v918_v0, %v246_v51  ;;  %2724 = vmatpush.bf16.msra.mxu3 %v4351_v18  ;;  %v5390_v51 = vld [vmem:[#allocation8 + $0x50c] sm:$0xf0] }
  0xbf   :  { %2699 = vmatpush.bf16.msra.mxu1 %v4079_v27  ;;  %v931_v8 = vpop.f32.mrf.mxu1  ;;  %v5362_v27 = vld [vmem:[#allocation8 + $0x42c] sm:$0xf0]  ;;  %v4591_v0 = vor.u32 %v5390_v51, %v4590_v47 }
  0xc0   :  { %v932_v17 = vadd.f32 %v931_v8, %v919_v7  ;;  %v4479_v41 = vor.u32 %v5362_v27, %v4478_v23  ;;  %v4048_v7 = vld [vmem:[#allocation8 + $0xd0] sm:$0xf0]  ;;  %v4195_v8 = vor.u32 %v5288_v54, %v4192_v55  ;;  %v4179_v23 = vor.u32 %v5284_v12, %v4176_v13  ;;  %v5426_v51 = vld [vmem:[#allocation8 + $0x62c] sm:$0xf0] }
  0xc1   :  { %2731 = vmatpush.bf16.msrb.mxu0 %v4575_v26  ;;  %2757 = vmatpush.bf16.msrb.mxu2 %v4831_v24  ;;  %v4051_v18 = vor.u32 %v5252_v6, %v4048_v7  ;;  %v4911_v27 = vor.u32 %v5470_v20, %v4910_v19  ;;  %v5320_v7 = vld [vmem:[#allocation8 + $0x2e4] sm:$0xf]  ;;  %v4320_v12 = vld [vmem:[#allocation8 + $0x2f0] sm:$0xf0]  ;;  %v4862_v19 = vld [vmem:[#allocation8 + $0x720] sm:$0xf] }
  0xc2   :  { %v1117_v25 = vmax.f32 %v932_v17, 0.0  ;;  %2725 = vmatpush.bf16.msra.mxu3 %v4335_v36  ;;  %v5434_v17 = vld [vmem:[#allocation8 + $0x66c] sm:$0xf0]  ;;  %v4750_v36 = vld [vmem:[#allocation8 + $0x640] sm:$0xf] }
  0xc3   :  { %2744 = vmatpush.bf16.msrb.mxu1 %v4703_v33  ;;  %v944_v21 = vpop.f32.mrf.mxu2  ;;  %v4767_v24 = vor.u32 %v5434_v17, %v4766_v16  ;;  %v3968_v16 = vld [vmem:[#allocation8 + $0x30] sm:$0xf0]  ;;  %v5458_v20 = vld [vmem:[#allocation8 + $0x72c] sm:$0xf0] }
  0xc4   :  { %v945_v26 = vadd.f32 %v944_v21, %v247_v2  ;;  %v5804_v33 = vpack.c.bf16 %v1117_v25, %v1117_v25  ;;  %v4943_v2 = vor.u32 %v5478_v62, %v4942_v61  ;;  %v5248_v21 = vld [vmem:[#allocation8 + $0xa4] sm:$0xf] }
  0xc5   :  { %2732 = vmatpush.bf16.msrb.mxu0 %v4559_v37  ;;  %v957_v34 = vpop.f32.mrf.mxu3  ;;  %v4814_v37 = vld [vmem:[#allocation8 + $0x6c0] sm:$0xf]  ;;  %v920_v39 = vpop.f32.mrf.mxu0  ;;  %v5280_v25 = vld [vmem:[#allocation8 + $0x1a4] sm:$0xf] }
  0xc6   :  { %v4815_v45 = vor.u32 %v5446_v38, %v4814_v37  ;;  %2687 = vmatmul.bf16.vlgmr.msra.gmra.mxu0 %v5804_v33  ;;  %v5430_v37 = vld [vmem:[#allocation8 + $0x64c] sm:$0xf0]  ;;  %v4019_v39 = vor.u32 %v5244_v30, %v4016_v31  ;;  %v4846_v31 = vld [vmem:[#allocation8 + $0x700] sm:$0xf] }
  0xc7   :  { %2745 = vmatpush.bf16.msrb.mxu1 %v4687_v40  ;;  %v958_v40 = vadd.f32 %v957_v34, %v945_v26  ;;  %v4160_v26 = vld [vmem:[#allocation8 + $0x1b0] sm:$0xf0]  ;;  %v5276_v34 = vld [vmem:[#allocation8 + $0x184] sm:$0xf]  ;;  %v4751_v38 = vor.u32 %v5430_v37, %v4750_v36 }
  0xc8   :  { %2758 = vmatpush.bf16.msrb.mxu2 %v4815_v45  ;;  %v4163_v32 = vor.u32 %v5280_v25, %v4160_v26  ;;  %v4147_v45 = vor.u32 %v5276_v34, %v4144_v35  ;;  %v5316_v26 = vld [vmem:[#allocation8 + $0x2c4] sm:$0xf]  ;;  %v3952_v35 = vld [vmem:[#allocation8 + $0x10] sm:$0xf0] }
  0xc9   :  { %2733 = vmatpush.bf16.msrb.mxu0 %v4543_v43  ;;  %v5256_v43 = vld [vmem:[#allocation8 + $0xe4] sm:$0xf]  ;;  %v1118_v50 = vmax.f32 %v958_v40, 0.0  ;;  %v4894_v40 = vld [vmem:[#allocation8 + $0x760] sm:$0xf] }
  0xca   :  { %v4067_v63 = vor.u32 %v5256_v43, %v4064_v44  ;;  %v5240_v43 = vld [vmem:[#allocation8 + $0x64] sm:$0xf]  ;;  %v4000_v44 = vld [vmem:[#allocation8 + $0x70] sm:$0xf0] }
  0xcb   :  { %2746 = vmatpush.bf16.msrb.mxu1 %v4671_v4  ;;  %v933_v4 = vpop.f32.mrf.mxu1  ;;  %v946_v58 = vpop.f32.mrf.mxu2  ;;  %v4003_v55 = vor.u32 %v5240_v43, %v4000_v44  ;;  %v5312_v44 = vld [vmem:[#allocation8 + $0x2a4] sm:$0xf] }
  0xcc   :  { %2759 = vmatpush.bf16.msrb.mxu2 %v4799_v60  ;;  %v4878_v58 = vld [vmem:[#allocation8 + $0x740] sm:$0xf]  ;;  %v3984_v60 = vld [vmem:[#allocation8 + $0x50] sm:$0xf0] }
  0xcd   :  { %2734 = vmatpush.bf16.msrb.mxu0 %v4527_v52  ;;  %v4959_v52 = vor.u32 %v5482_v49, %v4958_v48  ;;  %v4128_v49 = vld [vmem:[#allocation8 + $0x170] sm:$0xf0]  ;;  %v3987_v10 = vor.u32 %v5236_v56, %v3984_v60  ;;  %v5344_v56 = vld [vmem:[#allocation8 + $0x3a4] sm:$0xf] }
  0xce   :  { %v5304_v60 = vld [vmem:[#allocation8 + $0x264] sm:$0xf] }
  0xcf   :  { %2747 = vmatpush.bf16.msrb.mxu1 %v4655_v57  ;;  %v5807_v57 = vpack.c.bf16 %v1118_v50, %v1118_v50  ;;  %2770 = vmatpush.bf16.msrb.mxu3 %v4959_v52  ;;  %v4734_v50 = vld [vmem:[#allocation8 + $0x620] sm:$0xf]  ;;  %v249_v52 = vperm.slane %v5800_v1, 3 }
  0xd0   :  { %v4735_v53 = vor.u32 %v5426_v51, %v4734_v50  ;;  %v5348_v50 = vld [vmem:[#allocation8 + $0x3c4] sm:$0xf]  ;;  %v4432_v51 = vld [vmem:[#allocation8 + $0x3d0] sm:$0xf0] }
  0xd1   :  { %2735 = vmatpush.bf16.msrb.mxu0 %v4511_v3  ;;  %v4782_v3 = vld [vmem:[#allocation8 + $0x680] sm:$0xf]  ;;  %2700 = vmatmul.bf16.vlgmr.msra.gmra.mxu1 %v5807_v57 }
  0xd2   :  { %v4783_v9 = vor.u32 %v5438_v5, %v4782_v3  ;;  %v4718_v3 = vld [vmem:[#allocation8 + $0x600] sm:$0xf]  ;;  %v5422_v5 = vld [vmem:[#allocation8 + $0x60c] sm:$0xf0] }
  0xd3   :  { %2748 = vmatpush.bf16.msrb.mxu1 %v4639_v11  ;;  %v959_v11 = vpop.f32.mrf.mxu3  ;;  %2771 = vmatpush.bf16.msrb.mxu3 %v4943_v2  ;;  %v4719_v6 = vor.u32 %v5422_v5, %v4718_v3  ;;  %v5300_v3 = vld [vmem:[#allocation8 + $0x244] sm:$0xf]  ;;  %v4240_v5 = vld [vmem:[#allocation8 + $0x250] sm:$0xf0] }
  0xd4   :  { %2760 = vmatpush.bf16.msrb.mxu2 %v4783_v9  ;;  %v5232_v11 = vld [vmem:[#allocation8 + $0x24] sm:$0xf] }
  0xd5   :  { %2736 = vmatpush.bf16.msrb.mxu0 %v4495_v22  ;;  %v4032_v22 = vld [vmem:[#allocation8 + $0xb0] sm:$0xf0] }
  0xd6   :  { %v4035_v29 = vor.u32 %v5248_v21, %v4032_v22  ;;  %v4863_v22 = vor.u32 %v5458_v20, %v4862_v19  ;;  %v4368_v19 = vld [vmem:[#allocation8 + $0x350] sm:$0xf0] }
  0xd7   :  { %2749 = vmatpush.bf16.msrb.mxu1 %v4623_v28  ;;  %2772 = vmatpush.bf16.msrb.mxu3 %v4927_v15  ;;  %v248_v28 = vperm.slane %v5800_v1, 2 }
  0xd8   :  { %2761 = vmatpush.bf16.msrb.mxu2 %v4767_v24  ;;  %v4096_v24 = vld [vmem:[#allocation8 + $0x130] sm:$0xf0] }
  0xd9   :  { %2737 = vmatpush.bf16.msrb.mxu0 %v4479_v41  ;;  %v5466_v41 = vld [vmem:[#allocation8 + $0x76c] sm:$0xf0] }
  0xda   :  { %v4895_v4 = vor.u32 %v5466_v41, %v4894_v40  ;;  %v5352_v40 = vld [vmem:[#allocation8 + $0x3e4] sm:$0xf]  ;;  %v4448_v41 = vld [vmem:[#allocation8 + $0x3f0] sm:$0xf0] }
  0xdb   :  { %2750 = vmatpush.bf16.msrb.mxu1 %v4607_v46  ;;  %2773 = vmatpush.bf16.msrb.mxu3 %v4911_v27  ;;  %v5272_v46 = vld [vmem:[#allocation8 + $0x164] sm:$0xf]  ;;  %v4304_v27 = vld [vmem:[#allocation8 + $0x2d0] sm:$0xf0]  ;;  %v4451_v43 = vor.u32 %v5352_v40, %v4448_v41 }
  0xdc   :  { %2762 = vmatpush.bf16.msrb.mxu2 %v4751_v38  ;;  %v4131_v61 = vor.u32 %v5272_v46, %v4128_v49  ;;  %v4307_v30 = vor.u32 %v5316_v26, %v4304_v27  ;;  %v5260_v38 = vld [vmem:[#allocation8 + $0x104] sm:$0xf]  ;;  %v4208_v26 = vld [vmem:[#allocation8 + $0x210] sm:$0xf0] }
  0xdd   :  { %2738 = vmatpush.bf16.msrb.mxu0 %v4463_v59  ;;  %v970_v42 = vpop.f32.mrf.mxu0  ;;  %v5462_v59 = vld [vmem:[#allocation8 + $0x74c] sm:$0xf0]  ;;  %v5416_v41 = vld [vmem:[#allocation8 + $0x5e4] sm:$0xf] }
  0xde   :  { %v971_v47 = vadd.f32 %v970_v42, %v248_v28  ;;  %v4879_v62 = vor.u32 %v5462_v59, %v4878_v58  ;;  %v3971_v28 = vor.u32 %v5232_v11, %v3968_v16  ;;  %v4416_v58 = vld [vmem:[#allocation8 + $0x3b0] sm:$0xf0] }
  0xdf   :  { %2751 = vmatpush.bf16.msrb.mxu1 %v4591_v0  ;;  %v983_v48 = vpop.f32.mrf.mxu1  ;;  %2774 = vmatpush.bf16.msrb.mxu3 %v4895_v4  ;;  %v4112_v0 = vld [vmem:[#allocation8 + $0x150] sm:$0xf0]  ;;  %v4419_v59 = vor.u32 %v5344_v56, %v4416_v58 }
  0xe0   :  { %v984_v54 = vadd.f32 %v983_v48, %v971_v47  ;;  %2763 = vmatpush.bf16.msrb.mxu2 %v4735_v53  ;;  %v5308_v53 = vld [vmem:[#allocation8 + $0x284] sm:$0xf]  ;;  %v4688_v56 = vld [vmem:[#allocation8 + $0x5d0] sm:$0xf0] }
  0xe1   :  { %2783 = vmatpush.bf16.msra.mxu0 %v4067_v63  ;;  %v5268_v63 = vld [vmem:[#allocation8 + $0x144] sm:$0xf] }
  0xe2   :  { %v1119_v2 = vmax.f32 %v984_v54, 0.0  ;;  %v4115_v17 = vor.u32 %v5268_v63, %v4112_v0  ;;  %v4272_v54 = vld [vmem:[#allocation8 + $0x290] sm:$0xf0]  ;;  %v5340_v63 = vld [vmem:[#allocation8 + $0x384] sm:$0xf] }
  0xe3   :  { %2796 = vmatpush.bf16.msra.mxu1 %v4195_v8  ;;  %2775 = vmatpush.bf16.msrb.mxu3 %v4879_v62  ;;  %v996_v9 = vpop.f32.mrf.mxu2  ;;  %v4400_v0 = vld [vmem:[#allocation8 + $0x390] sm:$0xf0] }
  0xe4   :  { %v5812_v8 = vpack.c.bf16 %v1119_v2, %v1119_v2  ;;  %v997_v13 = vadd.f32 %v996_v9, %v249_v52  ;;  %2764 = vmatpush.bf16.msrb.mxu2 %v4719_v6  ;;  %v4435_v52 = vor.u32 %v5348_v50, %v4432_v51  ;;  %v4403_v2 = vor.u32 %v5340_v63, %v4400_v0  ;;  %v5336_v9 = vld [vmem:[#allocation8 + $0x364] sm:$0xf] }
  0xe5   :  { %2784 = vmatpush.bf16.msra.mxu0 %v4051_v18  ;;  %v1009_v14 = vpop.f32.mrf.mxu3  ;;  %v972_v15 = vpop.f32.mrf.mxu0  ;;  %v4323_v18 = vor.u32 %v5320_v7, %v4320_v12  ;;  %v250_v6 = vperm.slane %v5800_v1, 4  ;;  %v4243_v7 = vor.u32 %v5300_v3, %v4240_v5  ;;  %v5408_v0 = vld [vmem:[#allocation8 + $0x5a4] sm:$0xf]  ;;  %v4512_v5 = vld [vmem:[#allocation8 + $0x470] sm:$0xf0] }
  0xe6   :  { %2713 = vmatmul.bf16.vlgmr.msra.gmra.mxu2 %v5812_v8  ;;  %v1010_v25 = vadd.f32 %v1009_v14, %v997_v13  ;;  %v5296_v13 = vld [vmem:[#allocation8 + $0x224] sm:$0xf]  ;;  %v4224_v14 = vld [vmem:[#allocation8 + $0x230] sm:$0xf0] }
  0xe7   :  { %2797 = vmatpush.bf16.msra.mxu1 %v4179_v23  ;;  %v985_v21 = vpop.f32.mrf.mxu1  ;;  %v5264_v23 = vld [vmem:[#allocation8 + $0x124] sm:$0xf]  ;;  %2776 = vmatpush.bf16.msrb.mxu3 %v4863_v22  ;;  %v4576_v22 = vld [vmem:[#allocation8 + $0x4f0] sm:$0xf0] }
  0xe8   :  { %2809 = vmatpush.bf16.msra.mxu2 %v4323_v18  ;;  %v1120_v34 = vmax.f32 %v1010_v25, 0.0  ;;  %v4099_v36 = vor.u32 %v5264_v23, %v4096_v24  ;;  %v5332_v18 = vld [vmem:[#allocation8 + $0x344] sm:$0xf]  ;;  %v251_v24 = vperm.slane %v5800_v1, 5 }
  0xe9   :  { %2785 = vmatpush.bf16.msra.mxu0 %v4035_v29  ;;  %v5228_v29 = vld [vmem:[#allocation8 + $0x4] sm:$0xf]  ;;  %v4371_v23 = vor.u32 %v5332_v18, %v4368_v19  ;;  %v4480_v19 = vld [vmem:[#allocation8 + $0x430] sm:$0xf0] }
  0xea   :  { %v5815_v42 = vpack.c.bf16 %v1120_v34, %v1120_v34  ;;  %v3955_v46 = vor.u32 %v5228_v29, %v3952_v35  ;;  %v5384_v21 = vld [vmem:[#allocation8 + $0x4e4] sm:$0xf]  ;;  %v4560_v34 = vld [vmem:[#allocation8 + $0x4d0] sm:$0xf0] }
  0xeb   :  { %2798 = vmatpush.bf16.msra.mxu1 %v4163_v32  ;;  %v5454_v32 = vld [vmem:[#allocation8 + $0x70c] sm:$0xf0]  ;;  %v998_v4 = vpop.f32.mrf.mxu2  ;;  %v5292_v25 = vld [vmem:[#allocation8 + $0x204] sm:$0xf]  ;;  %v4579_v29 = vor.u32 %v5384_v21, %v4576_v22 }
  0xec   :  { %v4847_v37 = vor.u32 %v5454_v32, %v4846_v31  ;;  %2810 = vmatpush.bf16.msra.mxu2 %v4307_v30  ;;  %2726 = vmatmul.bf16.vlgmr.msra.gmra.mxu3 %v5815_v42  ;;  %v5380_v30 = vld [vmem:[#allocation8 + $0x4c4] sm:$0xf]  ;;  %v4704_v4 = vld [vmem:[#allocation8 + $0x5f0] sm:$0xf0] }
  0xed   :  { %2786 = vmatpush.bf16.msra.mxu0 %v4019_v39  ;;  %v4080_v39 = vld [vmem:[#allocation8 + $0x110] sm:$0xf0]  ;;  %v1011_v48 = vpop.f32.mrf.mxu3  ;;  %v5328_v35 = vld [vmem:[#allocation8 + $0x324] sm:$0xf] }
  0xee   :  { %2777 = vmatpush.bf16.msrb.mxu3 %v4847_v37  ;;  %v4083_v49 = vor.u32 %v5260_v38, %v4080_v39  ;;  %v5376_v48 = vld [vmem:[#allocation8 + $0x4a4] sm:$0xf] }
  0xef   :  { %2799 = vmatpush.bf16.msra.mxu1 %v4147_v45  ;;  %v4288_v45 = vld [vmem:[#allocation8 + $0x2b0] sm:$0xf0]  ;;  %v5368_v3 = vld [vmem:[#allocation8 + $0x464] sm:$0xf] }
  0xf0   :  { %v4291_v47 = vor.u32 %v5312_v44, %v4288_v45  ;;  %v4563_v45 = vor.u32 %v5380_v30, %v4560_v34  ;;  %v5360_v18 = vld [vmem:[#allocation8 + $0x424] sm:$0xf]  ;;  %v4070_v34 = vld [vmem:[#allocation8 + $0xe8] sm:$0xf] }
  0xf1   :  { %2787 = vmatpush.bf16.msra.mxu0 %v4003_v55  ;;  %v4275_v55 = vor.u32 %v5308_v53, %v4272_v54 }
  0xf2   :  { %2822 = vmatpush.bf16.msra.mxu3 %v4451_v43  ;;  %2811 = vmatpush.bf16.msra.mxu2 %v4291_v47  ;;  %v4336_v47 = vld [vmem:[#allocation8 + $0x310] sm:$0xf0] }
  0xf3   :  { %2800 = vmatpush.bf16.msra.mxu1 %v4131_v61  ;;  %v4256_v61 = vld [vmem:[#allocation8 + $0x270] sm:$0xf0] }
  0xf4   :  { %v4259_v62 = vor.u32 %v5304_v60, %v4256_v61  ;;  %v4528_v60 = vld [vmem:[#allocation8 + $0x490] sm:$0xf0] }
  0xf5   :  { %2788 = vmatpush.bf16.msra.mxu0 %v3987_v10  ;;  %v4384_v10 = vld [vmem:[#allocation8 + $0x370] sm:$0xf0] }
  0xf6   :  { %2823 = vmatpush.bf16.msra.mxu3 %v4435_v52  ;;  %2812 = vmatpush.bf16.msra.mxu2 %v4275_v55  ;;  %v4387_v11 = vor.u32 %v5336_v9, %v4384_v10  ;;  %v4707_v52 = vor.u32 %v5416_v41, %v4704_v4  ;;  %v5412_v55 = vld [vmem:[#allocation8 + $0x5c4] sm:$0xf]  ;;  %v4656_v10 = vld [vmem:[#allocation8 + $0x590] sm:$0xf0] }
  0xf7   :  { %2801 = vmatpush.bf16.msra.mxu1 %v4115_v17  ;;  %v4227_v17 = vor.u32 %v5296_v13, %v4224_v14  ;;  %v5404_v9 = vld [vmem:[#allocation8 + $0x584] sm:$0xf]  ;;  %v252_v14 = vperm.slane %v5800_v1, 6  ;;  %v4608_v41 = vld [vmem:[#allocation8 + $0x530] sm:$0xf0] }
  0xf8   :  { %v4659_v13 = vor.u32 %v5404_v9, %v4656_v10 }
  0xf9   :  { %2789 = vmatpush.bf16.msra.mxu0 %v3971_v28  ;;  %v4211_v28 = vor.u32 %v5292_v25, %v4208_v26  ;;  %v5396_v25 = vld [vmem:[#allocation8 + $0x544] sm:$0xf]  ;;  %v4624_v26 = vld [vmem:[#allocation8 + $0x550] sm:$0xf0] }
  0xfa   :  { %2824 = vmatpush.bf16.msra.mxu3 %v4419_v59  ;;  %2813 = vmatpush.bf16.msra.mxu2 %v4259_v62  ;;  %v5372_v59 = vld [vmem:[#allocation8 + $0x484] sm:$0xf]  ;;  %v4691_v62 = vor.u32 %v5412_v55, %v4688_v56  ;;  %v4592_v56 = vld [vmem:[#allocation8 + $0x510] sm:$0xf0] }
  0xfb   :  { %2802 = vmatpush.bf16.msra.mxu1 %v4099_v36  ;;  %v4352_v36 = vld [vmem:[#allocation8 + $0x330] sm:$0xf0]  ;;  %v4531_v63 = vor.u32 %v5372_v59, %v4528_v60 }
  0xfc   :  { %v4355_v40 = vor.u32 %v5328_v35, %v4352_v36  ;;  %v5259_v35 = vld [vmem:[#allocation8 + $0xf4] sm:$0xf0]  ;;  %v253_v36 = vperm.slane %v5800_v1, 7  ;;  %v4960_v59 = vld [vmem:[#allocation8 + $0x7f0] sm:$0xf0] }
  0xfd   :  { %2790 = vmatpush.bf16.msra.mxu0 %v3955_v46  ;;  %v1022_v12 = vpop.f32.mrf.mxu0  ;;  %v5324_v46 = vld [vmem:[#allocation8 + $0x304] sm:$0xf] }
  0xfe   :  { %2825 = vmatpush.bf16.msra.mxu3 %v4403_v2  ;;  %2814 = vmatpush.bf16.msra.mxu2 %v4243_v7  ;;  %v1023_v15 = vadd.f32 %v1022_v12, %v250_v6  ;;  %v4339_v50 = vor.u32 %v5324_v46, %v4336_v47  ;;  %v4672_v2 = vld [vmem:[#allocation8 + $0x5b0] sm:$0xf0]  ;;  %v4515_v7 = vor.u32 %v5368_v3, %v4512_v5  ;;  %v4038_v5 = vld [vmem:[#allocation8 + $0xa8] sm:$0xf] }
  0xff   :  { %2803 = vmatpush.bf16.msra.mxu1 %v4083_v49  ;;  %v1035_v16 = vpop.f32.mrf.mxu1  ;;  %v4544_v49 = vld [vmem:[#allocation8 + $0x4b0] sm:$0xf0]  ;;  %v4675_v6 = vor.u32 %v5408_v0, %v4672_v2  ;;  %v5291_v0 = vld [vmem:[#allocation8 + $0x1f4] sm:$0xf0]  ;;  %v5440_v2 = vld [vmem:[#allocation8 + $0x6a4] sm:$0xf] }
 0x100   :  { %v1036_v20 = vadd.f32 %v1035_v16, %v1023_v15  ;;  %v4547_v54 = vor.u32 %v5376_v48, %v4544_v49  ;;  %v4496_v12 = vld [vmem:[#allocation8 + $0x450] sm:$0xf0]  ;;  %v5400_v16 = vld [vmem:[#allocation8 + $0x564] sm:$0xf]  ;;  %v4054_v48 = vld [vmem:[#allocation8 + $0xc8] sm:$0xf] }
 0x101   :  { %v4816_v47 = vld [vmem:[#allocation8 + $0x6d0] sm:$0xf0]  ;;  %v5255_v49 = vld [vmem:[#allocation8 + $0xd4] sm:$0xf0] }
 0x102   :  { %2826 = vmatpush.bf16.msra.mxu3 %v4387_v11  ;;  %2815 = vmatpush.bf16.msra.mxu2 %v4227_v17  ;;  %v1121_v27 = vmax.f32 %v1036_v20, 0.0  ;;  %v5364_v11 = vld [vmem:[#allocation8 + $0x444] sm:$0xf]  ;;  %v4640_v17 = vld [vmem:[#allocation8 + $0x570] sm:$0xf0] }
 0x103   :  { %v1048_v32 = vpop.f32.mrf.mxu2  ;;  %v4499_v15 = vor.u32 %v5364_v11, %v4496_v12  ;;  %v4643_v21 = vor.u32 %v5400_v16, %v4640_v17  ;;  %v4800_v3 = vld [vmem:[#allocation8 + $0x6b0] sm:$0xf0]  ;;  %v5476_v12 = vld [vmem:[#allocation8 + $0x7c4] sm:$0xf]  ;;  %v4182_v17 = vld [vmem:[#allocation8 + $0x1c8] sm:$0xf] }
 0x104   :  { %v5820_v31 = vpack.c.bf16 %v1121_v27, %v1121_v27  ;;  %v1049_v37 = vadd.f32 %v1048_v32, %v251_v24  ;;  %v4483_v24 = vor.u32 %v5360_v18, %v4480_v19  ;;  %v5356_v27 = vld [vmem:[#allocation8 + $0x404] sm:$0xf]  ;;  %v4832_v32 = vld [vmem:[#allocation8 + $0x6f0] sm:$0xf0]  ;;  %v5287_v18 = vld [vmem:[#allocation8 + $0x1d4] sm:$0xf0] }
 0x105   :  { %v1061_v38 = vpop.f32.mrf.mxu3  ;;  %v1024_v39 = vpop.f32.mrf.mxu0  ;;  %v5436_v19 = vld [vmem:[#allocation8 + $0x684] sm:$0xf] }
 0x106   :  { %2827 = vmatpush.bf16.msra.mxu3 %v4371_v23  ;;  %2816 = vmatpush.bf16.msra.mxu2 %v4211_v28  ;;  %v1062_v44 = vadd.f32 %v1061_v38, %v1049_v37  ;;  %v4464_v28 = vld [vmem:[#allocation8 + $0x410] sm:$0xf0]  ;;  %v4627_v37 = vor.u32 %v5396_v25, %v4624_v26  ;;  %v4183_v26 = vor.u32 %v5287_v18, %v4182_v17  ;;  %v4582_v17 = vld [vmem:[#allocation8 + $0x4e8] sm:$0xf]  ;;  %v5387_v18 = vld [vmem:[#allocation8 + $0x4f4] sm:$0xf0] }
 0x107   :  { %2739 = vmatmul.bf16.vlgmr.msrb.gmra.mxu0 %v5820_v31  ;;  %v1037_v43 = vpop.f32.mrf.mxu1  ;;  %v4467_v39 = vor.u32 %v5356_v27, %v4464_v28  ;;  %v5472_v27 = vld [vmem:[#allocation8 + $0x7a4] sm:$0xf] }
 0x108   :  { %2835 = vmatpush.bf16.msrb.mxu0 %v4579_v29  ;;  %v1122_v51 = vmax.f32 %v1062_v44, 0.0  ;;  %v5448_v29 = vld [vmem:[#allocation8 + $0x6e4] sm:$0xf]  ;;  %v4071_v44 = vor.u32 %v5259_v35, %v4070_v34  ;;  %v5283_v34 = vld [vmem:[#allocation8 + $0x1b4] sm:$0xf0] }
 0x109   :  { %v4835_v43 = vor.u32 %v5448_v29, %v4832_v32  ;;  %v4166_v32 = vld [vmem:[#allocation8 + $0x1a8] sm:$0xf] }
 0x10a   :  { %2828 = vmatpush.bf16.msra.mxu3 %v4355_v40  ;;  %v5823_v53 = vpack.c.bf16 %v1122_v51, %v1122_v51  ;;  %v5392_v40 = vld [vmem:[#allocation8 + $0x524] sm:$0xf]  ;;  %v4006_v35 = vld [vmem:[#allocation8 + $0x68] sm:$0xf] }
 0x10b   :  { %v1050_v58 = vpop.f32.mrf.mxu2  ;;  %v4611_v1 = vor.u32 %v5392_v40, %v4608_v41  ;;  %v4167_v40 = vor.u32 %v5283_v34, %v4166_v32  ;;  %v5468_v41 = vld [vmem:[#allocation8 + $0x784] sm:$0xf]  ;;  %v4310_v32 = vld [vmem:[#allocation8 + $0x2c8] sm:$0xf] }
 0x10c   :  { %2836 = vmatpush.bf16.msrb.mxu0 %v4563_v45  ;;  %2752 = vmatmul.bf16.vlgmr.msrb.gmra.mxu1 %v5823_v53  ;;  %v5444_v45 = vld [vmem:[#allocation8 + $0x6c4] sm:$0xf]  ;;  %v4566_v34 = vld [vmem:[#allocation8 + $0x4c8] sm:$0xf] }
 0x10d   :  { %v1063_v61 = vpop.f32.mrf.mxu3  ;;  %2848 = vmatpush.bf16.msrb.mxu1 %v4707_v52  ;;  %v5480_v58 = vld [vmem:[#allocation8 + $0x7e4] sm:$0xf] }
 0x10e   :  { %2829 = vmatpush.bf16.msra.mxu3 %v4339_v50  ;;  %v4819_v61 = vor.u32 %v5444_v45, %v4816_v47  ;;  %v4963_v10 = vor.u32 %v5480_v58, %v4960_v59  ;;  %v4150_v45 = vld [vmem:[#allocation8 + $0x188] sm:$0xf]  ;;  %v5275_v59 = vld [vmem:[#allocation8 + $0x174] sm:$0xf0] }
 0x10f   :  { %v4134_v58 = vld [vmem:[#allocation8 + $0x168] sm:$0xf] }
 0x110   :  { %2837 = vmatpush.bf16.msrb.mxu0 %v4547_v54  ;;  %v5388_v54 = vld [vmem:[#allocation8 + $0x504] sm:$0xf] }
 0x111   :  { %2849 = vmatpush.bf16.msrb.mxu1 %v4691_v62  ;;  %v4055_v62 = vor.u32 %v5255_v49, %v4054_v48  ;;  %v4595_v9 = vor.u32 %v5388_v54, %v4592_v56  ;;  %v3990_v48 = vld [vmem:[#allocation8 + $0x48] sm:$0xf]  ;;  %v5239_v49 = vld [vmem:[#allocation8 + $0x54] sm:$0xf0]  ;;  %v5464_v54 = vld [vmem:[#allocation8 + $0x764] sm:$0xf] }
 0x112   :  { %v4896_v56 = vld [vmem:[#allocation8 + $0x770] sm:$0xf0] }
 0x114   :  { %2838 = vmatpush.bf16.msrb.mxu0 %v4531_v63  ;;  %v4198_v63 = vld [vmem:[#allocation8 + $0x1e8] sm:$0xf] }
 0x115   :  { %2850 = vmatpush.bf16.msrb.mxu1 %v4675_v6  ;;  %v5251_v6 = vld [vmem:[#allocation8 + $0xb4] sm:$0xf0]  ;;  %v4199_v11 = vor.u32 %v5291_v0, %v4198_v63  ;;  %v5424_v63 = vld [vmem:[#allocation8 + $0x624] sm:$0xf]  ;;  %v4736_v0 = vld [vmem:[#allocation8 + $0x630] sm:$0xf0] }
 0x116   :  { %v4039_v16 = vor.u32 %v5251_v6, %v4038_v5  ;;  %v5460_v5 = vld [vmem:[#allocation8 + $0x744] sm:$0xf] }
 0x117   :  { %2791 = vmatmul.bf16.vlgmr.msra.gmra.mxu0 %v5804_v33 }
 0x118   :  { %2839 = vmatpush.bf16.msrb.mxu0 %v4515_v7 }
 0x119   :  { %2851 = vmatpush.bf16.msrb.mxu1 %v4659_v13  ;;  %v4944_v13 = vld [vmem:[#allocation8 + $0x7d0] sm:$0xf0] }
 0x11a   :  { %v4947_v25 = vor.u32 %v5476_v12, %v4944_v13  ;;  %v5420_v12 = vld [vmem:[#allocation8 + $0x604] sm:$0xf]  ;;  %v3958_v13 = vld [vmem:[#allocation8 + $0x8] sm:$0xf] }
 0x11c   :  { %2840 = vmatpush.bf16.msrb.mxu0 %v4499_v15  ;;  %2804 = vmatmul.bf16.vlgmr.msra.gmra.mxu1 %v5807_v57  ;;  %v4803_v15 = vor.u32 %v5440_v2, %v4800_v3  ;;  %v4899_v2 = vor.u32 %v5464_v54, %v4896_v56  ;;  %v4135_v3 = vor.u32 %v5275_v59, %v4134_v58  ;;  %v4294_v54 = vld [vmem:[#allocation8 + $0x2a8] sm:$0xf] }
 0x11d   :  { %v1074_v20 = vpop.f32.mrf.mxu0  ;;  %2852 = vmatpush.bf16.msrb.mxu1 %v4643_v21  ;;  %v4784_v21 = vld [vmem:[#allocation8 + $0x690] sm:$0xf0]  ;;  %v4438_v59 = vld [vmem:[#allocation8 + $0x3c8] sm:$0xf] }
 0x11e   :  { %v1075_v22 = vadd.f32 %v1074_v20, %v252_v14  ;;  %v4787_v28 = vor.u32 %v5436_v19, %v4784_v21  ;;  %v4326_v21 = vld [vmem:[#allocation8 + $0x2e8] sm:$0xf] }
 0x11f   :  { %v1087_v23 = vpop.f32.mrf.mxu1 }
 0x120   :  { %v1088_v30 = vadd.f32 %v1087_v23, %v1075_v22  ;;  %2841 = vmatpush.bf16.msrb.mxu0 %v4483_v24  ;;  %v4022_v22 = vld [vmem:[#allocation8 + $0x88] sm:$0xf]  ;;  %v5247_v23 = vld [vmem:[#allocation8 + $0x94] sm:$0xf0] }
 0x121   :  { %2853 = vmatpush.bf16.msrb.mxu1 %v4627_v37  ;;  %v4023_v29 = vor.u32 %v5247_v23, %v4022_v22  ;;  %v5432_v37 = vld [vmem:[#allocation8 + $0x664] sm:$0xf]  ;;  %v5323_v22 = vld [vmem:[#allocation8 + $0x2f4] sm:$0xf0] }
 0x122   :  { %v1123_v38 = vmax.f32 %v1088_v30, 0.0  ;;  %v4928_v30 = vld [vmem:[#allocation8 + $0x7b0] sm:$0xf0]  ;;  %v5456_v23 = vld [vmem:[#allocation8 + $0x724] sm:$0xf] }
 0x123   :  { %v1100_v46 = vpop.f32.mrf.mxu2 }
 0x124   :  { %v5830_v4 = vpack.c.bf16 %v1123_v38, %v1123_v38  ;;  %v1101_v50 = vadd.f32 %v1100_v46, %v253_v36  ;;  %2842 = vmatpush.bf16.msrb.mxu0 %v4467_v39  ;;  %v5243_v36 = vld [vmem:[#allocation8 + $0x74] sm:$0xf0]  ;;  %v4768_v38 = vld [vmem:[#allocation8 + $0x670] sm:$0xf0]  ;;  %v4931_v39 = vor.u32 %v5472_v27, %v4928_v30  ;;  %v4327_v30 = vor.u32 %v5323_v22, %v4326_v21  ;;  %v4262_v21 = vld [vmem:[#allocation8 + $0x268] sm:$0xf] }
 0x125   :  { %v1113_v51 = vpop.f32.mrf.mxu3  ;;  %v1076_v52 = vpop.f32.mrf.mxu0  ;;  %2854 = vmatpush.bf16.msrb.mxu1 %v4611_v1  ;;  %v5279_v46 = vld [vmem:[#allocation8 + $0x194] sm:$0xf0]  ;;  %v4771_v47 = vor.u32 %v5432_v37, %v4768_v38 }
 0x126   :  { %2765 = vmatmul.bf16.vlgmr.msrb.gmra.mxu2 %v5830_v4  ;;  %v1114_v60 = vadd.f32 %v1113_v51, %v1101_v50  ;;  %v5428_v50 = vld [vmem:[#allocation8 + $0x644] sm:$0xf]  ;;  %v4752_v51 = vld [vmem:[#allocation8 + $0x650] sm:$0xf0]  ;;  %v4151_v1 = vor.u32 %v5279_v46, %v4150_v45  ;;  %v5267_v27 = vld [vmem:[#allocation8 + $0x134] sm:$0xf0] }
 0x127   :  { %v1089_v55 = vpop.f32.mrf.mxu1  ;;  %2861 = vmatpush.bf16.msrb.mxu2 %v4835_v43  ;;  %2843 = vmatmul.bf16.vlgmr.msrb.gmra.mxu0 %v5820_v31  ;;  %v4007_v43 = vor.u32 %v5243_v36, %v4006_v35  ;;  %v5383_v35 = vld [vmem:[#allocation8 + $0x4d4] sm:$0xf0] }
 0x128   :  { %2887 = vmatpush.bf16.msra.mxu0 %v4071_v44  ;;  %v1124_v7 = vmax.f32 %v1114_v60, 0.0  ;;  %v4912_v44 = vld [vmem:[#allocation8 + $0x790] sm:$0xf0]  ;;  %v3991_v55 = vor.u32 %v5239_v49, %v3990_v48  ;;  %v4755_v60 = vor.u32 %v5428_v50, %v4752_v51  ;;  %v5319_v38 = vld [vmem:[#allocation8 + $0x2d4] sm:$0xf0]  ;;  %v4567_v45 = vor.u32 %v5383_v35, %v4566_v34 }
 0x129   :  { %2855 = vmatpush.bf16.msrb.mxu1 %v4595_v9  ;;  %v4915_v52 = vor.u32 %v5468_v41, %v4912_v44  ;;  %v4118_v9 = vld [vmem:[#allocation8 + $0x148] sm:$0xf]  ;;  %v5355_v46 = vld [vmem:[#allocation8 + $0x3f4] sm:$0xf0]  ;;  %v4311_v49 = vor.u32 %v5319_v38, %v4310_v32 }
 0x12a   :  { %v5834_v14 = vpack.c.bf16 %v1124_v7, %v1124_v7  ;;  %v4880_v7 = vld [vmem:[#allocation8 + $0x750] sm:$0xf0]  ;;  %v4086_v41 = vld [vmem:[#allocation8 + $0x108] sm:$0xf]  ;;  %v5419_v48 = vld [vmem:[#allocation8 + $0x5f4] sm:$0xf0] }
 0x12b   :  { %2862 = vmatpush.bf16.msrb.mxu2 %v4819_v61  ;;  %v1102_v20 = vpop.f32.mrf.mxu2  ;;  %v3974_v61 = vld [vmem:[#allocation8 + $0x28] sm:$0xf]  ;;  %v4883_v19 = vor.u32 %v5460_v5, %v4880_v7  ;;  %v5379_v51 = vld [vmem:[#allocation8 + $0x4b4] sm:$0xf0]  ;;  %v5842_v5 = vld [vmem:[#allocation10] sm:$0xf] }
 0x12c   :  { %2888 = vmatpush.bf16.msra.mxu0 %v4055_v62  ;;  %2778 = vmatmul.bf16.vlgmr.msrb.gmra.mxu3 %v5834_v14  ;;  %v5235_v62 = vld [vmem:[#allocation8 + $0x34] sm:$0xf0]  ;;  %v4454_v44 = vld [vmem:[#allocation8 + $0x3e8] sm:$0xf] }
 0x12d   :  { %v1115_v24 = vpop.f32.mrf.mxu3  ;;  %2874 = vmatpush.bf16.msrb.mxu3 %v4963_v10  ;;  %2900 = vmatpush.bf16.msra.mxu1 %v4199_v11  ;;  %v3975_v6 = vor.u32 %v5235_v62, %v3974_v61  ;;  %v5271_v10 = vld [vmem:[#allocation8 + $0x154] sm:$0xf0]  ;;  %v4739_v11 = vor.u32 %v5424_v63, %v4736_v0  ;;  %v4550_v50 = vld [vmem:[#allocation8 + $0x4a8] sm:$0xf]  ;;  %v4455_v56 = vor.u32 %v5355_v46, %v4454_v44 }
 0x12e   :  { %2856 = vmatmul.bf16.vlgmr.msrb.gmra.mxu1 %v5823_v53  ;;  %v4119_v20 = vor.u32 %v5271_v10, %v4118_v9  ;;  %v5351_v61 = vld [vmem:[#allocation8 + $0x3d4] sm:$0xf0]  ;;  %v4694_v62 = vld [vmem:[#allocation8 + $0x5c8] sm:$0xf] }
 0x12f   :  { %2863 = vmatpush.bf16.msrb.mxu2 %v4803_v15  ;;  %v5231_v15 = vld [vmem:[#allocation8 + $0x14] sm:$0xf0]  ;;  %v4439_v9 = vor.u32 %v5351_v61, %v4438_v59  ;;  %v4502_v35 = vld [vmem:[#allocation8 + $0x448] sm:$0xf] }
 0x130   :  { %2889 = vmatpush.bf16.msra.mxu0 %v4039_v16  ;;  %v4720_v16 = vld [vmem:[#allocation8 + $0x610] sm:$0xf0]  ;;  %v3959_v24 = vor.u32 %v5231_v15, %v3958_v13  ;;  %v5415_v63 = vld [vmem:[#allocation8 + $0x5d4] sm:$0xf0]  ;;  %v4678_v15 = vld [vmem:[#allocation8 + $0x5a8] sm:$0xf] }
 0x131   :  { %2875 = vmatpush.bf16.msrb.mxu3 %v4947_v25  ;;  %2901 = vmatpush.bf16.msra.mxu1 %v4183_v26  ;;  %v4864_v25 = vld [vmem:[#allocation8 + $0x730] sm:$0xf0]  ;;  %v4102_v26 = vld [vmem:[#allocation8 + $0x128] sm:$0xf]  ;;  %v5311_v7 = vld [vmem:[#allocation8 + $0x294] sm:$0xf0]  ;;  %v4695_v10 = vor.u32 %v5415_v63, %v4694_v62 }
 0x132   :  { %v4867_v36 = vor.u32 %v5456_v23, %v4864_v25  ;;  %v4103_v37 = vor.u32 %v5267_v27, %v4102_v26  ;;  %v5307_v22 = vld [vmem:[#allocation8 + $0x274] sm:$0xf0]  ;;  %v4406_v26 = vld [vmem:[#allocation8 + $0x388] sm:$0xf] }
 0x133   :  { %2864 = vmatpush.bf16.msrb.mxu2 %v4787_v28  ;;  %v4723_v28 = vor.u32 %v5420_v12, %v4720_v16  ;;  %v5347_v12 = vld [vmem:[#allocation8 + $0x3b4] sm:$0xf0]  ;;  %v4263_v34 = vor.u32 %v5307_v22, %v4262_v21  ;;  %v4646_v46 = vld [vmem:[#allocation8 + $0x568] sm:$0xf] }
 0x134   :  { %2890 = vmatpush.bf16.msra.mxu0 %v4023_v29  ;;  %v4583_v29 = vor.u32 %v5387_v18, %v4582_v17  ;;  %v5411_v16 = vld [vmem:[#allocation8 + $0x5b4] sm:$0xf0]  ;;  %v1391_v17 = vperm.slane %v5842_v5, 0  ;;  %v4630_v61 = vld [vmem:[#allocation8 + $0x548] sm:$0xf] }
 0x135   :  { %2876 = vmatpush.bf16.msrb.mxu3 %v4931_v39  ;;  %2902 = vmatpush.bf16.msra.mxu1 %v4167_v40  ;;  %v5452_v39 = vld [vmem:[#allocation8 + $0x704] sm:$0xf]  ;;  %v4848_v40 = vld [vmem:[#allocation8 + $0x710] sm:$0xf0]  ;;  %v4679_v25 = vor.u32 %v5411_v16, %v4678_v15  ;;  %v5303_v38 = vld [vmem:[#allocation8 + $0x254] sm:$0xf0] }
 0x136   :  { %2817 = vmatmul.bf16.vlgmr.msra.gmra.mxu2 %v5812_v8  ;;  %v5399_v62 = vld [vmem:[#allocation8 + $0x554] sm:$0xf0]  ;;  %v4358_v15 = vld [vmem:[#allocation8 + $0x328] sm:$0xf] }
 0x137   :  { %2865 = vmatpush.bf16.msrb.mxu2 %v4771_v47  ;;  %v4710_v47 = vld [vmem:[#allocation8 + $0x5e8] sm:$0xf] }
 0x138   :  { %2891 = vmatpush.bf16.msra.mxu0 %v4007_v43  ;;  %v5263_v43 = vld [vmem:[#allocation8 + $0x114] sm:$0xf0]  ;;  %v4711_v58 = vor.u32 %v5419_v48, %v4710_v47 }
 0x139   :  { %2877 = vmatpush.bf16.msrb.mxu3 %v4915_v52  ;;  %2903 = vmatpush.bf16.msra.mxu1 %v4151_v1  ;;  %v4851_v52 = vor.u32 %v5452_v39, %v4848_v40  ;;  %v4087_v1 = vor.u32 %v5263_v43, %v4086_v41  ;;  %v4390_v41 = vld [vmem:[#allocation8 + $0x368] sm:$0xf]  ;;  %v5403_v47 = vld [vmem:[#allocation8 + $0x574] sm:$0xf0] }
 0x13b   :  { %2866 = vmatpush.bf16.msrb.mxu2 %v4755_v60  ;;  %v4551_v60 = vor.u32 %v5379_v51, %v4550_v50  ;;  %v4486_v50 = vld [vmem:[#allocation8 + $0x428] sm:$0xf]  ;;  %v5363_v51 = vld [vmem:[#allocation8 + $0x434] sm:$0xf0] }
 0x13c   :  { %2892 = vmatpush.bf16.msra.mxu0 %v3991_v55  ;;  %2830 = vmatmul.bf16.vlgmr.msra.gmra.mxu3 %v5815_v42  ;;  %v5315_v55 = vld [vmem:[#allocation8 + $0x2b4] sm:$0xf0]  ;;  %v4487_v59 = vor.u32 %v5363_v51, %v4486_v50  ;;  %v4806_v50 = vld [vmem:[#allocation8 + $0x6a8] sm:$0xf] }
 0x13d   :  { %2878 = vmatpush.bf16.msrb.mxu3 %v4899_v2  ;;  %2904 = vmatpush.bf16.msra.mxu1 %v4135_v3  ;;  %v4295_v0 = vor.u32 %v5315_v55, %v4294_v54  ;;  %v4534_v2 = vld [vmem:[#allocation8 + $0x488] sm:$0xf]  ;;  %v5375_v3 = vld [vmem:[#allocation8 + $0x494] sm:$0xf0] }
 0x13e   :  { %v4535_v13 = vor.u32 %v5375_v3, %v4534_v2  ;;  %v4470_v2 = vld [vmem:[#allocation8 + $0x408] sm:$0xf]  ;;  %v5359_v3 = vld [vmem:[#allocation8 + $0x414] sm:$0xf0] }
 0x13f   :  { %2867 = vmatpush.bf16.msrb.mxu2 %v4739_v11  ;;  %v4422_v11 = vld [vmem:[#allocation8 + $0x3a8] sm:$0xf]  ;;  %v5443_v51 = vld [vmem:[#allocation8 + $0x6b4] sm:$0xf0] }
 0x140   :  { %2893 = vmatpush.bf16.msra.mxu0 %v3975_v6  ;;  %v4278_v6 = vld [vmem:[#allocation8 + $0x288] sm:$0xf] }
 0x141   :  { %2879 = vmatpush.bf16.msrb.mxu3 %v4883_v19  ;;  %2905 = vmatpush.bf16.msra.mxu1 %v4119_v20  ;;  %v4279_v18 = vor.u32 %v5311_v7, %v4278_v6  ;;  %v4518_v19 = vld [vmem:[#allocation8 + $0x468] sm:$0xf]  ;;  %v5371_v20 = vld [vmem:[#allocation8 + $0x474] sm:$0xf0]  ;;  %v5257_v7 = vld [vmem:[#allocation8 + $0xec] sm:$0xf] }
 0x142   :  { %v4519_v27 = vor.u32 %v5371_v20, %v4518_v19  ;;  %v5295_v6 = vld [vmem:[#allocation8 + $0x214] sm:$0xf0]  ;;  %v4614_v19 = vld [vmem:[#allocation8 + $0x528] sm:$0xf] }
 0x143   :  { %2868 = vmatpush.bf16.msrb.mxu2 %v4723_v28  ;;  %v2688_v23 = vpop.f32.mrf.mxu0  ;;  %v5343_v28 = vld [vmem:[#allocation8 + $0x394] sm:$0xf0] }
 0x144   :  { %2894 = vmatpush.bf16.msra.mxu0 %v3959_v24  ;;  %v4423_v24 = vor.u32 %v5347_v12, %v4422_v11  ;;  %v2689_v32 = vadd.f32 %v2688_v23, %v1391_v17  ;;  %v4407_v39 = vor.u32 %v5343_v28, %v4406_v26  ;;  %v4631_v11 = vor.u32 %v5399_v62, %v4630_v61  ;;  %v4838_v12 = vld [vmem:[#allocation8 + $0x6e8] sm:$0xf]  ;;  %v5395_v20 = vld [vmem:[#allocation8 + $0x534] sm:$0xf0]  ;;  %v4056_v26 = vld [vmem:[#allocation8 + $0xd8] sm:$0xf0] }
 0x145   :  { %2880 = vmatpush.bf16.msrb.mxu3 %v4867_v36  ;;  %2906 = vmatpush.bf16.msra.mxu1 %v4103_v37  ;;  %v5367_v36 = vld [vmem:[#allocation8 + $0x454] sm:$0xf0]  ;;  %v4246_v37 = vld [vmem:[#allocation8 + $0x248] sm:$0xf]  ;;  %v4471_v17 = vor.u32 %v5359_v3, %v4470_v2  ;;  %v4615_v28 = vor.u32 %v5395_v20, %v4614_v19 }
 0x146   :  { %2869 = vmatmul.bf16.vlgmr.msrb.gmra.mxu2 %v5830_v4  ;;  %v4503_v44 = vor.u32 %v5367_v36, %v4502_v35  ;;  %v5391_v35 = vld [vmem:[#allocation8 + $0x514] sm:$0xf0]  ;;  %v4966_v36 = vld [vmem:[#allocation8 + $0x7e8] sm:$0xf] }
 0x147   :  { %2913 = vmatpush.bf16.msra.mxu2 %v4327_v30  ;;  %2895 = vmatmul.bf16.vlgmr.msra.gmra.mxu0 %v5804_v33  ;;  %v5407_v30 = vld [vmem:[#allocation8 + $0x594] sm:$0xf0]  ;;  %v4934_v2 = vld [vmem:[#allocation8 + $0x7a8] sm:$0xf] }
 0x148   :  { %2939 = vmatpush.bf16.msrb.mxu0 %v4583_v29  ;;  %v4662_v29 = vld [vmem:[#allocation8 + $0x588] sm:$0xf]  ;;  %v5471_v20 = vld [vmem:[#allocation8 + $0x794] sm:$0xf0] }
 0x149   :  { %2881 = vmatpush.bf16.msrb.mxu3 %v4851_v52  ;;  %2907 = vmatpush.bf16.msra.mxu1 %v4087_v1  ;;  %v4663_v40 = vor.u32 %v5407_v30, %v4662_v29  ;;  %v4230_v52 = vld [vmem:[#allocation8 + $0x228] sm:$0xf]  ;;  %v5299_v1 = vld [vmem:[#allocation8 + $0x234] sm:$0xf0] }
 0x14a   :  { %v4231_v63 = vor.u32 %v5299_v1, %v4230_v52  ;;  %v5447_v29 = vld [vmem:[#allocation8 + $0x6d4] sm:$0xf0]  ;;  %v4342_v30 = vld [vmem:[#allocation8 + $0x308] sm:$0xf] }
 0x14b   :  { %2914 = vmatpush.bf16.msra.mxu2 %v4311_v49  ;;  %v4247_v49 = vor.u32 %v5303_v38, %v4246_v37  ;;  %v2690_v54 = vpop.f32.mrf.mxu0  ;;  %v5483_v38 = vld [vmem:[#allocation8 + $0x7f4] sm:$0xf0]  ;;  %v4950_v52 = vld [vmem:[#allocation8 + $0x7c8] sm:$0xf] }
 0x14c   :  { %2940 = vmatpush.bf16.msrb.mxu0 %v4567_v45  ;;  %2908 = vmatmul.bf16.vlgmr.msra.gmra.mxu1 %v5807_v57  ;;  %v5339_v45 = vld [vmem:[#allocation8 + $0x374] sm:$0xf0] }
 0x14d   :  { %2926 = vmatpush.bf16.msra.mxu3 %v4455_v56  ;;  %2952 = vmatpush.bf16.msrb.mxu1 %v4711_v58  ;;  %v4391_v55 = vor.u32 %v5339_v45, %v4390_v41  ;;  %v4647_v56 = vor.u32 %v5403_v47, %v4646_v46  ;;  %v4374_v58 = vld [vmem:[#allocation8 + $0x348] sm:$0xf]  ;;  %v4967_v47 = vor.u32 %v5483_v38, %v4966_v36  ;;  %v5479_v54 = vld [vmem:[#allocation8 + $0x7d4] sm:$0xf0]  ;;  %v5273_v36 = vld [vmem:[#allocation8 + $0x16c] sm:$0xf] }
 0x14e   :  { %2882 = vmatmul.bf16.vlgmr.msrb.gmra.mxu3 %v5834_v14  ;;  %v2701_v43 = vpop.f32.mrf.mxu1  ;;  %v4951_v61 = vor.u32 %v5479_v54, %v4950_v52  ;;  %v5233_v38 = vld [vmem:[#allocation8 + $0x2c] sm:$0xf]  ;;  %v4120_v52 = vld [vmem:[#allocation8 + $0x158] sm:$0xf0] }
 0x14f   :  { %2915 = vmatpush.bf16.msra.mxu2 %v4295_v0  ;;  %v5847_v48 = vadd.f32 %v2701_v43, %v2689_v32  ;;  %v4214_v0 = vld [vmem:[#allocation8 + $0x208] sm:$0xf]  ;;  %v5327_v32 = vld [vmem:[#allocation8 + $0x314] sm:$0xf0]  ;;  %v5249_v43 = vld [vmem:[#allocation8 + $0xac] sm:$0xf] }
 0x150   :  { %2941 = vmatpush.bf16.msrb.mxu0 %v4551_v60  ;;  %v5335_v60 = vld [vmem:[#allocation8 + $0x354] sm:$0xf0]  ;;  %v4215_v21 = vor.u32 %v5295_v6, %v4214_v0  ;;  %v4343_v45 = vor.u32 %v5327_v32, %v4342_v30  ;;  %v4902_v32 = vld [vmem:[#allocation8 + $0x768] sm:$0xf]  ;;  %v3960_v54 = vld [vmem:[#allocation8 + $0x18] sm:$0xf0] }
 0x151   :  { %2927 = vmatpush.bf16.msra.mxu3 %v4439_v9  ;;  %2953 = vmatpush.bf16.msrb.mxu1 %v4695_v10  ;;  %v4072_v9 = vld [vmem:[#allocation8 + $0xf8] sm:$0xf0]  ;;  %v4375_v10 = vor.u32 %v5335_v60, %v4374_v58  ;;  %v5245_v58 = vld [vmem:[#allocation8 + $0x8c] sm:$0xf]  ;;  %v4807_v60 = vor.u32 %v5443_v51, %v4806_v50  ;;  %v5439_v0 = vld [vmem:[#allocation8 + $0x694] sm:$0xf0] }
 0x152   :  { %v4075_v22 = vor.u32 %v5257_v7, %v4072_v9  ;;  %v5475_v6 = vld [vmem:[#allocation8 + $0x7b4] sm:$0xf0]  ;;  %v5281_v7 = vld [vmem:[#allocation8 + $0x1ac] sm:$0xf]  ;;  %v4168_v9 = vld [vmem:[#allocation8 + $0x1b8] sm:$0xf0] }
 0x153   :  { %2916 = vmatpush.bf16.msra.mxu2 %v4279_v18  ;;  %v5331_v18 = vld [vmem:[#allocation8 + $0x334] sm:$0xf0]  ;;  %v5269_v51 = vld [vmem:[#allocation8 + $0x14c] sm:$0xf] }
 0x154   :  { %2942 = vmatpush.bf16.msrb.mxu0 %v4535_v13  ;;  %v5451_v13 = vld [vmem:[#allocation8 + $0x6f4] sm:$0xf0] }
 0x155   :  { %2928 = vmatpush.bf16.msra.mxu3 %v4423_v24  ;;  %2954 = vmatpush.bf16.msrb.mxu1 %v4679_v25  ;;  %v4839_v23 = vor.u32 %v5451_v13, %v4838_v12  ;;  %v4822_v24 = vld [vmem:[#allocation8 + $0x6c8] sm:$0xf]  ;;  %v5253_v25 = vld [vmem:[#allocation8 + $0xcc] sm:$0xf]  ;;  %v4935_v13 = vor.u32 %v5475_v6, %v4934_v2  ;;  %v5431_v30 = vld [vmem:[#allocation8 + $0x654] sm:$0xf0] }
 0x156   :  { %v2703_v16 = vpop.f32.mrf.mxu1  ;;  %v4059_v37 = vor.u32 %v5253_v25, %v4056_v26  ;;  %v4823_v41 = vor.u32 %v5447_v29, %v4822_v24  ;;  %v5237_v24 = vld [vmem:[#allocation8 + $0x4c] sm:$0xf]  ;;  %v3992_v25 = vld [vmem:[#allocation8 + $0x58] sm:$0xf0]  ;;  %v4758_v29 = vld [vmem:[#allocation8 + $0x648] sm:$0xf] }
 0x157   :  { %2917 = vmatpush.bf16.msra.mxu2 %v4263_v34  ;;  %v4598_v34 = vld [vmem:[#allocation8 + $0x508] sm:$0xf]  ;;  %v5463_v50 = vld [vmem:[#allocation8 + $0x754] sm:$0xf0] }
 0x158   :  { %2943 = vmatpush.bf16.msrb.mxu0 %v4519_v27  ;;  %v4359_v27 = vor.u32 %v5331_v18, %v4358_v15  ;;  %v4599_v46 = vor.u32 %v5391_v35, %v4598_v34  ;;  %v4171_v15 = vor.u32 %v5281_v7, %v4168_v9  ;;  %v4774_v16 = vld [vmem:[#allocation8 + $0x668] sm:$0xf]  ;;  %v3995_v34 = vor.u32 %v5237_v24, %v3992_v25  ;;  %v5467_v35 = vld [vmem:[#allocation8 + $0x774] sm:$0xf0]  ;;  %v5261_v24 = vld [vmem:[#allocation8 + $0x10c] sm:$0xf] }
 0x159   :  { %2929 = vmatpush.bf16.msra.mxu3 %v4407_v39  ;;  %2955 = vmatpush.bf16.msrb.mxu1 %v4663_v40  ;;  %v5289_v39 = vld [vmem:[#allocation8 + $0x1ec] sm:$0xf]  ;;  %v4200_v40 = vld [vmem:[#allocation8 + $0x1f8] sm:$0xf0]  ;;  %v4918_v18 = vld [vmem:[#allocation8 + $0x788] sm:$0xf] }
 0x15a   :  { %v4870_v6 = vld [vmem:[#allocation8 + $0x728] sm:$0xf]  ;;  %v5459_v7 = vld [vmem:[#allocation8 + $0x734] sm:$0xf0]  ;;  %v4088_v25 = vld [vmem:[#allocation8 + $0x118] sm:$0xf0] }
 0x15b   :  { %2918 = vmatpush.bf16.msra.mxu2 %v4247_v49  ;;  %v4203_v49 = vor.u32 %v5289_v39, %v4200_v40  ;;  %v3976_v39 = vld [vmem:[#allocation8 + $0x38] sm:$0xf0]  ;;  %v4759_v40 = vor.u32 %v5431_v30, %v4758_v29  ;;  %v5417_v30 = vld [vmem:[#allocation8 + $0x5ec] sm:$0xf] }
 0x15c   :  { %2944 = vmatpush.bf16.msrb.mxu0 %v4503_v44  ;;  %v4040_v44 = vld [vmem:[#allocation8 + $0xb8] sm:$0xf0] }
 0x15d   :  { %2930 = vmatpush.bf16.msra.mxu3 %v4391_v55  ;;  %2956 = vmatpush.bf16.msrb.mxu1 %v4647_v56  ;;  %v4043_v1 = vor.u32 %v5249_v43, %v4040_v44  ;;  %v5285_v55 = vld [vmem:[#allocation8 + $0x1cc] sm:$0xf]  ;;  %v4184_v56 = vld [vmem:[#allocation8 + $0x1d8] sm:$0xf0]  ;;  %v4742_v44 = vld [vmem:[#allocation8 + $0x628] sm:$0xf] }
 0x15e   :  { %v4187_v62 = vor.u32 %v5285_v55, %v4184_v56  ;;  %v4456_v29 = vld [vmem:[#allocation8 + $0x3f8] sm:$0xf0] }
 0x15f   :  { %2919 = vmatpush.bf16.msra.mxu2 %v4231_v63  ;;  %v4790_v63 = vld [vmem:[#allocation8 + $0x688] sm:$0xf] }
 0x160   :  { %2945 = vmatpush.bf16.msrb.mxu0 %v4487_v59  ;;  %v4024_v59 = vld [vmem:[#allocation8 + $0x98] sm:$0xf0]  ;;  %v4791_v12 = vor.u32 %v5439_v0, %v4790_v63  ;;  %v5423_v63 = vld [vmem:[#allocation8 + $0x614] sm:$0xf0]  ;;  %v5321_v0 = vld [vmem:[#allocation8 + $0x2ec] sm:$0xf] }
 0x161   :  { %2931 = vmatpush.bf16.msra.mxu3 %v4375_v10  ;;  %2957 = vmatpush.bf16.msrb.mxu1 %v4631_v11  ;;  %v4027_v3 = vor.u32 %v5245_v58, %v4024_v59  ;;  %v5241_v10 = vld [vmem:[#allocation8 + $0x6c] sm:$0xf]  ;;  %v4008_v11 = vld [vmem:[#allocation8 + $0x78] sm:$0xf0] }
 0x162   :  { %v4011_v19 = vor.u32 %v5241_v10, %v4008_v11  ;;  %v5385_v58 = vld [vmem:[#allocation8 + $0x4ec] sm:$0xf]  ;;  %v4584_v59 = vld [vmem:[#allocation8 + $0x4f8] sm:$0xf0] }
 0x163   :  { %2920 = vmatpush.bf16.msra.mxu2 %v4215_v21  ;;  %v5277_v21 = vld [vmem:[#allocation8 + $0x18c] sm:$0xf]  ;;  %v4587_v9 = vor.u32 %v5385_v58, %v4584_v59  ;;  %v4104_v11 = vld [vmem:[#allocation8 + $0x138] sm:$0xf0] }
 0x164   :  { %2946 = vmatpush.bf16.msrb.mxu0 %v4471_v17  ;;  %v5435_v17 = vld [vmem:[#allocation8 + $0x674] sm:$0xf0]  ;;  %v5265_v10 = vld [vmem:[#allocation8 + $0x12c] sm:$0xf] }
 0x165   :  { %2932 = vmatpush.bf16.msra.mxu3 %v4359_v27  ;;  %2958 = vmatpush.bf16.msrb.mxu1 %v4615_v28  ;;  %v4775_v26 = vor.u32 %v5435_v17, %v4774_v16  ;;  %v4919_v27 = vor.u32 %v5471_v20, %v4918_v18  ;;  %v4871_v17 = vor.u32 %v5459_v7, %v4870_v6  ;;  %v5317_v18 = vld [vmem:[#allocation8 + $0x2cc] sm:$0xf]  ;;  %v4854_v20 = vld [vmem:[#allocation8 + $0x708] sm:$0xf] }
 0x166   :  { %2921 = vmatmul.bf16.vlgmr.msra.gmra.mxu2 %v5812_v8  ;;  %v5305_v7 = vld [vmem:[#allocation8 + $0x26c] sm:$0xf] }
 0x167   :  { %2965 = vmatpush.bf16.msrb.mxu2 %v4839_v23  ;;  %2947 = vmatmul.bf16.vlgmr.msrb.gmra.mxu0 %v5820_v31 }
 0x168   :  { %2991 = vmatpush.bf16.msra.mxu0 %v4075_v22  ;;  %v4152_v22 = vld [vmem:[#allocation8 + $0x198] sm:$0xf0] }
 0x169   :  { %2933 = vmatpush.bf16.msra.mxu3 %v4343_v45  ;;  %2959 = vmatpush.bf16.msrb.mxu1 %v4599_v46  ;;  %v5853_v23 = vpop.f32.mrf.mxu2  ;;  %v4155_v28 = vor.u32 %v5277_v21, %v4152_v22  ;;  %v5427_v45 = vld [vmem:[#allocation8 + $0x634] sm:$0xf0]  ;;  %v4886_v46 = vld [vmem:[#allocation8 + $0x748] sm:$0xf]  ;;  %v4107_v21 = vor.u32 %v5265_v10, %v4104_v11 }
 0x16a   :  { %v4743_v56 = vor.u32 %v5427_v45, %v4742_v44  ;;  %v5455_v22 = vld [vmem:[#allocation8 + $0x714] sm:$0xf0]  ;;  %v5349_v45 = vld [vmem:[#allocation8 + $0x3cc] sm:$0xf] }
 0x16b   :  { %2966 = vmatpush.bf16.msrb.mxu2 %v4823_v41  ;;  %v4903_v41 = vor.u32 %v5467_v35, %v4902_v32  ;;  %v4712_v32 = vld [vmem:[#allocation8 + $0x5f8] sm:$0xf0] }
 0x16c   :  { %2992 = vmatpush.bf16.msra.mxu0 %v4059_v37  ;;  %2934 = vmatmul.bf16.vlgmr.msra.gmra.mxu3 %v5815_v42  ;;  %v4136_v37 = vld [vmem:[#allocation8 + $0x178] sm:$0xf0] }
 0x16d   :  { %2978 = vmatpush.bf16.msrb.mxu3 %v4967_v47  ;;  %3004 = vmatpush.bf16.msra.mxu1 %v4203_v49  ;;  %v4139_v43 = vor.u32 %v5273_v36, %v4136_v37  ;;  %v3979_v49 = vor.u32 %v5233_v38, %v3976_v39  ;;  %v4552_v35 = vld [vmem:[#allocation8 + $0x4b8] sm:$0xf0]  ;;  %v4855_v37 = vor.u32 %v5455_v22, %v4854_v20 }
 0x16e   :  { %2960 = vmatmul.bf16.vlgmr.msrb.gmra.mxu1 %v5823_v53  ;;  %v4091_v38 = vor.u32 %v5261_v24, %v4088_v25  ;;  %v4248_v22 = vld [vmem:[#allocation8 + $0x258] sm:$0xf0] }
 0x16f   :  { %2967 = vmatpush.bf16.msrb.mxu2 %v4807_v60  ;;  %v5855_v47 = vpop.f32.mrf.mxu3  ;;  %v4887_v60 = vor.u32 %v5463_v50, %v4886_v46  ;;  %v4440_v46 = vld [vmem:[#allocation8 + $0x3d8] sm:$0xf0] }
 0x170   :  { %2993 = vmatpush.bf16.msra.mxu0 %v4043_v1  ;;  %v5229_v1 = vld [vmem:[#allocation8 + $0xc] sm:$0xf]  ;;  %v4696_v50 = vld [vmem:[#allocation8 + $0x5d8] sm:$0xf0] }
 0x171   :  { %2979 = vmatpush.bf16.msrb.mxu3 %v4951_v61  ;;  %3005 = vmatpush.bf16.msra.mxu1 %v4187_v62  ;;  %v2716_v55 = vpop.f32.mrf.mxu2  ;;  %v4123_v61 = vor.u32 %v5269_v51, %v4120_v52  ;;  %v4726_v62 = vld [vmem:[#allocation8 + $0x608] sm:$0xf]  ;;  %v3963_v2 = vor.u32 %v5229_v1, %v3960_v54  ;;  %v5373_v51 = vld [vmem:[#allocation8 + $0x48c] sm:$0xf]  ;;  %v4536_v52 = vld [vmem:[#allocation8 + $0x498] sm:$0xf0] }
 0x172   :  { %v5309_v54 = vld [vmem:[#allocation8 + $0x28c] sm:$0xf]  ;;  %v4280_v55 = vld [vmem:[#allocation8 + $0x298] sm:$0xf0]  ;;  %v4539_v59 = vor.u32 %v5373_v51, %v4536_v52 }
 0x173   :  { %2968 = vmatpush.bf16.msrb.mxu2 %v4791_v12  ;;  %v4727_v12 = vor.u32 %v5423_v63, %v4726_v62  ;;  %v5409_v62 = vld [vmem:[#allocation8 + $0x5ac] sm:$0xf]  ;;  %v4680_v63 = vld [vmem:[#allocation8 + $0x5b8] sm:$0xf0] }
 0x174   :  { %2994 = vmatpush.bf16.msra.mxu0 %v4027_v3  ;;  %v4328_v3 = vld [vmem:[#allocation8 + $0x2f8] sm:$0xf0]  ;;  %v4683_v10 = vor.u32 %v5409_v62, %v4680_v63 }
 0x175   :  { %2980 = vmatpush.bf16.msrb.mxu3 %v4935_v13  ;;  %3006 = vmatpush.bf16.msra.mxu1 %v4171_v15  ;;  %v5381_v13 = vld [vmem:[#allocation8 + $0x4cc] sm:$0xf]  ;;  %v4568_v15 = vld [vmem:[#allocation8 + $0x4d8] sm:$0xf0]  ;;  %v4331_v16 = vor.u32 %v5321_v0, %v4328_v3  ;;  %v4283_v3 = vor.u32 %v5309_v54, %v4280_v55 }
 0x176   :  { %v5369_v0 = vld [vmem:[#allocation8 + $0x46c] sm:$0xf]  ;;  %v4360_v62 = vld [vmem:[#allocation8 + $0x338] sm:$0xf0] }
 0x177   :  { %2969 = vmatpush.bf16.msrb.mxu2 %v4775_v26  ;;  %v2729_v26 = vpop.f32.mrf.mxu3  ;;  %v5449_v54 = vld [vmem:[#allocation8 + $0x6ec] sm:$0xf]  ;;  %v5491_v63 = vld [vmem:[#allocation11 + $0x38] sm:$0xff] }
 0x178   :  { %2995 = vmatpush.bf16.msra.mxu0 %v4011_v19  ;;  %v4312_v19 = vld [vmem:[#allocation8 + $0x2d8] sm:$0xf0] }
 0x179   :  { %2981 = vmatpush.bf16.msrb.mxu3 %v4919_v27  ;;  %3007 = vmatpush.bf16.msra.mxu1 %v4155_v28  ;;  %v4571_v27 = vor.u32 %v5381_v13, %v4568_v15  ;;  %v5353_v28 = vld [vmem:[#allocation8 + $0x3ec] sm:$0xf]  ;;  %v4315_v36 = vor.u32 %v5317_v18, %v4312_v19  ;;  %v4408_v13 = vld [vmem:[#allocation8 + $0x398] sm:$0xf0] }
 0x17a   :  { %v4459_v39 = vor.u32 %v5353_v28, %v4456_v29  ;;  %v5405_v15 = vld [vmem:[#allocation8 + $0x58c] sm:$0xf]  ;;  %v4504_v18 = vld [vmem:[#allocation8 + $0x458] sm:$0xf0] }
 0x17b   :  { %2970 = vmatpush.bf16.msrb.mxu2 %v4759_v40  ;;  %v5313_v40 = vld [vmem:[#allocation8 + $0x2ac] sm:$0xf]  ;;  %v4392_v28 = vld [vmem:[#allocation8 + $0x378] sm:$0xf0] }
 0x17c   :  { %2996 = vmatpush.bf16.msra.mxu0 %v3995_v34  ;;  %v5377_v34 = vld [vmem:[#allocation8 + $0x4ac] sm:$0xf] }
 0x17d   :  { %2982 = vmatpush.bf16.msrb.mxu3 %v4903_v41  ;;  %3008 = vmatpush.bf16.msra.mxu1 %v4139_v43  ;;  %v4296_v41 = vld [vmem:[#allocation8 + $0x2b8] sm:$0xf0]  ;;  %v4715_v43 = vor.u32 %v5417_v30, %v4712_v32  ;;  %v4555_v44 = vor.u32 %v5377_v34, %v4552_v35  ;;  %v5401_v29 = vld [vmem:[#allocation8 + $0x56c] sm:$0xf] }
 0x17e   :  { %v4299_v1 = vor.u32 %v5313_v40, %v4296_v41  ;;  %v4648_v30 = vld [vmem:[#allocation8 + $0x578] sm:$0xf0]  ;;  %v5361_v32 = vld [vmem:[#allocation8 + $0x42c] sm:$0xf] }
 0x17f   :  { %2971 = vmatpush.bf16.msrb.mxu2 %v4743_v56  ;;  %v4488_v34 = vld [vmem:[#allocation8 + $0x438] sm:$0xf0]  ;;  %v5333_v41 = vld [vmem:[#allocation8 + $0x34c] sm:$0xf] }
 0x180   :  { %2997 = vmatpush.bf16.msra.mxu0 %v3979_v49  ;;  %v5413_v49 = vld [vmem:[#allocation8 + $0x5cc] sm:$0xf]  ;;  %v4491_v40 = vor.u32 %v5361_v32, %v4488_v34  ;;  %v4952_v32 = vld [vmem:[#allocation8 + $0x7d8] sm:$0xf0] }
 0x181   :  { %2983 = vmatpush.bf16.msrb.mxu3 %v4887_v60  ;;  %3009 = vmatpush.bf16.msra.mxu1 %v4123_v61  ;;  %v4699_v58 = vor.u32 %v5413_v49, %v4696_v50  ;;  %v5345_v60 = vld [vmem:[#allocation8 + $0x3ac] sm:$0xf]  ;;  %v4424_v61 = vld [vmem:[#allocation8 + $0x3b8] sm:$0xf0] }
 0x182   :  { %v4427_v6 = vor.u32 %v5345_v60, %v4424_v61  ;;  %v4472_v49 = vld [vmem:[#allocation8 + $0x418] sm:$0xf0]  ;;  %v5329_v61 = vld [vmem:[#allocation8 + $0x32c] sm:$0xf] }
 0x183   :  { %2972 = vmatpush.bf16.msrb.mxu2 %v4727_v12  ;;  %v5341_v12 = vld [vmem:[#allocation8 + $0x38c] sm:$0xf]  ;;  %v4840_v60 = vld [vmem:[#allocation8 + $0x6f8] sm:$0xf0] }
 0x184   :  { %2998 = vmatpush.bf16.msra.mxu0 %v3963_v2  ;;  %v5859_v56 = vpop.f32.mrf.mxu0  ;;  %v4520_v2 = vld [vmem:[#allocation8 + $0x478] sm:$0xf0]  ;;  %v4411_v20 = vor.u32 %v5341_v12, %v4408_v13  ;;  %v5325_v13 = vld [vmem:[#allocation8 + $0x30c] sm:$0xf] }
 0x185   :  { %2984 = vmatpush.bf16.msrb.mxu3 %v4871_v17  ;;  %3010 = vmatpush.bf16.msra.mxu1 %v4107_v21  ;;  %v4523_v11 = vor.u32 %v5369_v0, %v4520_v2  ;;  %v5365_v17 = vld [vmem:[#allocation8 + $0x44c] sm:$0xf]  ;;  %v4616_v2 = vld [vmem:[#allocation8 + $0x538] sm:$0xf0] }
 0x186   :  { %2973 = vmatmul.bf16.vlgmr.msrb.gmra.mxu2 %v5830_v4  ;;  %v5301_v21 = vld [vmem:[#allocation8 + $0x24c] sm:$0xf]  ;;  %v4507_v26 = vor.u32 %v5365_v17, %v4504_v18  ;;  %v4600_v17 = vld [vmem:[#allocation8 + $0x518] sm:$0xf0] }
 0x187   :  { %3017 = vmatpush.bf16.msra.mxu2 %v4331_v16  ;;  %2999 = vmatmul.bf16.vlgmr.msra.gmra.mxu0 %v5804_v33  ;;  %v4443_v33 = vor.u32 %v5349_v45, %v4440_v46  ;;  %v4664_v16 = vld [vmem:[#allocation8 + $0x598] sm:$0xf0]  ;;  %v4251_v35 = vor.u32 %v5301_v21, %v4248_v22  ;;  %v5357_v46 = vld [vmem:[#allocation8 + $0x40c] sm:$0xf] }
 0x188   :  { %3043 = vmatpush.bf16.msrb.mxu0 %v4587_v9  ;;  %v4264_v9 = vld [vmem:[#allocation8 + $0x278] sm:$0xf0]  ;;  %v4667_v25 = vor.u32 %v5405_v15, %v4664_v16  ;;  %v5393_v0 = vld [vmem:[#allocation8 + $0x52c] sm:$0xf] }
 0x189   :  { %2985 = vmatpush.bf16.msrb.mxu3 %v4855_v37  ;;  %3011 = vmatpush.bf16.msra.mxu1 %v4091_v38  ;;  %v4267_v19 = vor.u32 %v5305_v7, %v4264_v9  ;;  %v5297_v37 = vld [vmem:[#allocation8 + $0x22c] sm:$0xf]  ;;  %v4232_v38 = vld [vmem:[#allocation8 + $0x238] sm:$0xf0]  ;;  %v4363_v7 = vor.u32 %v5329_v61, %v4360_v62  ;;  %v4619_v12 = vor.u32 %v5393_v0, %v4616_v2  ;;  %v5486_v61 = vld [vmem:[#allocation11 + $0x10] sm:$0xff] }
 0x18a   :  { %v4632_v45 = vld [vmem:[#allocation8 + $0x558] sm:$0xf0]  ;;  %v4235_v50 = vor.u32 %v5297_v37, %v4232_v38  ;;  %v5445_v9 = vld [vmem:[#allocation8 + $0x6cc] sm:$0xf]  ;;  %v5488_v38 = vld [vmem:[#allocation11 + $0x20] sm:$0xff] }
 0x18b   :  { %3018 = vmatpush.bf16.msra.mxu2 %v4315_v36  ;;  %v4344_v15 = vld [vmem:[#allocation8 + $0x318] sm:$0xf0]  ;;  %v5389_v16 = vld [vmem:[#allocation8 + $0x50c] sm:$0xf] }
 0x18c   :  { %3044 = vmatpush.bf16.msrb.mxu0 %v4571_v27  ;;  %2986 = vmatmul.bf16.vlgmr.msrb.gmra.mxu3 %v5834_v14  ;;  %v2742_v24 = vpop.f32.mrf.mxu0  ;;  %v5337_v27 = vld [vmem:[#allocation8 + $0x36c] sm:$0xf]  ;;  %v4347_v22 = vor.u32 %v5325_v13, %v4344_v15  ;;  %v5499_v34 = vld [vmem:[#allocation11 + $0x78] sm:$0xff] }
 0x18d   :  { %3030 = vmatpush.bf16.msra.mxu3 %v4459_v39  ;;  %3056 = vmatpush.bf16.msrb.mxu1 %v4715_v43  ;;  %v4395_v36 = vor.u32 %v5337_v27, %v4392_v28  ;;  %v4651_v39 = vor.u32 %v5401_v29, %v4648_v30  ;;  %v4376_v43 = vld [vmem:[#allocation8 + $0x358] sm:$0xf0]  ;;  %v5481_v18 = vld [vmem:[#allocation8 + $0x7ec] sm:$0xf] }
 0x18e   :  { %3012 = vmatmul.bf16.vlgmr.msra.gmra.mxu1 %v5807_v57  ;;  %v5863_v57 = vpop.f32.mrf.mxu1  ;;  %v4379_v52 = vor.u32 %v5333_v41, %v4376_v43  ;;  %v5441_v27 = vld [vmem:[#allocation8 + $0x6ac] sm:$0xf]  ;;  %v4808_v28 = vld [vmem:[#allocation8 + $0x6b8] sm:$0xf0]  ;;  %v5498_v41 = vld [vmem:[#allocation11 + $0x70] sm:$0xff] }
 0x18f   :  { %3019 = vmatpush.bf16.msra.mxu2 %v4299_v1  ;;  %v5293_v1 = vld [vmem:[#allocation8 + $0x20c] sm:$0xf]  ;;  %v5495_v13 = vld [vmem:[#allocation11 + $0x58] sm:$0xff] }
 0x190   :  { %3045 = vmatpush.bf16.msrb.mxu0 %v4555_v44  ;;  %v5397_v44 = vld [vmem:[#allocation8 + $0x54c] sm:$0xf] }
 0x191   :  { %3031 = vmatpush.bf16.msra.mxu3 %v4443_v33  ;;  %3057 = vmatpush.bf16.msrb.mxu1 %v4699_v58  ;;  %v4216_v33 = vld [vmem:[#allocation8 + $0x218] sm:$0xf0]  ;;  %v4635_v58 = vor.u32 %v5397_v44, %v4632_v45  ;;  %v5489_v29 = vld [vmem:[#allocation11 + $0x28] sm:$0xff] }
 0x192   :  { %v5477_v30 = vld [vmem:[#allocation8 + $0x7cc] sm:$0xf] }
 0x193   :  { %3020 = vmatpush.bf16.msra.mxu2 %v4283_v3  ;;  %v4219_v3 = vor.u32 %v5293_v1, %v4216_v33  ;;  %v5437_v37 = vld [vmem:[#allocation8 + $0x68c] sm:$0xf]  ;;  %v4920_v1 = vld [vmem:[#allocation8 + $0x798] sm:$0xf0] }
 0x194   :  { %3046 = vmatpush.bf16.msrb.mxu0 %v4539_v59  ;;  %v5865_v55 = vpop.f32.mrf.mxu0  ;;  %v4475_v59 = vor.u32 %v5357_v46, %v4472_v49  ;;  %v5433_v46 = vld [vmem:[#allocation8 + $0x66c] sm:$0xf]  ;;  %v4776_v49 = vld [vmem:[#allocation8 + $0x678] sm:$0xf0] }
 0x195   :  { %3032 = vmatpush.bf16.msra.mxu3 %v4427_v6  ;;  %3058 = vmatpush.bf16.msrb.mxu1 %v4683_v10  ;;  %v4843_v6 = vor.u32 %v5449_v54, %v4840_v60  ;;  %v4824_v10 = vld [vmem:[#allocation8 + $0x6d8] sm:$0xf0]  ;;  %v4779_v54 = vor.u32 %v5433_v46, %v4776_v49 }
 0x196   :  { %v2755_v51 = vpop.f32.mrf.mxu1  ;;  %v4827_v21 = vor.u32 %v5445_v9, %v4824_v10  ;;  %v4760_v60 = vld [vmem:[#allocation8 + $0x658] sm:$0xf0]  ;;  %v5485_v10 = vld [vmem:[#allocation11 + $0x8] sm:$0xff] }
 0x197   :  { %3021 = vmatpush.bf16.msra.mxu2 %v4267_v19  ;;  %v4968_v19 = vld [vmem:[#allocation8 + $0x7f8] sm:$0xf0]  ;;  %v2715_v51 = vadd.f32 %v5853_v23, %v5847_v48  ;;  %v5496_v23 = vld [vmem:[#allocation11 + $0x60] sm:$0xff] }
 0x198   :  { %3047 = vmatpush.bf16.msrb.mxu0 %v4523_v11  ;;  %v5490_v11 = vld [vmem:[#allocation11 + $0x30] sm:$0xff]  ;;  %v4904_v48 = vld [vmem:[#allocation8 + $0x778] sm:$0xf0] }
 0x199   :  { %3033 = vmatpush.bf16.msra.mxu3 %v4411_v20  ;;  %3059 = vmatpush.bf16.msrb.mxu1 %v4667_v25  ;;  %v4603_v25 = vor.u32 %v5389_v16, %v4600_v17  ;;  %v4744_v9 = vld [vmem:[#allocation8 + $0x638] sm:$0xf0] }
 0x19b   :  { %3022 = vmatpush.bf16.msra.mxu2 %v4251_v35  ;;  %v4811_v35 = vor.u32 %v5441_v27, %v4808_v28 }
 0x19c   :  { %3048 = vmatpush.bf16.msrb.mxu0 %v4507_v26  ;;  %v2794_v24 = vpop.f32.mrf.mxu0  ;;  %v4971_v26 = vor.u32 %v5481_v18, %v4968_v19  ;;  %v5421_v19 = vld [vmem:[#allocation8 + $0x60c] sm:$0xf] }
 0x19d   :  { %3034 = vmatpush.bf16.msra.mxu3 %v4395_v36  ;;  %3060 = vmatpush.bf16.msrb.mxu1 %v4651_v39  ;;  %v4955_v36 = vor.u32 %v5477_v30, %v4952_v32  ;;  %v5473_v39 = vld [vmem:[#allocation8 + $0x7ac] sm:$0xf] }
 0x19e   :  { %v5867_v20 = vpop.f32.mrf.mxu1  ;;  %v5457_v24 = vld [vmem:[#allocation8 + $0x72c] sm:$0xf] }
 0x19f   :  { %3023 = vmatpush.bf16.msra.mxu2 %v4235_v50  ;;  %v5487_v50 = vld [vmem:[#allocation11 + $0x18] sm:$0xff]  ;;  %v5453_v32 = vld [vmem:[#allocation8 + $0x70c] sm:$0xf] }
 0x1a0   :  { %3049 = vmatpush.bf16.msrb.mxu0 %v4491_v40  ;;  %v4936_v40 = vld [vmem:[#allocation8 + $0x7b8] sm:$0xf0] }
 0x1a1   :  { %3035 = vmatpush.bf16.msra.mxu3 %v4379_v52  ;;  %3061 = vmatpush.bf16.msrb.mxu1 %v4635_v58  ;;  %v4939_v45 = vor.u32 %v5473_v39, %v4936_v40  ;;  %v5469_v52 = vld [vmem:[#allocation8 + $0x78c] sm:$0xf]  ;;  %v5492_v39 = vld [vmem:[#allocation11 + $0x40] sm:$0xff]  ;;  %v1392_v40 = vperm.slane %v5842_v5, 1 }
 0x1a2   :  { %v4923_v58 = vor.u32 %v5469_v52, %v4920_v1 }
 0x1a3   :  { %3024 = vmatpush.bf16.msra.mxu2 %v4219_v3 }
 0x1a4   :  { %3050 = vmatpush.bf16.msrb.mxu0 %v4475_v59  ;;  %v5873_v44 = vpop.f32.mrf.mxu0  ;;  %v5429_v59 = vld [vmem:[#allocation8 + $0x64c] sm:$0xf] }
 0x1a5   :  { %3036 = vmatpush.bf16.msra.mxu3 %v4363_v7  ;;  %3062 = vmatpush.bf16.msrb.mxu1 %v4619_v12  ;;  %v5425_v7 = vld [vmem:[#allocation8 + $0x62c] sm:$0xf]  ;;  %v4888_v12 = vld [vmem:[#allocation8 + $0x758] sm:$0xf0] }
 0x1a6   :  { %3025 = vmatmul.bf16.vlgmr.msra.gmra.mxu2 %v5812_v8  ;;  %v2807_v8 = vpop.f32.mrf.mxu1  ;;  %v4747_v17 = vor.u32 %v5425_v7, %v4744_v9  ;;  %v5500_v7 = vld [vmem:[#allocation11 + $0x80] sm:$0xff] }
 0x1a7   :  { %3069 = vmatpush.bf16.msrb.mxu2 %v4843_v6  ;;  %3051 = vmatmul.bf16.vlgmr.msrb.gmra.mxu0 %v5820_v31  ;;  %v4792_v31 = vld [vmem:[#allocation8 + $0x698] sm:$0xf0] }
 0x1a8   :  { %3363 = vmatpush.bf16.msra.mxu0 %v5491_v63  ;;  %v4795_v43 = vor.u32 %v5437_v37, %v4792_v31  ;;  %v5465_v63 = vld [vmem:[#allocation8 + $0x76c] sm:$0xf] }
 0x1a9   :  { %3037 = vmatpush.bf16.msra.mxu3 %v4347_v22  ;;  %3063 = vmatpush.bf16.msrb.mxu1 %v4603_v25  ;;  %v2766_v33 = vpop.f32.mrf.mxu2  ;;  %v4907_v6 = vor.u32 %v5465_v63, %v4904_v48  ;;  %v5484_v22 = vld [vmem:[#allocation11] sm:$0xff]  ;;  %v4872_v25 = vld [vmem:[#allocation8 + $0x738] sm:$0xf0] }
 0x1aa   :  { %v4875_v30 = vor.u32 %v5457_v24, %v4872_v25  ;;  %v5503_v63 = vld [vmem:[#allocation11 + $0x98] sm:$0xff] }
 0x1ab   :  { %3070 = vmatpush.bf16.msrb.mxu2 %v4827_v21  ;;  %v4728_v21 = vld [vmem:[#allocation8 + $0x618] sm:$0xf0] }
 0x1ac   :  { %3364 = vmatpush.bf16.msra.mxu0 %v5490_v11  ;;  %3038 = vmatmul.bf16.vlgmr.msra.gmra.mxu3 %v5815_v42  ;;  %v5497_v42 = vld [vmem:[#allocation11 + $0x68] sm:$0xff]  ;;  %v2846_v3 = vpop.f32.mrf.mxu0 }
 0x1ad   :  { %3082 = vmatpush.bf16.msrb.mxu3 %v4971_v26  ;;  %3376 = vmatpush.bf16.msra.mxu1 %v5499_v34  ;;  %v5494_v26 = vld [vmem:[#allocation11 + $0x50] sm:$0xff]  ;;  %v4856_v34 = vld [vmem:[#allocation8 + $0x718] sm:$0xf0]  ;;  %v5501_v3 = vld [vmem:[#allocation11 + $0x88] sm:$0xff] }
 0x1ae   :  { %3064 = vmatmul.bf16.vlgmr.msrb.gmra.mxu1 %v5823_v53  ;;  %v2728_v53 = vadd.f32 %v5855_v47, %v2715_v51  ;;  %v5880_v2 = vpop.f32.mrf.mxu1  ;;  %v4763_v47 = vor.u32 %v5429_v59, %v4760_v60  ;;  %v5506_v59 = vld [vmem:[#allocation11 + $0xb0] sm:$0xff] }
 0x1af   :  { %3071 = vmatpush.bf16.msrb.mxu2 %v4811_v35  ;;  %v2779_v15 = vpop.f32.mrf.mxu3  ;;  %v5493_v35 = vld [vmem:[#allocation11 + $0x48] sm:$0xff] }
 0x1b0   :  { %3365 = vmatpush.bf16.msra.mxu0 %v5489_v29  ;;  %v2741_v62 = vadd.f32 %v5859_v56, %v2728_v53  ;;  %v5461_v56 = vld [vmem:[#allocation8 + $0x74c] sm:$0xf]  ;;  %v4731_v29 = vor.u32 %v5421_v19, %v4728_v21 }
 0x1b1   :  { %3083 = vmatpush.bf16.msrb.mxu3 %v4955_v36  ;;  %3377 = vmatpush.bf16.msra.mxu1 %v5498_v41  ;;  %v4891_v18 = vor.u32 %v5461_v56, %v4888_v12  ;;  %v2793_v41 = vadd.f32 %v5865_v55, %v1392_v40  ;;  %v5510_v40 = vld [vmem:[#allocation11 + $0xd0] sm:$0xff] }
 0x1b2   :  { %v2754_v0 = vadd.f32 %v5863_v57, %v2741_v62  ;;  %v2768_v57 = vpop.f32.mrf.mxu2 }
 0x1b3   :  { %3072 = vmatpush.bf16.msrb.mxu2 %v4795_v43  ;;  %v2806_v43 = vadd.f32 %v5867_v20, %v2793_v41 }
 0x1b4   :  { %3366 = vmatpush.bf16.msra.mxu0 %v5488_v38  ;;  %v2767_v11 = vadd.f32 %v2766_v33, %v2754_v0  ;;  %v4859_v38 = vor.u32 %v5453_v32, %v4856_v34  ;;  %v5507_v33 = vld [vmem:[#allocation11 + $0xb8] sm:$0xff] }
 0x1b5   :  { %3084 = vmatpush.bf16.msrb.mxu3 %v4939_v45  ;;  %3378 = vmatpush.bf16.msra.mxu1 %v5497_v42 }
 0x1b6   :  { %v2780_v16 = vadd.f32 %v2779_v15, %v2767_v11  ;;  %v2859_v28 = vpop.f32.mrf.mxu1  ;;  %v5530_v11 = vld [vmem:[#allocation10] sm:$0xf] }
 0x1b7   :  { %3073 = vmatpush.bf16.msrb.mxu2 %v4779_v54  ;;  %v2781_v37 = vpop.f32.mrf.mxu3  ;;  %v1393_v56 = vperm.slane %v5530_v11, 2 }
 0x1b8   :  { %3367 = vmatpush.bf16.msra.mxu0 %v5487_v50  ;;  %v3095_v27 = vmax.f32 %v2780_v16, 0.0 }
 0x1b9   :  { %3085 = vmatpush.bf16.msrb.mxu3 %v4923_v58  ;;  %3379 = vmatpush.bf16.msra.mxu1 %v5496_v23  ;;  %v5502_v23 = vld [vmem:[#allocation11 + $0x90] sm:$0xff] }
 0x1ba   :  { %v3099_v36 = vpack.c.bf16 %v3095_v27, %v3095_v27  ;;  %v2818_v31 = vpop.f32.mrf.mxu2  ;;  %v5515_v27 = vld [vmem:[#allocation11 + $0xf8] sm:$0xff] }
 0x1bb   :  { %3074 = vmatpush.bf16.msrb.mxu2 %v4763_v47  ;;  %v2819_v46 = vadd.f32 %v2818_v31, %v2806_v43  ;;  %v5512_v31 = vld [vmem:[#allocation11 + $0xe0] sm:$0xff] }
 0x1bc   :  { %3368 = vmatpush.bf16.msra.mxu0 %v5486_v61  ;;  %v5505_v61 = vld [vmem:[#allocation11 + $0xa8] sm:$0xff] }
 0x1bd   :  { %3086 = vmatpush.bf16.msrb.mxu3 %v4907_v6  ;;  %3380 = vmatpush.bf16.msra.mxu1 %v5495_v13 }
 0x1bf   :  { %3075 = vmatpush.bf16.msrb.mxu2 %v4747_v17  ;;  %v2831_v8 = vpop.f32.mrf.mxu3 }
 0x1c0   :  { %3369 = vmatpush.bf16.msra.mxu0 %v5485_v10  ;;  %v2832_v50 = vadd.f32 %v2831_v8, %v2819_v46 }
 0x1c1   :  { %3087 = vmatpush.bf16.msrb.mxu3 %v4891_v18  ;;  %3381 = vmatpush.bf16.msra.mxu1 %v5494_v26 }
 0x1c2   :  { %v2820_v45 = vpop.f32.mrf.mxu2  ;;  %v2845_v52 = vadd.f32 %v5873_v44, %v2832_v50  ;;  %v5504_v44 = vld [vmem:[#allocation11 + $0xa0] sm:$0xff] }
 0x1c3   :  { %3076 = vmatpush.bf16.msrb.mxu2 %v4731_v29  ;;  %v5509_v45 = vld [vmem:[#allocation11 + $0xc8] sm:$0xff] }
 0x1c4   :  { %3370 = vmatpush.bf16.msra.mxu0 %v5484_v22  ;;  %v2896_v49 = vpop.f32.mrf.mxu0 }
 0x1c5   :  { %3088 = vmatpush.bf16.msrb.mxu3 %v4875_v30  ;;  %3382 = vmatpush.bf16.msra.mxu1 %v5493_v35  ;;  %v2897_v13 = vadd.f32 %v2896_v49, %v1393_v56  ;;  %v5514_v35 = vld [vmem:[#allocation11 + $0xf0] sm:$0xff]  ;;  %v5508_v49 = vld [vmem:[#allocation11 + $0xc0] sm:$0xff] }
 0x1c6   :  { %3077 = vmatmul.bf16.vlgmr.msrb.gmra.mxu2 %v5830_v4  ;;  %v2858_v4 = vadd.f32 %v5880_v2, %v2845_v52  ;;  %v1394_v52 = vperm.slane %v5530_v11, 3 }
 0x1c7   :  { %3371 = vmatmul.bf16.vlgmr.msra.gmra.mxu0 %v3099_v36  ;;  %v2833_v51 = vpop.f32.mrf.mxu3  ;;  %3389 = vmatpush.bf16.msra.mxu2 %v5507_v33  ;;  %v5513_v36 = vld [vmem:[#allocation11 + $0xe8] sm:$0xff] }
 0x1c9   :  { %3089 = vmatpush.bf16.msrb.mxu3 %v4859_v38  ;;  %3383 = vmatpush.bf16.msra.mxu1 %v5492_v39  ;;  %v2909_v1 = vpop.f32.mrf.mxu1  ;;  %v5511_v38 = vld [vmem:[#allocation11 + $0xd8] sm:$0xff] }
 0x1ca   :  { %v2870_v5 = vpop.f32.mrf.mxu2  ;;  %v2910_v15 = vadd.f32 %v2909_v1, %v2897_v13 }
 0x1cb   :  { %v2871_v53 = vadd.f32 %v2870_v5, %v2858_v4  ;;  %3390 = vmatpush.bf16.msra.mxu2 %v5506_v59 }
 0x1cc   :  { %3090 = vmatmul.bf16.vlgmr.msrb.gmra.mxu3 %v5834_v14  ;;  %v2898_v42 = vpop.f32.mrf.mxu0 }
 0x1cd   :  { %3402 = vmatpush.bf16.msra.mxu3 %v5515_v27 }
 0x1cf   :  { %3391 = vmatpush.bf16.msra.mxu2 %v5505_v61 }
 0x1d1   :  { %v2883_v55 = vpop.f32.mrf.mxu3  ;;  %v2911_v58 = vpop.f32.mrf.mxu1  ;;  %3403 = vmatpush.bf16.msra.mxu3 %v5514_v35 }
 0x1d2   :  { %v2884_v54 = vadd.f32 %v2883_v55, %v2871_v53  ;;  %v2872_v14 = vpop.f32.mrf.mxu2 }
 0x1d3   :  { %3392 = vmatpush.bf16.msra.mxu2 %v5504_v44 }
 0x1d4   :  { %v3096_v20 = vmax.f32 %v2884_v54, 0.0 }
 0x1d5   :  { %3404 = vmatpush.bf16.msra.mxu3 %v5513_v36 }
 0x1d6   :  { %v3100_v60 = vpack.c.bf16 %v3096_v20, %v3096_v20 }
 0x1d7   :  { %3393 = vmatpush.bf16.msra.mxu2 %v5503_v63 }
 0x1d8   :  { %3384 = vmatmul.bf16.vlgmr.msra.gmra.mxu1 %v3100_v60 }
 0x1d9   :  { %v2885_v62 = vpop.f32.mrf.mxu3  ;;  %3405 = vmatpush.bf16.msra.mxu3 %v5512_v31 }
 0x1db   :  { %3394 = vmatpush.bf16.msra.mxu2 %v5502_v23 }
 0x1dd   :  { %3406 = vmatpush.bf16.msra.mxu3 %v5511_v38 }
 0x1df   :  { %3395 = vmatpush.bf16.msra.mxu2 %v5501_v3 }
 0x1e1   :  { %3407 = vmatpush.bf16.msra.mxu3 %v5510_v40 }
 0x1e3   :  { %3396 = vmatpush.bf16.msra.mxu2 %v5500_v7 }
 0x1e4   :  { %v2948_v48 = vpop.f32.mrf.mxu0 }
 0x1e5   :  { %3408 = vmatpush.bf16.msra.mxu3 %v5509_v45 }
 0x1e9   :  { %v2922_v0 = vpop.f32.mrf.mxu2  ;;  %3409 = vmatpush.bf16.msra.mxu3 %v5508_v49 }
 0x1ea   :  { %v2923_v16 = vadd.f32 %v2922_v0, %v2910_v15 }
 0x1eb   :  { %v2961_v2 = vpop.f32.mrf.mxu1 }
 0x1ec   :  { %v2950_v47 = vpop.f32.mrf.mxu0 }
 0x1ef   :  { %v2935_v6 = vpop.f32.mrf.mxu3 }
 0x1f0   :  { %v2936_v17 = vadd.f32 %v2935_v6, %v2923_v16 }
 0x1f1   :  { %v2924_v9 = vpop.f32.mrf.mxu2 }
 0x1f2   :  { %v2949_v18 = vadd.f32 %v2948_v48, %v2936_v17  ;;  %v5529_v48 = vld [vmem:[%s5901_s6] ss:$0 sm:$0xff] }
 0x1f3   :  { %v2963_v10 = vpop.f32.mrf.mxu1 }
 0x1f4   :  { %v2962_v24 = vadd.f32 %v2961_v2, %v2949_v18 }
 0x1f7   :  { %v2937_v12 = vpop.f32.mrf.mxu3 }
 0x204   :  { %v3000_v57 = vpop.f32.mrf.mxu0 }
 0x205   :  { %v3001_v5 = vadd.f32 %v3000_v57, %v1394_v52 }
 0x209   :  { %v2974_v19 = vpop.f32.mrf.mxu2 }
 0x20a   :  { %v2975_v25 = vadd.f32 %v2974_v19, %v2962_v24 }
 0x20b   :  { %v3013_v21 = vpop.f32.mrf.mxu1 }
 0x20c   :  { %v3002_v22 = vpop.f32.mrf.mxu0  ;;  %v3014_v42 = vadd.f32 %v3013_v21, %v3001_v5 }
 0x20f   :  { %v2987_v26 = vpop.f32.mrf.mxu3 }
 0x210   :  { %v2988_v28 = vadd.f32 %v2987_v26, %v2975_v25 }
 0x211   :  { %v2976_v30 = vpop.f32.mrf.mxu2 }
 0x212   :  { %v3097_v29 = vmax.f32 %v2988_v28, 0.0 }
 0x213   :  { %v3015_v32 = vpop.f32.mrf.mxu1 }
 0x214   :  { %v3101_v34 = vpack.c.bf16 %v3097_v29, %v3097_v29 }
 0x216   :  { %3397 = vmatmul.bf16.vlgmr.msra.gmra.mxu2 %v3101_v34 }
 0x217   :  { %v2989_v37 = vpop.f32.mrf.mxu3 }
 0x224   :  { %v3052_v39 = vpop.f32.mrf.mxu0 }
 0x229   :  { %v3026_v41 = vpop.f32.mrf.mxu2 }
 0x22a   :  { %v3027_v4 = vadd.f32 %v3026_v41, %v3014_v42 }
 0x22b   :  { %v3065_v8 = vpop.f32.mrf.mxu1 }
 0x22c   :  { %v3054_v43 = vpop.f32.mrf.mxu0 }
 0x22f   :  { %v3039_v46 = vpop.f32.mrf.mxu3 }
 0x230   :  { %v3040_v33 = vadd.f32 %v3039_v46, %v3027_v4 }
 0x231   :  { %v3028_v50 = vpop.f32.mrf.mxu2 }
 0x232   :  { %v3053_v55 = vadd.f32 %v3052_v39, %v3040_v33 }
 0x233   :  { %v3067_v51 = vpop.f32.mrf.mxu1 }
 0x234   :  { %v3066_v14 = vadd.f32 %v3065_v8, %v3053_v55 }
 0x237   :  { %v3041_v1 = vpop.f32.mrf.mxu3 }
 0x244   :  { %v3372_v53 = vpop.f32.mrf.mxu0 }
 0x245   :  { %v3373_v23 = vadd.f32 %v5529_v48, %v3372_v53 }
 0x249   :  { %v3078_v54 = vpop.f32.mrf.mxu2 }
 0x24a   :  { %v3079_v20 = vadd.f32 %v3078_v54, %v3066_v14 }
 0x24c   :  { %v3374_v58 = vpop.f32.mrf.mxu0 }
 0x24f   :  { %v3091_v59 = vpop.f32.mrf.mxu3 }
 0x250   :  { %v3092_v60 = vadd.f32 %v3091_v59, %v3079_v20 }
 0x251   :  { %v3080_v62 = vpop.f32.mrf.mxu2 }
 0x252   :  { %v3098_v61 = vmax.f32 %v3092_v60, 0.0 }
 0x254   :  { %v3102_v44 = vpack.c.bf16 %v3098_v61, %v3098_v61 }
 0x255   :  { %v3385_v0 = vpop.f32.mrf.mxu1 }
 0x256   :  { %3410 = vmatmul.bf16.vlgmr.msra.gmra.mxu3 %v3102_v44  ;;  %v3386_v2 = vadd.f32 %v3385_v0, %v3373_v23 }
 0x257   :  { %v3093_v63 = vpop.f32.mrf.mxu3 }
 0x25d   :  { %v3387_v47 = vpop.f32.mrf.mxu1 }
 0x299   :  { %v3398_v3 = vpop.f32.mrf.mxu2 }
 0x29a   :  { %v3399_v7 = vadd.f32 %v3398_v3, %v3386_v2 }
 0x2a1   :  { %v3400_v6 = vpop.f32.mrf.mxu2 }
 0x2d9   :  { %v3411_v9 = vpop.f32.mrf.mxu3 }
 0x2da   :  { %v3412_v10 = vadd.f32 %v3411_v9, %v3399_v7 }
 0x2dc   :  { %3415 = vst [vmem:[#allocation13] sm:$0xff] %v3412_v10 }
 0x2dd   :  { %3426 = dma.vmem_to_hbm [thread:$0]  %s3422_s11, 128, %s3424_s14, [#allocation4]  }
 0x2e1   :  { %v3413_v11 = vpop.f32.mrf.mxu3 }
 0x2e2   :  { %5707 = dma.done.wait [#allocation4], 128  }
 0x2e3   :  { %5708 = vsyncadd [#allocation4], 4294967168 }
 0x2e4   :  { %3431 = vsyncpa [#allocation3], 1 }
 0x2e5   :  { %3432 = vsyncpa [#allocation6], 1 }
 0x2e6   :  { %3433 = vsyncpa [#allocation9], 1 }
 0x2e7   :  { %3434 = vsyncpa [#allocation12], 1 }
 0x2e8   :  { %3435 = vsyncpa [#allocation4], 1 }

</bundles_post_ra>
